<compile_context>
chip_gen: v5e
topology: v5e:2x2
jax: 0.10.0
libtpu: 0.0.40
codegen_flags: <defaults>
</compile_context>

<pallas_src>
import functools

import jax
import jax.numpy as jnp
from jax.experimental import pallas as pl
from jax.experimental.pallas import tpu as pltpu


def _round_up(a, b):
    return (a + b - 1) // b * b


def _linear(h, w_ref, b_ref, *, relu, compute_dtype):
    """One Linear (+ optional ReLU). MXU inputs in compute_dtype (bf16),
    f32 accumulation; bias add and ReLU in f32."""
    acc = jnp.dot(h.astype(compute_dtype), w_ref[...],
                  preferred_element_type=jnp.float32)
    acc = acc + b_ref[...].astype(jnp.float32)
    if relu:
        acc = jnp.maximum(acc, 0.0)
    return acc


def _dsnae_forward_kernel(x_ref, *refs, n_rest, n_dec, latent_dim, norm_flag,
                          compute_dtype):
    """One (block_rows, D) row tile of the full DSNAE forward.

    refs layout:
      [w0, b0]                      fused first encoder layer (D, 2*H0)
      n_rest * [w, b]               private encoder layers 1..L-1
      n_rest * [w, b]               shared  encoder layers 1..L-1
      n_dec  * [w, b]               decoder layers
      recons_ref, z_ref             outputs
    """
    n_params = 2 * (1 + 2 * n_rest + n_dec)
    params = refs[:n_params]
    recons_ref, z_ref = refs[n_params], refs[n_params + 1]

    def pair(i):
        return params[2 * i], params[2 * i + 1]

    lin = functools.partial(_linear, compute_dtype=compute_dtype)

    # Fused first encoder layer: x @ [Wp0 | Ws0] -> [hp | hs].
    w0, b0 = pair(0)
    n_enc = 1 + n_rest                       # layers per encoder branch
    h = lin(x_ref[...], w0, b0, relu=(n_enc > 1))
    half = h.shape[-1] // 2
    hp, hs = h[:, :half], h[:, half:]        # 128-lane aligned static slices

    # Remaining private / shared encoder layers (independent branches).
    for i in range(n_rest):
        relu = i < n_rest - 1                # final encoder layer: no ReLU
        wp, bp = pair(1 + i)
        ws, bs = pair(1 + n_rest + i)
        hp = lin(hp, wp, bp, relu=relu)
        hs = lin(hs, ws, bs, relu=relu)

    if norm_flag:
        # F.normalize(v, p=2, dim=1) == v * min(rsqrt(sum v^2), 1/eps);
        # rsqrt rides the EUP slot instead of a VPU divide.
        inv_eps = 1.0 / 1e-12
        hp = hp * jnp.minimum(
            jax.lax.rsqrt(jnp.sum(hp * hp, axis=-1, keepdims=True)), inv_eps)
        hs = hs * jnp.minimum(
            jax.lax.rsqrt(jnp.sum(hs * hs, axis=-1, keepdims=True)), inv_eps)

    # Write latent halves straight into z_ref (no concat temporary); both halves
    # are 128-lane aligned so the stores are unmasked.  Reuse that VMEM tile as
    # the decoder input.
    z_ref[:, :latent_dim] = hp.astype(z_ref.dtype)
    z_ref[:, latent_dim:] = hs.astype(z_ref.dtype)
    h = z_ref[...]

    for i in range(n_dec):
        w, b = pair(1 + 2 * n_rest + i)
        h = lin(h, w, b, relu=(i < n_dec - 1))
    recons_ref[...] = h.astype(recons_ref.dtype)


def dsnae_forward(x, params, *, block_rows=256, norm_flag=False,
                  compute_dtype=jnp.bfloat16):
    """JAX wrapper mirroring DSNAE.forward (eval mode). Returns [x, recons, z]."""
    n, d = x.shape
    p_layers = params["private"]
    s_layers = params["shared"]
    d_layers = params["decoder"]
    assert len(p_layers) == len(s_layers), "private/shared encoder depth mismatch"
    n_rest = len(p_layers) - 1
    n_dec = len(d_layers)

    latent_dim = p_layers[-1][0].shape[1]
    z_dim = 2 * latent_dim
    assert d_layers[-1][0].shape[1] == d, "decoder must reconstruct input_dim"
    # Lane-dense stores / well-filled MXU tiles need 128-aligned feature dims.
    # TODO(synk): pad feature dims to 128 in the wrapper to support the module's
    #             unaligned default hidden_dims=[32, 64, 128, 256, 512].
    for dim in ([d, latent_dim]
                + [w.shape[1] for w, _ in p_layers[:-1]]
                + [w.shape[1] for w, _ in d_layers[:-1]]):
        assert dim % 128 == 0, f"feature dim {dim} must be a multiple of 128"

    f32 = jnp.float32
    # Fused first encoder layer (valid: both branches consume the same x).
    w0 = jnp.concatenate([p_layers[0][0], s_layers[0][0]], axis=1).astype(compute_dtype)
    b0 = jnp.concatenate([p_layers[0][1], s_layers[0][1]], axis=1).astype(f32)

    flat_params = [w0, b0]
    for group in (p_layers[1:], s_layers[1:], d_layers):
        for w, b in group:
            flat_params.extend([w.astype(compute_dtype), b.astype(f32)])

    # Row tiling: clamp the tile to the (8-rounded) batch, pad batch to a
    # multiple of it, slice results back afterwards.
    block_rows = max(8, _round_up(min(block_rows, _round_up(n, 8)), 8))
    padded_n = _round_up(n, block_rows)
    x_in = x if padded_n == n else jnp.pad(x, ((0, padded_n - n), (0, 0)))
    grid = (padded_n // block_rows,)

    def resident_spec(arr):
        # Full array, same block every grid step -> stays in VMEM, no re-DMA.
        nd = arr.ndim
        return pl.BlockSpec(arr.shape, lambda i, _nd=nd: (0,) * _nd)

    in_specs = ([pl.BlockSpec((block_rows, d), lambda i: (i, 0))]
                + [resident_spec(p) for p in flat_params])
    out_specs = [pl.BlockSpec((block_rows, d), lambda i: (i, 0)),
                 pl.BlockSpec((block_rows, z_dim), lambda i: (i, 0))]

    # Advisory cost estimate for XLA's scheduler around the custom call.
    h0 = p_layers[0][0].shape[1]
    layer_macs = (d * 2 * h0
                  + 2 * sum(w.shape[0] * w.shape[1] for w, _ in p_layers[1:])
                  + sum(w.shape[0] * w.shape[1] for w, _ in d_layers))
    weight_bytes = sum(int(p.size) * p.dtype.itemsize for p in flat_params)
    cost = pl.CostEstimate(
        flops=2 * padded_n * layer_macs,
        transcendentals=0,
        bytes_accessed=padded_n * (2 * d + z_dim) * x.dtype.itemsize + weight_bytes)

    # VMEM budget: double-buffered x/recons/z tiles + resident weights.  Only
    # raise the scoped limit if we actually approach the v5e 16 MiB default;
    # cap well under v7x's 64 MiB physical VMEM.
    tile_bytes = 2 * block_rows * (2 * d + z_dim) * x.dtype.itemsize
    vmem_limit = None
    if tile_bytes + weight_bytes > 12 * 1024 * 1024:
        vmem_limit = min(2 * (tile_bytes + weight_bytes), 48 * 1024 * 1024)

    kernel = functools.partial(
        _dsnae_forward_kernel, n_rest=n_rest, n_dec=n_dec,
        latent_dim=latent_dim, norm_flag=norm_flag, compute_dtype=compute_dtype)

    recons, z = pl.pallas_call(
        kernel,
        out_shape=(jax.ShapeDtypeStruct((padded_n, d), x.dtype),
                   jax.ShapeDtypeStruct((padded_n, z_dim), x.dtype)),
        grid_spec=pltpu.PrefetchScalarGridSpec(
            num_scalar_prefetch=0,
            grid=grid,
            in_specs=in_specs,
            out_specs=out_specs),
        compiler_params=pltpu.CompilerParams(
            # Row tiles are independent -> megacore-shardable (>=2 grid steps).
            dimension_semantics=("parallel",),
            vmem_limit_bytes=vmem_limit),
        cost_estimate=cost,
    )(x_in, *flat_params)

    if padded_n != n:
        recons, z = recons[:n], z[:n]
    return x, recons, z


def init_dsnae_params(key, input_dim, hidden_dims, latent_dim, dec_hidden_dims):
    """PyTorch-Linear-style init: U(-1/sqrt(fan_in), 1/sqrt(fan_in)).
    Weights stored (in_features, out_features); biases stored (1, out_features)."""
    def linear(k, fan_in, fan_out):
        kw, kb = jax.random.split(k)
        lim = fan_in ** -0.5
        w = jax.random.uniform(kw, (fan_in, fan_out), jnp.float32, -lim, lim)
        b = jax.random.uniform(kb, (1, fan_out), jnp.float32, -lim, lim)
        return w, b

    def mlp_params(k, dims):
        keys = jax.random.split(k, len(dims) - 1)
        return [linear(keys[i], dims[i], dims[i + 1]) for i in range(len(dims) - 1)]

    kp, ks, kd = jax.random.split(key, 3)
    enc_dims = [input_dim] + list(hidden_dims) + [latent_dim]
    dec_dims = [2 * latent_dim] + list(dec_hidden_dims) + [input_dim]
    return {
        "private": mlp_params(kp, enc_dims),   # DSNAE.private_encoder
        "shared": mlp_params(ks, enc_dims),    # injected shared_encoder (same MLP shape)
        "decoder": mlp_params(kd, dec_dims),   # injected decoder (MLP)
    }


def _ref_forward(x, params, *, norm_flag=False, compute_dtype=jnp.bfloat16):
    """Pure-JAX reference mimicking the kernel numerics (bf16 dot inputs, f32 acc)."""
    def mlp(h, layers):
        n = len(layers)
        for i, (w, b) in enumerate(layers):
            h = jnp.dot(h.astype(compute_dtype), w.astype(compute_dtype),
                        preferred_element_type=jnp.float32) + b
            if i < n - 1:
                h = jnp.maximum(h, 0.0)
        return h

    p_z = mlp(x, params["private"])
    s_z = mlp(x, params["shared"])
    if norm_flag:
        p_z = p_z / jnp.maximum(jnp.linalg.norm(p_z, axis=-1, keepdims=True), 1e-12)
        s_z = s_z / jnp.maximum(jnp.linalg.norm(s_z, axis=-1, keepdims=True), 1e-12)
    z = jnp.concatenate([p_z, s_z], axis=-1)
    recons = mlp(z, params["decoder"])
    return x, recons, z


if __name__ == "__main__":
    key = jax.random.PRNGKey(0)
    kx, kp = jax.random.split(key)

    # 128-lane-aligned stand-ins for the module's dims; batch gives 2 grid steps
    # at the default block_rows=256 (keeps both v7x TensorCores busy).
    batch = 512
    input_dim = 256
    latent_dim = 128
    hidden_dims = (128, 256)
    dec_hidden_dims = (256, 128)

    x = jax.random.normal(kx, (batch, input_dim), jnp.float32)
    params = init_dsnae_params(kp, input_dim, hidden_dims, latent_dim,
                               dec_hidden_dims)

    ok = True
    for norm_flag in (False, True):
        _, recons, z = dsnae_forward(x, params, norm_flag=norm_flag)
        jax.block_until_ready((recons, z))
        _, ref_recons, ref_z = _ref_forward(x, params, norm_flag=norm_flag)
        ok &= bool(jnp.allclose(z, ref_z, atol=2e-2, rtol=2e-2))
        ok &= bool(jnp.allclose(recons, ref_recons, atol=2e-2, rtol=2e-2))
    assert ok, "kernel output mismatch vs reference"
    print("KERNEL_OK")
</pallas_src>

<mosaic_0001>
module attributes {stable_mosaic.version = 11 : i64} {
  func.func @_dsnae_forward_kernel(%arg0: i32, %arg1: memref<256x256xf32, #tpu.memory_space<vmem>>, %arg2: memref<256x256xbf16, #tpu.memory_space<vmem>>, %arg3: memref<1x256xf32, #tpu.memory_space<vmem>>, %arg4: memref<128x256xbf16, #tpu.memory_space<vmem>>, %arg5: memref<1x256xf32, #tpu.memory_space<vmem>>, %arg6: memref<256x128xbf16, #tpu.memory_space<vmem>>, %arg7: memref<1x128xf32, #tpu.memory_space<vmem>>, %arg8: memref<128x256xbf16, #tpu.memory_space<vmem>>, %arg9: memref<1x256xf32, #tpu.memory_space<vmem>>, %arg10: memref<256x128xbf16, #tpu.memory_space<vmem>>, %arg11: memref<1x128xf32, #tpu.memory_space<vmem>>, %arg12: memref<256x256xbf16, #tpu.memory_space<vmem>>, %arg13: memref<1x256xf32, #tpu.memory_space<vmem>>, %arg14: memref<256x128xbf16, #tpu.memory_space<vmem>>, %arg15: memref<1x128xf32, #tpu.memory_space<vmem>>, %arg16: memref<128x256xbf16, #tpu.memory_space<vmem>>, %arg17: memref<1x256xf32, #tpu.memory_space<vmem>>, %arg18: memref<256x256xf32, #tpu.memory_space<vmem>>, %arg19: memref<256x256xf32, #tpu.memory_space<vmem>>) attributes {dimension_semantics = [#tpu.dimension_semantics<parallel>], iteration_bounds = array<i64: 2>, scalar_prefetch = 0 : i64, scratch_operands = 0 : i64, tpu.core_type = #tpu.core_type<tc>, window_params = [{transform_indices = @transform_0, window_bounds = array<i64: 256, 256>}, {pipeline_mode = #tpu.pipeline_mode<synchronous>, transform_indices = @transform_1, window_bounds = array<i64: 256, 256>}, {pipeline_mode = #tpu.pipeline_mode<synchronous>, transform_indices = @transform_2, window_bounds = array<i64: 1, 256>}, {pipeline_mode = #tpu.pipeline_mode<synchronous>, transform_indices = @transform_3, window_bounds = array<i64: 128, 256>}, {pipeline_mode = #tpu.pipeline_mode<synchronous>, transform_indices = @transform_4, window_bounds = array<i64: 1, 256>}, {pipeline_mode = #tpu.pipeline_mode<synchronous>, transform_indices = @transform_5, window_bounds = array<i64: 256, 128>}, {pipeline_mode = #tpu.pipeline_mode<synchronous>, transform_indices = @transform_6, window_bounds = array<i64: 1, 128>}, {pipeline_mode = #tpu.pipeline_mode<synchronous>, transform_indices = @transform_7, window_bounds = array<i64: 128, 256>}, {pipeline_mode = #tpu.pipeline_mode<synchronous>, transform_indices = @transform_8, window_bounds = array<i64: 1, 256>}, {pipeline_mode = #tpu.pipeline_mode<synchronous>, transform_indices = @transform_9, window_bounds = array<i64: 256, 128>}, {pipeline_mode = #tpu.pipeline_mode<synchronous>, transform_indices = @transform_10, window_bounds = array<i64: 1, 128>}, {pipeline_mode = #tpu.pipeline_mode<synchronous>, transform_indices = @transform_11, window_bounds = array<i64: 256, 256>}, {pipeline_mode = #tpu.pipeline_mode<synchronous>, transform_indices = @transform_12, window_bounds = array<i64: 1, 256>}, {pipeline_mode = #tpu.pipeline_mode<synchronous>, transform_indices = @transform_13, window_bounds = array<i64: 256, 128>}, {pipeline_mode = #tpu.pipeline_mode<synchronous>, transform_indices = @transform_14, window_bounds = array<i64: 1, 128>}, {pipeline_mode = #tpu.pipeline_mode<synchronous>, transform_indices = @transform_15, window_bounds = array<i64: 128, 256>}, {pipeline_mode = #tpu.pipeline_mode<synchronous>, transform_indices = @transform_16, window_bounds = array<i64: 1, 256>}, {transform_indices = @transform_17, window_bounds = array<i64: 256, 256>}, {transform_indices = @transform_18, window_bounds = array<i64: 256, 256>}]} {
    %c0 = arith.constant 0 : index
    %c0_0 = arith.constant 0 : index
    %0 = vector.load %arg1[%c0, %c0_0] : memref<256x256xf32, #tpu.memory_space<vmem>>, vector<256x256xf32>
    %1 = arith.truncf %0 : vector<256x256xf32> to vector<256x256xbf16>
    %c0_1 = arith.constant 0 : index
    %c0_2 = arith.constant 0 : index
    %2 = vector.load %arg2[%c0_1, %c0_2] : memref<256x256xbf16, #tpu.memory_space<vmem>>, vector<256x256xbf16>
    %cst = arith.constant dense<0.000000e+00> : vector<256x256xf32>
    %3 = tpu.matmul %1, %2, %cst {dimension_numbers = #tpu.dot_dimension_numbers<[1], [0], [0], [1], [0, 0, 1, 1], [], []>} : vector<256x256xbf16>, vector<256x256xbf16>, vector<256x256xf32> -> vector<256x256xf32>
    %c0_3 = arith.constant 0 : index
    %c0_4 = arith.constant 0 : index
    %4 = vector.load %arg3[%c0_3, %c0_4] : memref<1x256xf32, #tpu.memory_space<vmem>>, vector<1x256xf32>
    %5 = vector.broadcast %4 : vector<1x256xf32> to vector<256x256xf32>
    %6 = arith.addf %3, %5 : vector<256x256xf32>
    %cst_5 = arith.constant 0.000000e+00 : f32
    %7 = vector.broadcast %cst_5 : f32 to vector<256x256xf32>
    %8 = arith.maximumf %6, %7 : vector<256x256xf32>
    %9 = vector.extract_strided_slice %8 {offsets = [0, 0], sizes = [256, 128], strides = [1, 1]} : vector<256x256xf32> to vector<256x128xf32>
    %10 = vector.extract_strided_slice %8 {offsets = [0, 128], sizes = [256, 128], strides = [1, 1]} : vector<256x256xf32> to vector<256x128xf32>
    %11 = arith.truncf %9 : vector<256x128xf32> to vector<256x128xbf16>
    %c0_6 = arith.constant 0 : index
    %c0_7 = arith.constant 0 : index
    %12 = vector.load %arg4[%c0_6, %c0_7] : memref<128x256xbf16, #tpu.memory_space<vmem>>, vector<128x256xbf16>
    %cst_8 = arith.constant dense<0.000000e+00> : vector<256x256xf32>
    %13 = tpu.matmul %11, %12, %cst_8 {dimension_numbers = #tpu.dot_dimension_numbers<[1], [0], [0], [1], [0, 0, 1, 1], [], []>} : vector<256x128xbf16>, vector<128x256xbf16>, vector<256x256xf32> -> vector<256x256xf32>
    %c0_9 = arith.constant 0 : index
    %c0_10 = arith.constant 0 : index
    %14 = vector.load %arg5[%c0_9, %c0_10] : memref<1x256xf32, #tpu.memory_space<vmem>>, vector<1x256xf32>
    %15 = vector.broadcast %14 : vector<1x256xf32> to vector<256x256xf32>
    %16 = arith.addf %13, %15 : vector<256x256xf32>
    %cst_11 = arith.constant 0.000000e+00 : f32
    %17 = vector.broadcast %cst_11 : f32 to vector<256x256xf32>
    %18 = arith.maximumf %16, %17 : vector<256x256xf32>
    %19 = arith.truncf %10 : vector<256x128xf32> to vector<256x128xbf16>
    %c0_12 = arith.constant 0 : index
    %c0_13 = arith.constant 0 : index
    %20 = vector.load %arg8[%c0_12, %c0_13] : memref<128x256xbf16, #tpu.memory_space<vmem>>, vector<128x256xbf16>
    %cst_14 = arith.constant dense<0.000000e+00> : vector<256x256xf32>
    %21 = tpu.matmul %19, %20, %cst_14 {dimension_numbers = #tpu.dot_dimension_numbers<[1], [0], [0], [1], [0, 0, 1, 1], [], []>} : vector<256x128xbf16>, vector<128x256xbf16>, vector<256x256xf32> -> vector<256x256xf32>
    %c0_15 = arith.constant 0 : index
    %c0_16 = arith.constant 0 : index
    %22 = vector.load %arg9[%c0_15, %c0_16] : memref<1x256xf32, #tpu.memory_space<vmem>>, vector<1x256xf32>
    %23 = vector.broadcast %22 : vector<1x256xf32> to vector<256x256xf32>
    %24 = arith.addf %21, %23 : vector<256x256xf32>
    %cst_17 = arith.constant 0.000000e+00 : f32
    %25 = vector.broadcast %cst_17 : f32 to vector<256x256xf32>
    %26 = arith.maximumf %24, %25 : vector<256x256xf32>
    %27 = arith.truncf %18 : vector<256x256xf32> to vector<256x256xbf16>
    %c0_18 = arith.constant 0 : index
    %c0_19 = arith.constant 0 : index
    %28 = vector.load %arg6[%c0_18, %c0_19] : memref<256x128xbf16, #tpu.memory_space<vmem>>, vector<256x128xbf16>
    %cst_20 = arith.constant dense<0.000000e+00> : vector<256x128xf32>
    %29 = tpu.matmul %27, %28, %cst_20 {dimension_numbers = #tpu.dot_dimension_numbers<[1], [0], [0], [1], [0, 0, 1, 1], [], []>} : vector<256x256xbf16>, vector<256x128xbf16>, vector<256x128xf32> -> vector<256x128xf32>
    %c0_21 = arith.constant 0 : index
    %c0_22 = arith.constant 0 : index
    %30 = vector.load %arg7[%c0_21, %c0_22] : memref<1x128xf32, #tpu.memory_space<vmem>>, vector<1x128xf32>
    %31 = vector.broadcast %30 : vector<1x128xf32> to vector<256x128xf32>
    %32 = arith.addf %29, %31 : vector<256x128xf32>
    %33 = arith.truncf %26 : vector<256x256xf32> to vector<256x256xbf16>
    %c0_23 = arith.constant 0 : index
    %c0_24 = arith.constant 0 : index
    %34 = vector.load %arg10[%c0_23, %c0_24] : memref<256x128xbf16, #tpu.memory_space<vmem>>, vector<256x128xbf16>
    %cst_25 = arith.constant dense<0.000000e+00> : vector<256x128xf32>
    %35 = tpu.matmul %33, %34, %cst_25 {dimension_numbers = #tpu.dot_dimension_numbers<[1], [0], [0], [1], [0, 0, 1, 1], [], []>} : vector<256x256xbf16>, vector<256x128xbf16>, vector<256x128xf32> -> vector<256x128xf32>
    %c0_26 = arith.constant 0 : index
    %c0_27 = arith.constant 0 : index
    %36 = vector.load %arg11[%c0_26, %c0_27] : memref<1x128xf32, #tpu.memory_space<vmem>>, vector<1x128xf32>
    %37 = vector.broadcast %36 : vector<1x128xf32> to vector<256x128xf32>
    %38 = arith.addf %35, %37 : vector<256x128xf32>
    %c0_28 = arith.constant 0 : index
    %c0_29 = arith.constant 0 : index
    %39 = vector.load %arg19[%c0_28, %c0_29] : memref<256x256xf32, #tpu.memory_space<vmem>>, vector<256x128xf32>
    tpu.vector_store %arg19[%c0_28, %c0_29], %32 {strides = array<i32>} : memref<256x256xf32, #tpu.memory_space<vmem>>, vector<256x128xf32>,
    %c0_30 = arith.constant 0 : index
    %c128 = arith.constant 128 : index
    %40 = vector.load %arg19[%c0_30, %c128] : memref<256x256xf32, #tpu.memory_space<vmem>>, vector<256x128xf32>
    tpu.vector_store %arg19[%c0_30, %c128], %38 {strides = array<i32>} : memref<256x256xf32, #tpu.memory_space<vmem>>, vector<256x128xf32>,
    %c0_31 = arith.constant 0 : index
    %c0_32 = arith.constant 0 : index
    %41 = vector.load %arg19[%c0_31, %c0_32] : memref<256x256xf32, #tpu.memory_space<vmem>>, vector<256x256xf32>
    %42 = arith.truncf %41 : vector<256x256xf32> to vector<256x256xbf16>
    %c0_33 = arith.constant 0 : index
    %c0_34 = arith.constant 0 : index
    %43 = vector.load %arg12[%c0_33, %c0_34] : memref<256x256xbf16, #tpu.memory_space<vmem>>, vector<256x256xbf16>
    %cst_35 = arith.constant dense<0.000000e+00> : vector<256x256xf32>
    %44 = tpu.matmul %42, %43, %cst_35 {dimension_numbers = #tpu.dot_dimension_numbers<[1], [0], [0], [1], [0, 0, 1, 1], [], []>} : vector<256x256xbf16>, vector<256x256xbf16>, vector<256x256xf32> -> vector<256x256xf32>
    %c0_36 = arith.constant 0 : index
    %c0_37 = arith.constant 0 : index
    %45 = vector.load %arg13[%c0_36, %c0_37] : memref<1x256xf32, #tpu.memory_space<vmem>>, vector<1x256xf32>
    %46 = vector.broadcast %45 : vector<1x256xf32> to vector<256x256xf32>
    %47 = arith.addf %44, %46 : vector<256x256xf32>
    %cst_38 = arith.constant 0.000000e+00 : f32
    %48 = vector.broadcast %cst_38 : f32 to vector<256x256xf32>
    %49 = arith.maximumf %47, %48 : vector<256x256xf32>
    %50 = arith.truncf %49 : vector<256x256xf32> to vector<256x256xbf16>
    %c0_39 = arith.constant 0 : index
    %c0_40 = arith.constant 0 : index
    %51 = vector.load %arg14[%c0_39, %c0_40] : memref<256x128xbf16, #tpu.memory_space<vmem>>, vector<256x128xbf16>
    %cst_41 = arith.constant dense<0.000000e+00> : vector<256x128xf32>
    %52 = tpu.matmul %50, %51, %cst_41 {dimension_numbers = #tpu.dot_dimension_numbers<[1], [0], [0], [1], [0, 0, 1, 1], [], []>} : vector<256x256xbf16>, vector<256x128xbf16>, vector<256x128xf32> -> vector<256x128xf32>
    %c0_42 = arith.constant 0 : index
    %c0_43 = arith.constant 0 : index
    %53 = vector.load %arg15[%c0_42, %c0_43] : memref<1x128xf32, #tpu.memory_space<vmem>>, vector<1x128xf32>
    %54 = vector.broadcast %53 : vector<1x128xf32> to vector<256x128xf32>
    %55 = arith.addf %52, %54 : vector<256x128xf32>
    %cst_44 = arith.constant 0.000000e+00 : f32
    %56 = vector.broadcast %cst_44 : f32 to vector<256x128xf32>
    %57 = arith.maximumf %55, %56 : vector<256x128xf32>
    %58 = arith.truncf %57 : vector<256x128xf32> to vector<256x128xbf16>
    %c0_45 = arith.constant 0 : index
    %c0_46 = arith.constant 0 : index
    %59 = vector.load %arg16[%c0_45, %c0_46] : memref<128x256xbf16, #tpu.memory_space<vmem>>, vector<128x256xbf16>
    %cst_47 = arith.constant dense<0.000000e+00> : vector<256x256xf32>
    %60 = tpu.matmul %58, %59, %cst_47 {dimension_numbers = #tpu.dot_dimension_numbers<[1], [0], [0], [1], [0, 0, 1, 1], [], []>} : vector<256x128xbf16>, vector<128x256xbf16>, vector<256x256xf32> -> vector<256x256xf32>
    %c0_48 = arith.constant 0 : index
    %c0_49 = arith.constant 0 : index
    %61 = vector.load %arg17[%c0_48, %c0_49] : memref<1x256xf32, #tpu.memory_space<vmem>>, vector<1x256xf32>
    %62 = vector.broadcast %61 : vector<1x256xf32> to vector<256x256xf32>
    %63 = arith.addf %60, %62 : vector<256x256xf32>
    %c0_50 = arith.constant 0 : index
    %c0_51 = arith.constant 0 : index
    %64 = vector.load %arg18[%c0_50, %c0_51] : memref<256x256xf32, #tpu.memory_space<vmem>>, vector<256x256xf32>
    tpu.vector_store %arg18[%c0_50, %c0_51], %63 {strides = array<i32>} : memref<256x256xf32, #tpu.memory_space<vmem>>, vector<256x256xf32>,
    return
  }
  func.func @transform_0(%arg0: i32) -> (i32, i32) {
    %c0_i32 = arith.constant 0 : i32
    %c0_i32_0 = arith.constant 0 : i32
    return %arg0, %c0_i32 : i32, i32
  }
  func.func @transform_1(%arg0: i32) -> (i32, i32) {
    %c0_i32 = arith.constant 0 : i32
    %c0_i32_0 = arith.constant 0 : i32
    %c0_i32_1 = arith.constant 0 : i32
    return %c0_i32, %c0_i32_0 : i32, i32
  }
  func.func @transform_2(%arg0: i32) -> (i32, i32) {
    %c0_i32 = arith.constant 0 : i32
    %c0_i32_0 = arith.constant 0 : i32
    %c0_i32_1 = arith.constant 0 : i32
    return %c0_i32, %c0_i32_0 : i32, i32
  }
  func.func @transform_3(%arg0: i32) -> (i32, i32) {
    %c0_i32 = arith.constant 0 : i32
    %c0_i32_0 = arith.constant 0 : i32
    %c0_i32_1 = arith.constant 0 : i32
    return %c0_i32, %c0_i32_0 : i32, i32
  }
  func.func @transform_4(%arg0: i32) -> (i32, i32) {
    %c0_i32 = arith.constant 0 : i32
    %c0_i32_0 = arith.constant 0 : i32
    %c0_i32_1 = arith.constant 0 : i32
    return %c0_i32, %c0_i32_0 : i32, i32
  }
  func.func @transform_5(%arg0: i32) -> (i32, i32) {
    %c0_i32 = arith.constant 0 : i32
    %c0_i32_0 = arith.constant 0 : i32
    %c0_i32_1 = arith.constant 0 : i32
    return %c0_i32, %c0_i32_0 : i32, i32
  }
  func.func @transform_6(%arg0: i32) -> (i32, i32) {
    %c0_i32 = arith.constant 0 : i32
    %c0_i32_0 = arith.constant 0 : i32
    %c0_i32_1 = arith.constant 0 : i32
    return %c0_i32, %c0_i32_0 : i32, i32
  }
  func.func @transform_7(%arg0: i32) -> (i32, i32) {
    %c0_i32 = arith.constant 0 : i32
    %c0_i32_0 = arith.constant 0 : i32
    %c0_i32_1 = arith.constant 0 : i32
    return %c0_i32, %c0_i32_0 : i32, i32
  }
  func.func @transform_8(%arg0: i32) -> (i32, i32) {
    %c0_i32 = arith.constant 0 : i32
    %c0_i32_0 = arith.constant 0 : i32
    %c0_i32_1 = arith.constant 0 : i32
    return %c0_i32, %c0_i32_0 : i32, i32
  }
  func.func @transform_9(%arg0: i32) -> (i32, i32) {
    %c0_i32 = arith.constant 0 : i32
    %c0_i32_0 = arith.constant 0 : i32
    %c0_i32_1 = arith.constant 0 : i32
    return %c0_i32, %c0_i32_0 : i32, i32
  }
  func.func @transform_10(%arg0: i32) -> (i32, i32) {
    %c0_i32 = arith.constant 0 : i32
    %c0_i32_0 = arith.constant 0 : i32
    %c0_i32_1 = arith.constant 0 : i32
    return %c0_i32, %c0_i32_0 : i32, i32
  }
  func.func @transform_11(%arg0: i32) -> (i32, i32) {
    %c0_i32 = arith.constant 0 : i32
    %c0_i32_0 = arith.constant 0 : i32
    %c0_i32_1 = arith.constant 0 : i32
    return %c0_i32, %c0_i32_0 : i32, i32
  }
  func.func @transform_12(%arg0: i32) -> (i32, i32) {
    %c0_i32 = arith.constant 0 : i32
    %c0_i32_0 = arith.constant 0 : i32
    %c0_i32_1 = arith.constant 0 : i32
    return %c0_i32, %c0_i32_0 : i32, i32
  }
  func.func @transform_13(%arg0: i32) -> (i32, i32) {
    %c0_i32 = arith.constant 0 : i32
    %c0_i32_0 = arith.constant 0 : i32
    %c0_i32_1 = arith.constant 0 : i32
    return %c0_i32, %c0_i32_0 : i32, i32
  }
  func.func @transform_14(%arg0: i32) -> (i32, i32) {
    %c0_i32 = arith.constant 0 : i32
    %c0_i32_0 = arith.constant 0 : i32
    %c0_i32_1 = arith.constant 0 : i32
    return %c0_i32, %c0_i32_0 : i32, i32
  }
  func.func @transform_15(%arg0: i32) -> (i32, i32) {
    %c0_i32 = arith.constant 0 : i32
    %c0_i32_0 = arith.constant 0 : i32
    %c0_i32_1 = arith.constant 0 : i32
    return %c0_i32, %c0_i32_0 : i32, i32
  }
  func.func @transform_16(%arg0: i32) -> (i32, i32) {
    %c0_i32 = arith.constant 0 : i32
    %c0_i32_0 = arith.constant 0 : i32
    %c0_i32_1 = arith.constant 0 : i32
    return %c0_i32, %c0_i32_0 : i32, i32
  }
  func.func @transform_17(%arg0: i32) -> (i32, i32) {
    %c0_i32 = arith.constant 0 : i32
    %c0_i32_0 = arith.constant 0 : i32
    return %arg0, %c0_i32 : i32, i32
  }
  func.func @transform_18(%arg0: i32) -> (i32, i32) {
    %c0_i32 = arith.constant 0 : i32
    %c0_i32_0 = arith.constant 0 : i32
    return %arg0, %c0_i32 : i32, i32
  }
}

</mosaic_0001>

<bundles_post_ra>
// kernel: tpu_custom_call.1
= control target key start
LH: loop header
LB: loop body
LE: loop exit
PB: predicated region body
PF: predicated region fallthrough
CT: control target
= control target key end

     0   :  { %s7815_s0 = inlined_call_operand.hbm [shape: f32[512,256], index: 0, kind: input, shape index: {}]   ;;  %s7816_s1 = inlined_call_operand.hbm [shape: bf16[256,256], index: 1, kind: input, shape index: {}]   ;;  %s7817_s2 = inlined_call_operand.hbm [shape: f32[1,256], index: 2, kind: input, shape index: {}]   ;;  %s7818_s3 = inlined_call_operand.hbm [shape: bf16[128,256], index: 3, kind: input, shape index: {}]   ;;  %s7819_s4 = inlined_call_operand.vmem [shape: f32[1,256], index: 4, kind: input, shape index: {}]   ;;  %s7820_s5 = inlined_call_operand.hbm [shape: bf16[256,128], index: 5, kind: input, shape index: {}]   ;;  %s7821_s6 = inlined_call_operand.hbm [shape: f32[1,128], index: 6, kind: input, shape index: {}]   ;;  %s7822_s7 = inlined_call_operand.hbm [shape: bf16[128,256], index: 7, kind: input, shape index: {}]   ;;  %s7823_s8 = inlined_call_operand.vmem [shape: f32[1,256], index: 8, kind: input, shape index: {}]   ;;  %s7824_s9 = inlined_call_operand.hbm [shape: bf16[256,128], index: 9, kind: input, shape index: {}]   ;;  %s7825_s10 = inlined_call_operand.vmem [shape: f32[1,128], index: 10, kind: input, shape index: {}]   ;;  %s7826_s11 = inlined_call_operand.hbm [shape: bf16[256,256], index: 11, kind: input, shape index: {}]   ;;  %s7827_s12 = inlined_call_operand.vmem [shape: f32[1,256], index: 12, kind: input, shape index: {}]   ;;  %s7828_s13 = inlined_call_operand.hbm [shape: bf16[256,128], index: 13, kind: input, shape index: {}]   ;;  %s7829_s14 = inlined_call_operand.vmem [shape: f32[1,128], index: 14, kind: input, shape index: {}]   ;;  %s7830_s15 = inlined_call_operand.hbm [shape: bf16[128,256], index: 15, kind: input, shape index: {}]   ;;  %s7831_s16 = inlined_call_operand.vmem [shape: f32[1,256], index: 16, kind: input, shape index: {}]   ;;  %s7832_s17 = inlined_call_operand.hbm [shape: f32[512,256], index: 17, kind: output, shape index: {0}]   ;;  %s7833_s18 = inlined_call_operand.hbm [shape: f32[512,256], index: 18, kind: output, shape index: {1}]  }
   0x1   :  { %7841 = sst [smem:[#allocation31_spill]] %s7815_s0 }
   0x2   :  { %7842 = sst [smem:[#allocation32_spill]] %s7816_s1 }
   0x3   :  { %7843 = sst [smem:[#allocation33_spill]] %s7817_s2 }
   0x4   :  { %7844 = sst [smem:[#allocation34_spill]] %s7818_s3 }
   0x5   :  { %7845 = sst [smem:[#allocation35_spill]] %s7820_s5 }
   0x6   :  { %7846 = sst [smem:[#allocation36_spill]] %s7821_s6 }
   0x7   :  { %7847 = sst [smem:[#allocation37_spill]] %s7822_s7 }
   0x8   :  { %7848 = sst [smem:[#allocation38_spill]] %s7824_s9 }
   0x9   :  { %7849 = sst [smem:[#allocation39_spill]] %s7826_s11 }
   0xa   :  { %7850 = sst [smem:[#allocation40_spill]] %s7827_s12 }
   0xb   :  { %7851 = sst [smem:[#allocation41_spill]] %s7829_s14 }
   0xc   :  { %7852 = sst [smem:[#allocation42_spill]] %s7831_s16 }
   0xd   :  { %7853 = sst [smem:[#allocation43_spill]] %s7832_s17 }
   0xe   :  { %7854 = sst [smem:[#allocation44_spill]] %s7833_s18 }
   0xf   :  { %24 = vsyncpa [#allocation3], 0 }
  0x10   :  { %26 = vsyncpa [#allocation3 + $0x1], 0 }
  0x11   :  { %27 = vsyncpa [#allocation6], 0 }
  0x12   :  { %28 = vsyncpa [#allocation9], 0 }
  0x13   :  { %29 = vsyncpa [#allocation12], 0 }
  0x14   :  { %30 = vsyncpa [#allocation15], 0 }
  0x15   :  { %31 = vsyncpa [#allocation18], 0 }
  0x16   :  { %32 = vsyncpa [#allocation4], 0 }
  0x17   :  { %34 = vsyncpa [#allocation4 + $0x1], 0 }
  0x18   :  { %35 = vsyncpa [#allocation22], 0 }
  0x19   :  { %37 = vsyncpa [#allocation22 + $0x1], 0  ;;  %s6217_s27 = smov 0   ;;  %s6219_s28 = smov 0  }
  0x1a   :  { %s6221_s29 = smov 0   ;;  %s6223_s30 = smov 0  }
  0x1b LB: > { %s7855_s1 = sld [smem:[#allocation32_spill]]  ;;  %s6241_s21 = sadd.s32 4294967295, %s6102_s30   ;;  %s6102_s30 = sphi %s6223_s30, %s7882_s30   ;;  %s6098_s29 = sphi %s6221_s29, %s7881_s29   ;;  %s6094_s28 = sphi %s6219_s28, %s7880_s28   ;;  %s6090_s27 = sphi %s6217_s27, %s7879_s27  }
  0x1c   : > { %p4644_p0 = scmp.ge.s32.totalorder %s6102_s30, 1  ;;  %p64_p1 = scmp.eq.s32.totalorder %s6241_s21, 0 }
  0x1d   : > { %p462_p2 = scmp.lt.s32.totalorder %s6102_s30, 3  ;;  %s6104_s2 = smov [#allocation5]  }
  0x1e   : > { %s475_s23 = sshll.u32 %s6104_s2, 4  ;;  %s7857_s3 = sld [smem:[#allocation34_spill]]  ;;  %s476_s23 = int_to_ptr.vmem [resolvable:$true] %s475_s23 }
  0x1f   : > { %p6246_p3 = pnand %p4644_p0, %p462_p2  ;;  %s7859_s6 = sld [smem:[#allocation36_spill]] }
  0x20   : > { %s6105_s17 = smov [#allocation8]   ;;  %s7837_s16 = smov 128  }
  0x21   : > { %s473_s20 = sshll.u32 %s7855_s1, 4  ;;  %p5536_p4 = pneg %p6246_p3  ;;  %s474_s20 = int_to_ptr.hbm [resolvable:$true] %s473_s20 }
  0x22   : > { %s501_s18 = sshll.u32 %s6105_s17, 4  ;;  %s7839_s14 = smov 8   ;;  %s502_s18 = int_to_ptr.vmem [resolvable:$true] %s501_s18 }
  0x23   : > { %p6258_p6 = pnand %p5536_p4, %p64_p1  ;;  %s6108_s24 = smov [#allocation11]  }
  0x24   : > { %s499_s26 = sshll.u32 %s7857_s3, 4  ;;  %s533_s25 = sshll.u32 %s6108_s24, 4  ;;  %s500_s26 = int_to_ptr.hbm [resolvable:$true] %s499_s26  ;;  %s534_s25 = int_to_ptr.vmem [resolvable:$true] %s533_s25 }
  0x25   : > { %s531_s2 = sshll.u32 %s7859_s6, 4  ;;  %s7860_s9 = sld [smem:[#allocation38_spill]]  ;;  %s532_s2 = int_to_ptr.hbm [resolvable:$true] %s531_s2 }
  0x26   : > { %5539 = dma.hbm_to_vmem [thread:$0]  (!%p6258_p6), %s474_s20, 4096, %s476_s23, [#allocation6], %s7837_s16, %s7837_s16, %s7839_s14  }
  0x27   : > { %5545 = dma.hbm_to_vmem [thread:$0]  (!%p6258_p6), %s500_s26, 2048, %s502_s18, [#allocation9], %s7837_s16, %s7837_s16, %s7839_s14  }
  0x28   : > { %5551 = dma.hbm_to_vmem [thread:$0]  (!%p6258_p6), %s532_s2, 16, %s534_s25, [#allocation12]  }
  0x29   : > { %s6109_s20 = smov [#allocation14]   ;;  %s593_s12 = sshll.u32 %s7828_s13, 4  ;;  %s594_s12 = int_to_ptr.hbm [resolvable:$true] %s593_s12 }
  0x2a   : > { %s561_s23 = sshll.u32 %s6109_s20, 4  ;;  %s6110_s18 = smov 64   ;;  %s562_s23 = int_to_ptr.vmem [resolvable:$true] %s561_s23 }
  0x2b   : > { %s559_s1 = sshll.u32 %s7860_s9, 4  ;;  %s6111_s26 = smov 4   ;;  %s560_s1 = int_to_ptr.hbm [resolvable:$true] %s559_s1 }
  0x2c   : > { %5557 = dma.hbm_to_vmem [thread:$0]  (!%p6258_p6), %s560_s1, 2048, %s562_s23, [#allocation15], %s6110_s18, %s6110_s18, %s6111_s26  }
  0x2d   : > { %s7861_s17 = sld [smem:[#allocation33_spill]]  ;;  %s6112_s14 = smov [#allocation17]  }
  0x2e   : > { %s595_s2 = sshll.u32 %s6112_s14, 4  ;;  %s6113_s3 = smov [#allocation7]   ;;  %s596_s2 = int_to_ptr.vmem [resolvable:$true] %s595_s2 }
  0x2f   : > { %5563 = dma.hbm_to_vmem [thread:$0]  (!%p6258_p6), %s594_s12, 2048, %s596_s2, [#allocation18], %s6110_s18, %s6110_s18, %s6111_s26  }
  0x30   : > { %s490_s6 = sshll.u32 %s6113_s3, 4  ;;  %s7862_s5 = sld [smem:[#allocation35_spill]]  ;;  %s491_s6 = int_to_ptr.vmem [resolvable:$true] %s490_s6 }
  0x31   : > { %s7863_s7 = sld [smem:[#allocation37_spill]]  ;;  %s6114_s14 = smov [#allocation10]  }
  0x32   : > { %s518_s19 = sshll.u32 %s6114_s14, 4  ;;  %s6115_s12 = smov [#allocation13]   ;;  %s519_s19 = int_to_ptr.vmem [resolvable:$true] %s518_s19 }
  0x33   : > { %s488_s16 = sshll.u32 %s7861_s17, 4  ;;  %s544_s17 = sshll.u32 %s6115_s12, 4  ;;  %s489_s16 = int_to_ptr.hbm [resolvable:$true] %s488_s16  ;;  %s545_s17 = int_to_ptr.vmem [resolvable:$true] %s544_s17 }
  0x34   : > { %5542 = dma.hbm_to_vmem [thread:$0]  (!%p6258_p6), %s489_s16, 32, %s491_s6, [#allocation6]  }
  0x35   : > { %s7864_s11 = sld [smem:[#allocation39_spill]]  ;;  %s7865_s6 = smov 8  }
  0x36   : > { %s516_s9 = sshll.u32 %s7862_s5, 4  ;;  %s7866_s25 = smov 128   ;;  %s517_s9 = int_to_ptr.hbm [resolvable:$true] %s516_s9 }
  0x37   : > { %s542_s24 = sshll.u32 %s7863_s7, 4  ;;  %s6117_s23 = smov [#allocation19]   ;;  %s543_s24 = int_to_ptr.hbm [resolvable:$true] %s542_s24 }
  0x38   : > { %5548 = dma.hbm_to_vmem [thread:$0]  (!%p6258_p6), %s517_s9, 2048, %s519_s19, [#allocation9], %s6110_s18, %s6110_s18, %s6111_s26  }
  0x39   : > { %5554 = dma.hbm_to_vmem [thread:$0]  (!%p6258_p6), %s543_s24, 2048, %s545_s17, [#allocation12], %s7866_s25, %s7866_s25, %s7865_s6  }
  0x3a   : > { %s610_s18 = sshll.u32 %s7830_s15, 4  ;;  %s6116_s26 = smov [#allocation16]   ;;  %s611_s18 = int_to_ptr.hbm [resolvable:$true] %s610_s18 }
  0x3b   : > { %s576_s16 = sshll.u32 %s7864_s11, 4  ;;  %s578_s1 = sshll.u32 %s6116_s26, 4  ;;  %s577_s16 = int_to_ptr.hbm [resolvable:$true] %s576_s16  ;;  %s579_s1 = int_to_ptr.vmem [resolvable:$true] %s578_s1 }
  0x3c   : > { %5560 = dma.hbm_to_vmem [thread:$0]  (!%p6258_p6), %s577_s16, 4096, %s579_s1, [#allocation15], %s7866_s25, %s7866_s25, %s7865_s6  }
  0x3d   : > { %s612_s24 = sshll.u32 %s6117_s23, 4  ;;  %s4643_s14 = sadd.s32 4294967294, %s6102_s30   ;;  %s613_s24 = int_to_ptr.vmem [resolvable:$true] %s612_s24 }
  0x3e   : > { %5566 = dma.hbm_to_vmem [thread:$0]  (!%p6258_p6), %s611_s18, 2048, %s613_s24, [#allocation18], %s7866_s25, %s7866_s25, %s7865_s6  }
  0x3f   : > { %s6323_s19 = sadd.s32 1, %s6102_s30   ;;  %s50_s17 = sadd.s32 1, %s6098_s29 }
  0x40   : > { %s47_s12 = ssub.s32 %s6102_s30, %s6323_s19  ;;  %p57_p8 = scmp.ne.s32.totalorder %s6098_s29, %s6094_s28 }
  0x41   : > { %p48_p7 = scmp.eq.s32.totalorder %s47_s12, 0  ;;  %p58_p9 = scmp.eq.s32.totalorder %s6102_s30, 0 }
  0x42   : > { %p63_p10 = scmp.ne.s32.totalorder %s6094_s28, %s6090_s27  ;;  %p423_p13 = scmp.eq.s32.totalorder %s6241_s21, 1 }
  0x43   : > { %s6334_s2 = scalar_select %p48_p7, %s6098_s29, %s50_s17  }
  0x44   : > { %p6336_p11 = por %p58_p9, %p57_p8  ;;  %p6342_p12 = por %p64_p1, %p63_p10 }
  0x45   : > { %p429_p0 = scmp.eq.s32.totalorder %s4643_s14, 1  ;;  %p5588_p2 = scmp.lt.s32.totalorder %s6102_s30, 2 }
  0x46   : > { %s629_s16 = sand.u32 1, %s6098_s29   ;;  %p6349_p4 = por %p423_p13, %p57_p8 }
  0x47   : > { %p6353_p6 = por %p429_p0, %p63_p10  ;;  %s4656_s20 = sshll.u32 %s629_s16, 9 }
  0x48   : > { %s5325_s9 = sshll.u32 %s6102_s30, 9  ;;  %s7871_s1 = sld [smem:[#allocation31_spill]] }
  0x49   : > { %s633_s24 = scalar_lea.vmem [#allocation2], %s4656_s20  ;;  %p6363_p7 = pnand %p5588_p2, %p6336_p11 }
  0x4a   : > { %s642_s12 = sshll.u32 %s633_s24, 4  ;;  %s630_s5 = scalar_lea.sflag [#allocation3], %s629_s16  ;;  %s643_s12 = int_to_ptr.vmem [resolvable:$true] %s642_s12 }
  0x4b   : > { %p5958_p9 = pneg %p6363_p7 }
  0x4e   : > { %s639_s23 = scalar_lea.hbm %s7871_s1, %s5325_s9  ;;  %s5961_s18 = scalar_lea.hbm %s7871_s1, 1024 }
  0x4f   : > { %s640_s17 = sshll.u32 %s639_s23, 4  ;;  %s641_s17 = int_to_ptr.hbm [resolvable:$true] %s640_s17 }
  0x50   : > { %s5954_s7 = sshra.s32 %s641_s17, 4  ;;  %s5955_s7 = int_to_ptr.hbm [resolvable:$true] %s5954_s7 }
  0x51   : > { %s5956_s11 = scalar_lea.hbm %s5955_s7, 512  ;;  %p5962_p11 = scmp.lt.s32.totalorder %s5955_s7, %s7871_s1 }
  0x52   : > { %p5957_p8 = scmp.ne.s32.totalorder %s5955_s7, %s5956_s11  ;;  %p5963_p0 = scmp.lt.s32.totalorder %s5961_s18, %s5956_s11 }
  0x54   : > { %p5959_p10 = pnand %p5958_p9, %p5957_p8  ;;  %p5964_p2 = por %p5963_p0, %p5962_p11 }
  0x56   : > { %p5960_p13 = pneg %p5959_p10 }
  0x58   : > { %p5965_p5 = pnand %p5964_p2, %p5960_p13 }
  0x5a   : > { %5968 = shalt.err (!%p5965_p5)
}
  0x5b   : > { %s6118_s16 = smov 256   ;;  %s6119_s23 = smov 16  }
  0x5c   : > { %5570 = dma.hbm_to_vmem [thread:$0]  (!%p6363_p7), %s641_s17, 8192, %s643_s12, %s630_s5, %s6118_s16, %s6118_s16, %s6119_s23  }
  0x5d   : > { %654 = sbr.rel (%p6246_p3) target bundleno = 1695 (0x69f), region = 88  ;;  %s6380_s24 = sand.u32 (!%p6246_p3), 1, %s6094_s28  }
  0x5e   : > { %s6383_s20 = sshll.u32 (!%p6246_p3), %s6380_s24, 9  ;;  %s657_s7 = scalar_lea.sflag (!%p6246_p3), [#allocation3], %s6380_s24 }
  0x5f   : > { %s6387_s11 = scalar_lea.vmem (!%p6246_p3), [#allocation2], %s6383_s20 }
  0x62   : > { %6057 = dma.done.wait (%p6342_p12), %s657_s7, 8192  }
  0x63   : > { %6059 = vsyncadd (%p6342_p12), %s657_s7, 4294959104 }
  0x64   : > { %6061 = dma.done.wait (%p64_p1), [#allocation6], 4128  }
  0x65   : > { %6063 = vsyncadd (%p64_p1), [#allocation6], 4294963168 }
  0x66   : > { %6065 = dma.done.wait (%p64_p1), [#allocation9], 4096  }
  0x67   : > { %6067 = vsyncadd (%p64_p1), [#allocation9], 4294963200 }
  0x68   : > { %6069 = dma.done.wait (%p64_p1), [#allocation12], 2064  }
  0x69   : > { %6071 = vsyncadd (%p64_p1), [#allocation12], 4294965232 }
  0x6a   : > { %6073 = dma.done.wait (%p64_p1), [#allocation15], 6144  }
  0x6b   : > { %6075 = vsyncadd (%p64_p1), [#allocation15], 4294961152 }
  0x6c   : > { %6077 = dma.done.wait (%p64_p1), [#allocation18], 4096  }
  0x6d   : > { %6079 = vsyncadd (%p64_p1), [#allocation18], 4294963200  ;;  %v4732_v0 = vld [vmem:[#allocation5 + $0x70] sm:$0xf]  ;;  %v5341_v1 = vld [vmem:[#allocation5 + $0x74] sm:$0xf0] }
  0x6e   : > { %v4796_v2 = vld [vmem:[#allocation5 + $0xf0] sm:$0xf]  ;;  %v4733_v3 = vor.u32 %v5341_v1, %v4732_v0  ;;  %v5357_v4 = vld [vmem:[#allocation5 + $0xf4] sm:$0xf0]  ;;  %v5340_v5 = vld [vmem:[#allocation5 + $0x74] sm:$0xf] }
  0x6f   : > { %v4734_v6 = vld [vmem:[#allocation5 + $0x78] sm:$0xf0]  ;;  %v4797_v7 = vor.u32 %v5357_v4, %v4796_v2  ;;  %v5356_v9 = vld [vmem:[#allocation5 + $0xf4] sm:$0xf]  ;;  %v4724_v11 = vld [vmem:[#allocation5 + $0x60] sm:$0xf] }
  0x70   : > { %v4737_v8 = vor.u32 %v5340_v5, %v4734_v6  ;;  %v4798_v10 = vld [vmem:[#allocation5 + $0xf8] sm:$0xf0]  ;;  %1066 = vmatpush.bf16.msra.mxu0 %v4733_v3  ;;  %v5339_v13 = vld [vmem:[#allocation5 + $0x64] sm:$0xf0]  ;;  %v4788_v14 = vld [vmem:[#allocation5 + $0xe0] sm:$0xf] }
  0x71   : > { %v4801_v12 = vor.u32 %v5356_v9, %v4798_v10  ;;  %v5355_v15 = vld [vmem:[#allocation5 + $0xe4] sm:$0xf0]  ;;  %1155 = vmatpush.bf16.msra.mxu1 %v4797_v7  ;;  %v4725_v16 = vor.u32 %v5339_v13, %v4724_v11  ;;  %v5338_v18 = vld [vmem:[#allocation5 + $0x64] sm:$0xf]  ;;  %v4726_v19 = vld [vmem:[#allocation5 + $0x68] sm:$0xf0] }
  0x72   : > { %1244 = vmatpush.bf16.msra.mxu2 %v4737_v8  ;;  %v4789_v17 = vor.u32 %v5355_v15, %v4788_v14  ;;  %v5354_v20 = vld [vmem:[#allocation5 + $0xe4] sm:$0xf]  ;;  %v4729_v21 = vor.u32 %v5338_v18, %v4726_v19  ;;  %v4790_v22 = vld [vmem:[#allocation5 + $0xe8] sm:$0xf0]  ;;  %v4716_v23 = vld [vmem:[#allocation5 + $0x50] sm:$0xf] }
  0x73   : > { %1333 = vmatpush.bf16.msra.mxu3 %v4801_v12  ;;  %v5337_v24 = vld [vmem:[#allocation5 + $0x54] sm:$0xf0]  ;;  %v4793_v25 = vor.u32 %v5354_v20, %v4790_v22  ;;  %v4780_v26 = vld [vmem:[#allocation5 + $0xd0] sm:$0xf]  ;;  %v5336_v28 = vld [vmem:[#allocation5 + $0x54] sm:$0xf] }
  0x74   : > { %v5353_v27 = vld [vmem:[#allocation5 + $0xd4] sm:$0xf0]  ;;  %1067 = vmatpush.bf16.msra.mxu0 %v4725_v16  ;;  %v4717_v29 = vor.u32 %v5337_v24, %v4716_v23  ;;  %v4718_v30 = vld [vmem:[#allocation5 + $0x58] sm:$0xf0]  ;;  %v5352_v31 = vld [vmem:[#allocation5 + $0xd4] sm:$0xf] }
  0x75   : > { %v4782_v32 = vld [vmem:[#allocation5 + $0xd8] sm:$0xf0]  ;;  %1156 = vmatpush.bf16.msra.mxu1 %v4789_v17  ;;  %v4781_v33 = vor.u32 %v5353_v27, %v4780_v26  ;;  %v4721_v34 = vor.u32 %v5336_v28, %v4718_v30  ;;  %v4708_v35 = vld [vmem:[#allocation5 + $0x40] sm:$0xf]  ;;  %v5335_v36 = vld [vmem:[#allocation5 + $0x44] sm:$0xf0] }
  0x76   : > { %1245 = vmatpush.bf16.msra.mxu2 %v4729_v21  ;;  %v4772_v37 = vld [vmem:[#allocation5 + $0xc0] sm:$0xf]  ;;  %v4785_v38 = vor.u32 %v5352_v31, %v4782_v32  ;;  %v5351_v39 = vld [vmem:[#allocation5 + $0xc4] sm:$0xf0]  ;;  %v5334_v40 = vld [vmem:[#allocation5 + $0x44] sm:$0xf]  ;;  %v4709_v44 = vor.u32 %v5335_v36, %v4708_v35 }
  0x77   : > { %1334 = vmatpush.bf16.msra.mxu3 %v4793_v25  ;;  %v4710_v41 = vld [vmem:[#allocation5 + $0x48] sm:$0xf0]  ;;  %v5350_v42 = vld [vmem:[#allocation5 + $0xc4] sm:$0xf]  ;;  %v4773_v45 = vor.u32 %v5351_v39, %v4772_v37  ;;  %v4700_v47 = vld [vmem:[#allocation5 + $0x30] sm:$0xf] }
  0x78   : > { %v4774_v43 = vld [vmem:[#allocation5 + $0xc8] sm:$0xf0]  ;;  %1068 = vmatpush.bf16.msra.mxu0 %v4717_v29  ;;  %v4713_v46 = vor.u32 %v5334_v40, %v4710_v41  ;;  %v5333_v48 = vld [vmem:[#allocation5 + $0x34] sm:$0xf0]  ;;  %v4764_v49 = vld [vmem:[#allocation5 + $0xb0] sm:$0xf] }
  0x79   : > { %1157 = vmatpush.bf16.msra.mxu1 %v4781_v33  ;;  %v4777_v50 = vor.u32 %v5350_v42, %v4774_v43  ;;  %v5349_v51 = vld [vmem:[#allocation5 + $0xb4] sm:$0xf0]  ;;  %v5332_v52 = vld [vmem:[#allocation5 + $0x34] sm:$0xf]  ;;  %v4702_v53 = vld [vmem:[#allocation5 + $0x38] sm:$0xf0]  ;;  %v4701_v56 = vor.u32 %v5333_v48, %v4700_v47 }
  0x7a   : > { %1246 = vmatpush.bf16.msra.mxu2 %v4721_v34  ;;  %v5348_v54 = vld [vmem:[#allocation5 + $0xb4] sm:$0xf]  ;;  %v4766_v55 = vld [vmem:[#allocation5 + $0xb8] sm:$0xf0]  ;;  %v4765_v57 = vor.u32 %v5349_v51, %v4764_v49  ;;  %v4705_v58 = vor.u32 %v5332_v52, %v4702_v53  ;;  %v4692_v59 = vld [vmem:[#allocation5 + $0x20] sm:$0xf] }
  0x7b   : > { %1335 = vmatpush.bf16.msra.mxu3 %v4785_v38  ;;  %v5331_v60 = vld [vmem:[#allocation5 + $0x24] sm:$0xf0]  ;;  %v4756_v61 = vld [vmem:[#allocation5 + $0xa0] sm:$0xf]  ;;  %v4769_v62 = vor.u32 %v5348_v54, %v4766_v55  ;;  %v5330_v0 = vld [vmem:[#allocation5 + $0x24] sm:$0xf] }
  0x7c   : > { %1069 = vmatpush.bf16.msra.mxu0 %v4709_v44  ;;  %v5347_v63 = vld [vmem:[#allocation5 + $0xa4] sm:$0xf0]  ;;  %v4694_v1 = vld [vmem:[#allocation5 + $0x28] sm:$0xf0]  ;;  %v5346_v2 = vld [vmem:[#allocation5 + $0xa4] sm:$0xf]  ;;  %v4693_v4 = vor.u32 %v5331_v60, %v4692_v59 }
  0x7d   : > { %1158 = vmatpush.bf16.msra.mxu1 %v4773_v45  ;;  %v4758_v3 = vld [vmem:[#allocation5 + $0xa8] sm:$0xf0]  ;;  %v4684_v5 = vld [vmem:[#allocation5 + $0x10] sm:$0xf]  ;;  %v4757_v6 = vor.u32 %v5347_v63, %v4756_v61  ;;  %v4697_v7 = vor.u32 %v5330_v0, %v4694_v1  ;;  %v5329_v8 = vld [vmem:[#allocation5 + $0x14] sm:$0xf0] }
  0x7e   : > { %1247 = vmatpush.bf16.msra.mxu2 %v4713_v46  ;;  %v4748_v9 = vld [vmem:[#allocation5 + $0x90] sm:$0xf]  ;;  %v5345_v10 = vld [vmem:[#allocation5 + $0x94] sm:$0xf0]  ;;  %v4761_v11 = vor.u32 %v5346_v2, %v4758_v3  ;;  %v5328_v12 = vld [vmem:[#allocation5 + $0x14] sm:$0xf]  ;;  %v4685_v18 = vor.u32 %v5329_v8, %v4684_v5 }
  0x7f   : > { %1336 = vmatpush.bf16.msra.mxu3 %v4777_v50  ;;  %v4686_v13 = vld [vmem:[#allocation5 + $0x18] sm:$0xf0]  ;;  %v5344_v14 = vld [vmem:[#allocation5 + $0x94] sm:$0xf]  ;;  %v4676_v16 = vld [vmem:[#allocation5] sm:$0xf]  ;;  %v4749_v22 = vor.u32 %v5345_v10, %v4748_v9 }
  0x80   : > { %1070 = vmatpush.bf16.msra.mxu0 %v4701_v56  ;;  %v4750_v15 = vld [vmem:[#allocation5 + $0x98] sm:$0xf0]  ;;  %v5327_v17 = vld [vmem:[#allocation5 + $0x4] sm:$0xf0]  ;;  %v4740_v19 = vld [vmem:[#allocation5 + $0x80] sm:$0xf]  ;;  %v4689_v23 = vor.u32 %v5328_v12, %v4686_v13 }
  0x81   : > { %1159 = vmatpush.bf16.msra.mxu1 %v4765_v57  ;;  %v5343_v20 = vld [vmem:[#allocation5 + $0x84] sm:$0xf0]  ;;  %v5326_v21 = vld [vmem:[#allocation5 + $0x4] sm:$0xf]  ;;  %v4678_v24 = vld [vmem:[#allocation5 + $0x8] sm:$0xf0]  ;;  %v4753_v27 = vor.u32 %v5344_v14, %v4750_v15  ;;  %v4677_v31 = vor.u32 %v5327_v17, %v4676_v16 }
  0x82   : > { %1248 = vmatpush.bf16.msra.mxu2 %v4705_v58  ;;  %v5342_v25 = vld [vmem:[#allocation5 + $0x84] sm:$0xf]  ;;  %v4742_v26 = vld [vmem:[#allocation5 + $0x88] sm:$0xf0]  ;;  %v4860_v29 = vld [vmem:[#allocation8 + $0x70] sm:$0xf]  ;;  %v4741_v35 = vor.u32 %v5343_v20, %v4740_v19  ;;  %v4681_v36 = vor.u32 %v5326_v21, %v4678_v24 }
  0x83   : > { %1337 = vmatpush.bf16.msra.mxu3 %v4769_v62  ;;  %v772_v28 = vld [vmem:[%s6387_s11] sm:$0xff]  ;;  %v5373_v30 = vld [vmem:[#allocation8 + $0x74] sm:$0xf0]  ;;  %v774_v32 = vld [vmem:[%s6387_s11 + $0x10] sm:$0xff]  ;;  %v4745_v39 = vor.u32 %v5342_v25, %v4742_v26  ;;  %s7075_s9 = scalar_lea.vmem [#allocation21], %s6383_s20  ;;  %s7873_s0 = sld [smem:[#allocation40_spill]] }
  0x84   : > { %1071 = vmatpush.bf16.msra.mxu0 %v4693_v4  ;;  %v5372_v33 = vld [vmem:[#allocation8 + $0x74] sm:$0xf]  ;;  %v4862_v34 = vld [vmem:[#allocation8 + $0x78] sm:$0xf0]  ;;  %v773_v37 = vld [vmem:[%s6387_s11 + $0x8] sm:$0xff]  ;;  %v4861_v40 = vor.u32 %v5373_v30, %v4860_v29  ;;  %v836_v41 = vpack.c.bf16 %v774_v32, %v772_v28  ;;  %s7874_s7 = sld [smem:[#allocation41_spill]] }
  0x85   : > { %1160 = vmatpush.bf16.msra.mxu1 %v4757_v6  ;;  %v775_v38 = vld [vmem:[%s6387_s11 + $0x18] sm:$0xff]  ;;  %v4865_v42 = vor.u32 %v5372_v33, %v4862_v34  ;;  %v4852_v44 = vld [vmem:[#allocation8 + $0x60] sm:$0xf]  ;;  %v5371_v45 = vld [vmem:[#allocation8 + $0x64] sm:$0xf0]  ;;  %s7875_s22 = sld [smem:[#allocation42_spill]] }
  0x86   : > { %1249 = vmatpush.bf16.msra.mxu2 %v4697_v7  ;;  %v837_v43 = vpack.c.bf16 %v775_v38, %v773_v37  ;;  %v5370_v46 = vld [vmem:[#allocation8 + $0x64] sm:$0xf]  ;;  %v4853_v47 = vor.u32 %v5371_v45, %v4852_v44  ;;  %v4854_v48 = vld [vmem:[#allocation8 + $0x68] sm:$0xf0]  ;;  %v779_v53 = vld [vmem:[%s6387_s11 + $0x38] sm:$0xff]  ;;  %s7615_s3 = scalar_lea.vmem [#allocation20], %s6383_s20 }
  0x87   : > { %1338 = vmatpush.bf16.msra.mxu3 %v4761_v11  ;;  %v4857_v49 = vor.u32 %v5370_v46, %v4854_v48  ;;  %v776_v50 = vld [vmem:[%s6387_s11 + $0x20] sm:$0xff]  ;;  %v778_v51 = vld [vmem:[%s6387_s11 + $0x30] sm:$0xff]  ;;  %v777_v52 = vld [vmem:[%s6387_s11 + $0x28] sm:$0xff]  ;;  %s5487_s20 = sshll.u32 %s6241_s21, 9  ;;  %s7876_s14 = sld [smem:[#allocation44_spill]] }
  0x88   : > { %1072 = vmatpush.bf16.msra.mxu0 %v4685_v18  ;;  %v838_v54 = vpack.c.bf16 %v778_v51, %v776_v50  ;;  %v839_v55 = vpack.c.bf16 %v779_v53, %v777_v52  ;;  %v780_v56 = vld [vmem:[%s6387_s11 + $0x40] sm:$0xff]  ;;  %v782_v57 = vld [vmem:[%s6387_s11 + $0x50] sm:$0xff]  ;;  %v781_v58 = vld [vmem:[%s6387_s11 + $0x48] sm:$0xff]  ;;  %s4439_s26 = sshll.u32 %s7075_s9, 4  ;;  %s4408_s16 = scalar_lea.sflag [#allocation22], %s6380_s24  ;;  %s4440_s26 = int_to_ptr.vmem [resolvable:$true] %s4439_s26 }
  0x89   : > { %1161 = vmatpush.bf16.msra.mxu1 %v4749_v22  ;;  %v783_v59 = vld [vmem:[%s6387_s11 + $0x58] sm:$0xff]  ;;  %v840_v60 = vpack.c.bf16 %v782_v57, %v780_v56  ;;  %v4844_v62 = vld [vmem:[#allocation8 + $0x50] sm:$0xf]  ;;  %v784_v4 = vld [vmem:[%s6387_s11 + $0x60] sm:$0xff] }
  0x8a   : > { %1250 = vmatpush.bf16.msra.mxu2 %v4689_v23  ;;  %v841_v61 = vpack.c.bf16 %v783_v59, %v781_v58  ;;  %v5369_v63 = vld [vmem:[#allocation8 + $0x54] sm:$0xf0]  ;;  %v5368_v0 = vld [vmem:[#allocation8 + $0x54] sm:$0xf]  ;;  %v4846_v2 = vld [vmem:[#allocation8 + $0x58] sm:$0xf0] }
  0x8b   : > { %1339 = vmatpush.bf16.msra.mxu3 %v4753_v27  ;;  %v4845_v1 = vor.u32 %v5369_v63, %v4844_v62  ;;  %v4849_v3 = vor.u32 %v5368_v0, %v4846_v2  ;;  %v786_v5 = vld [vmem:[%s6387_s11 + $0x70] sm:$0xff]  ;;  %v785_v6 = vld [vmem:[%s6387_s11 + $0x68] sm:$0xff]  ;;  %v787_v7 = vld [vmem:[%s6387_s11 + $0x78] sm:$0xff] }
  0x8c   : > { %1073 = vmatpush.bf16.msra.mxu0 %v4677_v31  ;;  %v842_v8 = vpack.c.bf16 %v786_v5, %v784_v4  ;;  %v843_v9 = vpack.c.bf16 %v787_v7, %v785_v6  ;;  %v788_v10 = vld [vmem:[%s6387_s11 + $0x80] sm:$0xff]  ;;  %v790_v11 = vld [vmem:[%s6387_s11 + $0x90] sm:$0xff]  ;;  %v789_v12 = vld [vmem:[%s6387_s11 + $0x88] sm:$0xff] }
  0x8d   : > { %1162 = vmatpush.bf16.msra.mxu1 %v4741_v35  ;;  %v791_v13 = vld [vmem:[%s6387_s11 + $0x98] sm:$0xff]  ;;  %v844_v14 = vpack.c.bf16 %v790_v11, %v788_v10  ;;  %v4836_v16 = vld [vmem:[#allocation8 + $0x40] sm:$0xf]  ;;  %v5367_v17 = vld [vmem:[#allocation8 + $0x44] sm:$0xf0]  ;;  %s4438_s18 = scalar_lea.hbm %s7876_s14, %s5487_s20 }
  0x8e   : > { %1251 = vmatpush.bf16.msra.mxu2 %v4681_v36  ;;  %v845_v15 = vpack.c.bf16 %v791_v13, %v789_v12  ;;  %v5366_v18 = vld [vmem:[#allocation8 + $0x44] sm:$0xf]  ;;  %v4837_v19 = vor.u32 %v5367_v17, %v4836_v16  ;;  %v4838_v20 = vld [vmem:[#allocation8 + $0x48] sm:$0xf0]  ;;  %v4924_v21 = vld [vmem:[#allocation13 + $0x70] sm:$0xf] }
  0x8f   : > { %1340 = vmatpush.bf16.msra.mxu3 %v4745_v39  ;;  %1074 = vmatmul.bf16.vlgmr.msra.gmra.mxu0 %v836_v41  ;;  %v5389_v22 = vld [vmem:[#allocation13 + $0x74] sm:$0xf0]  ;;  %v4841_v23 = vor.u32 %v5366_v18, %v4838_v20  ;;  %v5388_v25 = vld [vmem:[#allocation13 + $0x74] sm:$0xf]  ;;  %v4926_v26 = vld [vmem:[#allocation13 + $0x78] sm:$0xf0] }
  0x90   : > { %1604 = vmatpush.bf16.msrb.mxu0 %v4861_v40  ;;  %1163 = vmatmul.bf16.vlgmr.msra.gmra.mxu1 %v837_v43  ;;  %v4925_v24 = vor.u32 %v5389_v22, %v4924_v21  ;;  %v4929_v27 = vor.u32 %v5388_v25, %v4926_v26  ;;  %v792_v28 = vld [vmem:[%s6387_s11 + $0xa0] sm:$0xff]  ;;  %v794_v29 = vld [vmem:[%s6387_s11 + $0xb0] sm:$0xff]  ;;  %v793_v30 = vld [vmem:[%s6387_s11 + $0xa8] sm:$0xff] }
  0x91   : > { %1693 = vmatpush.bf16.msrb.mxu1 %v4865_v42  ;;  %1252 = vmatmul.bf16.vlgmr.msra.gmra.mxu2 %v836_v41  ;;  %v795_v31 = vld [vmem:[%s6387_s11 + $0xb8] sm:$0xff]  ;;  %v846_v32 = vpack.c.bf16 %v794_v29, %v792_v28  ;;  %v796_v34 = vld [vmem:[%s6387_s11 + $0xc0] sm:$0xff]  ;;  %v798_v35 = vld [vmem:[%s6387_s11 + $0xd0] sm:$0xff] }
  0x92   : > { %1341 = vmatmul.bf16.vlgmr.msra.gmra.mxu3 %v837_v43  ;;  %1964 = vmatpush.bf16.msrb.mxu2 %v4925_v24  ;;  %v847_v33 = vpack.c.bf16 %v795_v31, %v793_v30  ;;  %v797_v36 = vld [vmem:[%s6387_s11 + $0xc8] sm:$0xff]  ;;  %v799_v37 = vld [vmem:[%s6387_s11 + $0xd8] sm:$0xff]  ;;  %v848_v38 = vpack.c.bf16 %v798_v35, %v796_v34  ;;  %v4828_v40 = vld [vmem:[#allocation8 + $0x30] sm:$0xf] }
  0x93   : > { %2053 = vmatpush.bf16.msrb.mxu3 %v4929_v27  ;;  %v849_v39 = vpack.c.bf16 %v799_v37, %v797_v36  ;;  %v5365_v41 = vld [vmem:[#allocation8 + $0x34] sm:$0xf0]  ;;  %v5364_v42 = vld [vmem:[#allocation8 + $0x34] sm:$0xf]  ;;  %v4830_v44 = vld [vmem:[#allocation8 + $0x38] sm:$0xf0] }
  0x94   : > { %1605 = vmatpush.bf16.msrb.mxu0 %v4853_v47  ;;  %v4829_v43 = vor.u32 %v5365_v41, %v4828_v40  ;;  %v4833_v45 = vor.u32 %v5364_v42, %v4830_v44  ;;  %v800_v46 = vld [vmem:[%s6387_s11 + $0xe0] sm:$0xff]  ;;  %v802_v47 = vld [vmem:[%s6387_s11 + $0xf0] sm:$0xff]  ;;  %v801_v48 = vld [vmem:[%s6387_s11 + $0xe8] sm:$0xff] }
  0x95   : > { %1694 = vmatpush.bf16.msrb.mxu1 %v4857_v49  ;;  %v803_v49 = vld [vmem:[%s6387_s11 + $0xf8] sm:$0xff]  ;;  %v850_v50 = vpack.c.bf16 %v802_v47, %v800_v46  ;;  %v4916_v51 = vld [vmem:[#allocation13 + $0x60] sm:$0xf]  ;;  %v5387_v52 = vld [vmem:[#allocation13 + $0x64] sm:$0xf0] }
  0x96   : > { %v5386_v53 = vld [vmem:[#allocation13 + $0x64] sm:$0xf]  ;;  %v4918_v56 = vld [vmem:[#allocation13 + $0x68] sm:$0xf0]  ;;  %v900_v58 = vld [vmem:[#allocation7] sm:$0x3] }
  0x97   : > { %v4921_v57 = vor.u32 %v5386_v53, %v4918_v56  ;;  %v804_v59 = vld [vmem:[%s6387_s11 + $0x100] sm:$0xff]  ;;  %v805_v62 = vld [vmem:[%s6387_s11 + $0x108] sm:$0xff]  ;;  %v807_v63 = vld [vmem:[%s6387_s11 + $0x118] sm:$0xff]  ;;  %v6452_v6 = vperm.slane %v900_v58, 1 }
  0x98   : > { %1606 = vmatpush.bf16.msrb.mxu0 %v4845_v1  ;;  %v853_v2 = vpack.c.bf16 %v807_v63, %v805_v62  ;;  %v4820_v7 = vld [vmem:[#allocation8 + $0x20] sm:$0xf]  ;;  %v5362_v10 = vld [vmem:[#allocation8 + $0x24] sm:$0xf]  ;;  %v4822_v11 = vld [vmem:[#allocation8 + $0x28] sm:$0xf0] }
  0x99   : > { %1695 = vmatpush.bf16.msrb.mxu1 %v4849_v3  ;;  %2054 = vmatpush.bf16.msrb.mxu3 %v4921_v57  ;;  %v4825_v13 = vor.u32 %v5362_v10, %v4822_v11  ;;  %v808_v21 = vld [vmem:[%s6387_s11 + $0x120] sm:$0xff]  ;;  %v810_v22 = vld [vmem:[%s6387_s11 + $0x130] sm:$0xff]  ;;  %v811_v24 = vld [vmem:[%s6387_s11 + $0x138] sm:$0xff] }
  0x9a   : > { %v4908_v27 = vld [vmem:[#allocation13 + $0x50] sm:$0xf]  ;;  %v5385_v28 = vld [vmem:[#allocation13 + $0x54] sm:$0xf0]  ;;  %v5384_v30 = vld [vmem:[#allocation13 + $0x54] sm:$0xf]  ;;  %v854_v34 = vpack.c.bf16 %v810_v22, %v808_v21 }
  0x9b   : > { %v4909_v29 = vor.u32 %v5385_v28, %v4908_v27  ;;  %v4910_v31 = vld [vmem:[#allocation13 + $0x58] sm:$0xf0]  ;;  %v814_v56 = vld [vmem:[%s6387_s11 + $0x150] sm:$0xff]  ;;  %v5361_v11 = vld [vmem:[#allocation8 + $0x14] sm:$0xf0] }
  0x9c   : > { %1607 = vmatpush.bf16.msrb.mxu0 %v4837_v19  ;;  %v4913_v35 = vor.u32 %v5384_v30, %v4910_v31  ;;  %v4812_v10 = vld [vmem:[#allocation8 + $0x10] sm:$0xf]  ;;  %v819_v27 = vld [vmem:[%s6387_s11 + $0x178] sm:$0xff]  ;;  %v4900_v30 = vld [vmem:[#allocation13 + $0x40] sm:$0xf] }
  0x9d   : > { %1696 = vmatpush.bf16.msrb.mxu1 %v4841_v23  ;;  %v809_v23 = vld [vmem:[%s6387_s11 + $0x128] sm:$0xff] }
  0x9e   : > { %2055 = vmatpush.bf16.msrb.mxu3 %v4913_v35  ;;  %v5383_v31 = vld [vmem:[#allocation13 + $0x44] sm:$0xf0]  ;;  %v4902_v35 = vld [vmem:[#allocation13 + $0x48] sm:$0xf0] }
  0x9f   : > { %1079 = vmatmul.bf16.gmra.mxu0 %v838_v54 }
  0xa0   : > { %1168 = vmatmul.bf16.gmra.mxu1 %v839_v55  ;;  %1608 = vmatpush.bf16.msrb.mxu0 %v4829_v43 }
  0xa1   : > { %1257 = vmatmul.bf16.gmra.mxu2 %v838_v54  ;;  %1697 = vmatpush.bf16.msrb.mxu1 %v4833_v45  ;;  %v851_v54 = vpack.c.bf16 %v803_v49, %v801_v48 }
  0xa2   : > { %1346 = vmatmul.bf16.gmra.mxu3 %v839_v55  ;;  %v4917_v55 = vor.u32 %v5387_v52, %v4916_v51 }
  0xa4   : > { %1965 = vmatpush.bf16.msrb.mxu2 %v4917_v55  ;;  %v812_v55 = vld [vmem:[%s6387_s11 + $0x140] sm:$0xff] }
  0xa5   : > { %1698 = vmatpush.bf16.msrb.mxu1 %v4825_v13  ;;  %v856_v63 = vpack.c.bf16 %v814_v56, %v812_v55  ;;  %v5360_v13 = vld [vmem:[#allocation8 + $0x14] sm:$0xf] }
  0xa8   : > { %1966 = vmatpush.bf16.msrb.mxu2 %v4909_v29 }
  0xaf   : > { %1084 = vmatmul.bf16.gmra.mxu0 %v840_v60 }
  0xb0   : > { %1173 = vmatmul.bf16.gmra.mxu1 %v841_v61 }
  0xb1   : > { %1262 = vmatmul.bf16.gmra.mxu2 %v840_v60  ;;  %v806_v60 = vld [vmem:[%s6387_s11 + $0x110] sm:$0xff] }
  0xb2   : > { %1351 = vmatmul.bf16.gmra.mxu3 %v841_v61  ;;  %v6447_v61 = vperm.slane %v900_v58, 0  ;;  %v852_v0 = vpack.c.bf16 %v806_v60, %v804_v59  ;;  %v813_v59 = vld [vmem:[%s6387_s11 + $0x148] sm:$0xff]  ;;  %v815_v60 = vld [vmem:[%s6387_s11 + $0x158] sm:$0xff] }
  0xbf   : > { %1089 = vmatmul.bf16.gmra.mxu0 %v842_v8 }
  0xc0   : > { %1178 = vmatmul.bf16.gmra.mxu1 %v843_v9 }
  0xc1   : > { %1267 = vmatmul.bf16.gmra.mxu2 %v842_v8  ;;  %v5363_v8 = vld [vmem:[#allocation8 + $0x24] sm:$0xf0] }
  0xc2   : > { %1356 = vmatmul.bf16.gmra.mxu3 %v843_v9  ;;  %v4821_v9 = vor.u32 %v5363_v8, %v4820_v7 }
  0xc4   : > { %1609 = vmatpush.bf16.msrb.mxu0 %v4821_v9 }
  0xcf   : > { %1094 = vmatmul.bf16.gmra.mxu0 %v844_v14 }
  0xd0   : > { %1183 = vmatmul.bf16.gmra.mxu1 %v845_v15 }
  0xd1   : > { %1272 = vmatmul.bf16.gmra.mxu2 %v844_v14 }
  0xd2   : > { %1361 = vmatmul.bf16.gmra.mxu3 %v845_v15 }
  0xdf   : > { %1099 = vmatmul.bf16.gmra.mxu0 %v846_v32 }
  0xe0   : > { %1188 = vmatmul.bf16.gmra.mxu1 %v847_v33 }
  0xe1   : > { %1277 = vmatmul.bf16.gmra.mxu2 %v846_v32 }
  0xe2   : > { %1366 = vmatmul.bf16.gmra.mxu3 %v847_v33 }
  0xef   : > { %1104 = vmatmul.bf16.gmra.mxu0 %v848_v38 }
  0xf0   : > { %1193 = vmatmul.bf16.gmra.mxu1 %v849_v39 }
  0xf1   : > { %1282 = vmatmul.bf16.gmra.mxu2 %v848_v38 }
  0xf2   : > { %1371 = vmatmul.bf16.gmra.mxu3 %v849_v39  ;;  %v855_v39 = vpack.c.bf16 %v811_v24, %v809_v23  ;;  %v816_v24 = vld [vmem:[%s6387_s11 + $0x160] sm:$0xff] }
  0xff   : > { %1109 = vmatmul.bf16.gmra.mxu0 %v850_v50 }
 0x100   : > { %1198 = vmatmul.bf16.gmra.mxu1 %v851_v54 }
 0x101   : > { %1287 = vmatmul.bf16.gmra.mxu2 %v850_v50 }
 0x102   : > { %1376 = vmatmul.bf16.gmra.mxu3 %v851_v54 }
 0x10c   : > { %v1075_v1 = vpop.f32.mrf.mxu0 }
 0x10d   : > { %v1076_v3 = vadd.f32 %v1075_v1, %v6447_v61  ;;  %v1164_v4 = vpop.f32.mrf.mxu1 }
 0x10f   : > { %v1165_v5 = vadd.f32 %v1164_v4, %v1076_v3  ;;  %1114 = vmatmul.bf16.gmra.mxu0 %v852_v0  ;;  %v857_v4 = vpack.c.bf16 %v815_v60, %v813_v59  ;;  %v822_v59 = vld [vmem:[%s6387_s11 + $0x190] sm:$0xff] }
 0x110   : > { %1203 = vmatmul.bf16.gmra.mxu1 %v853_v2 }
 0x111   : > { %1292 = vmatmul.bf16.gmra.mxu2 %v852_v0  ;;  %v1422_v25 = vmax.f32 %v1165_v5, 0.0 }
 0x112   : > { %1381 = vmatmul.bf16.gmra.mxu3 %v853_v2 }
 0x114   : > { %v1253_v12 = vpop.f32.mrf.mxu2  ;;  %v1077_v16 = vpop.f32.mrf.mxu0 }
 0x115   : > { %v1254_v14 = vadd.f32 %v1253_v12, %v6452_v6  ;;  %v1342_v15 = vpop.f32.mrf.mxu3  ;;  %v1078_v17 = vadd.f32 %v1077_v16, %v6447_v61  ;;  %v1166_v18 = vpop.f32.mrf.mxu1  ;;  %v4813_v12 = vor.u32 %v5361_v11, %v4812_v10 }
 0x117   : > { %v1343_v19 = vadd.f32 %v1342_v15, %v1254_v14  ;;  %v1167_v20 = vadd.f32 %v1166_v18, %v1078_v17  ;;  %v4814_v14 = vld [vmem:[#allocation8 + $0x18] sm:$0xf0]  ;;  %1610 = vmatpush.bf16.msrb.mxu0 %v4813_v12 }
 0x118   : > { %v4817_v16 = vor.u32 %v5360_v13, %v4814_v14 }
 0x119   : > { %v1424_v26 = vmax.f32 %v1167_v20, 0.0  ;;  %v1423_v42 = vmax.f32 %v1343_v19, 0.0 }
 0x11a   : > { %1699 = vmatpush.bf16.msrb.mxu1 %v4817_v16  ;;  %v5359_v16 = vld [vmem:[#allocation8 + $0x4] sm:$0xf0] }
 0x11b   : > { %v6460_v32 = vpack.c.bf16 %v1424_v26, %v1422_v25  ;;  %v818_v25 = vld [vmem:[%s6387_s11 + $0x170] sm:$0xff]  ;;  %v817_v26 = vld [vmem:[%s6387_s11 + $0x168] sm:$0xff] }
 0x11c   : > { %v1255_v33 = vpop.f32.mrf.mxu2  ;;  %v1080_v38 = vpop.f32.mrf.mxu0 }
 0x11d   : > { %v1256_v36 = vadd.f32 %v1255_v33, %v6452_v6  ;;  %v1344_v37 = vpop.f32.mrf.mxu3  ;;  %v1081_v40 = vadd.f32 %v1080_v38, %v6447_v61  ;;  %v1169_v41 = vpop.f32.mrf.mxu1  ;;  %v4901_v33 = vor.u32 %v5383_v31, %v4900_v30  ;;  %v824_v30 = vld [vmem:[%s6387_s11 + $0x1a0] sm:$0xff]  ;;  %v826_v31 = vld [vmem:[%s6387_s11 + $0x1b0] sm:$0xff] }
 0x11f   : > { %v1345_v43 = vadd.f32 %v1344_v37, %v1256_v36  ;;  %v1170_v44 = vadd.f32 %v1169_v41, %v1081_v40  ;;  %1119 = vmatmul.bf16.gmra.mxu0 %v854_v34  ;;  %v858_v37 = vpack.c.bf16 %v818_v25, %v816_v24  ;;  %1967 = vmatpush.bf16.msrb.mxu2 %v4901_v33  ;;  %v825_v33 = vld [vmem:[%s6387_s11 + $0x1a8] sm:$0xff] }
 0x120   : > { %1208 = vmatmul.bf16.gmra.mxu1 %v855_v39 }
 0x121   : > { %v1425_v45 = vmax.f32 %v1345_v43, 0.0  ;;  %1297 = vmatmul.bf16.gmra.mxu2 %v854_v34  ;;  %v1426_v57 = vmax.f32 %v1170_v44, 0.0  ;;  %v5382_v34 = vld [vmem:[#allocation13 + $0x44] sm:$0xf]  ;;  %v859_v43 = vpack.c.bf16 %v819_v27, %v817_v26 }
 0x122   : > { %1386 = vmatmul.bf16.gmra.mxu3 %v855_v39  ;;  %v4905_v38 = vor.u32 %v5382_v34, %v4902_v35  ;;  %v827_v34 = vld [vmem:[%s6387_s11 + $0x1b8] sm:$0xff] }
 0x123   : > { %v6464_v46 = vpack.c.bf16 %v1425_v45, %v1423_v42 }
 0x124   : > { %v1258_v47 = vpop.f32.mrf.mxu2  ;;  %v1082_v50 = vpop.f32.mrf.mxu0  ;;  %2056 = vmatpush.bf16.msrb.mxu3 %v4905_v38  ;;  %v5381_v38 = vld [vmem:[#allocation13 + $0x34] sm:$0xf0] }
 0x125   : > { %v1259_v48 = vadd.f32 %v1258_v47, %v6452_v6  ;;  %v1347_v49 = vpop.f32.mrf.mxu3  ;;  %v1083_v51 = vadd.f32 %v1082_v50, %v6447_v61  ;;  %v1171_v52 = vpop.f32.mrf.mxu1 }
 0x127   : > { %v6468_v53 = vadd.f32 %v1347_v49, %v1259_v48  ;;  %v1172_v54 = vadd.f32 %v1171_v52, %v1083_v51 }
 0x129   : > { %v1428_v58 = vmax.f32 %v1172_v54, 0.0 }
 0x12b   : > { %v6474_v0 = vpack.c.bf16 %v1428_v58, %v1426_v57  ;;  %v820_v58 = vld [vmem:[%s6387_s11 + $0x180] sm:$0xff] }
 0x12c   : > { %v1260_v62 = vpop.f32.mrf.mxu2  ;;  %v1085_v3 = vpop.f32.mrf.mxu0 }
 0x12d   : > { %v1261_v1 = vadd.f32 %v1260_v62, %v6452_v6  ;;  %v1349_v2 = vpop.f32.mrf.mxu3  ;;  %v1086_v5 = vadd.f32 %v1085_v3, %v6447_v61  ;;  %v1174_v7 = vpop.f32.mrf.mxu1  ;;  %v860_v3 = vpack.c.bf16 %v822_v59, %v820_v58 }
 0x12f   : > { %v6478_v8 = vadd.f32 %v1349_v2, %v1261_v1  ;;  %v1175_v9 = vadd.f32 %v1174_v7, %v1086_v5  ;;  %1124 = vmatmul.bf16.gmra.mxu0 %v856_v63  ;;  %v823_v1 = vld [vmem:[%s6387_s11 + $0x198] sm:$0xff] }
 0x130   : > { %1213 = vmatmul.bf16.gmra.mxu1 %v857_v4 }
 0x131   : > { %1302 = vmatmul.bf16.gmra.mxu2 %v856_v63  ;;  %v1430_v28 = vmax.f32 %v1175_v9, 0.0  ;;  %v821_v63 = vld [vmem:[%s6387_s11 + $0x188] sm:$0xff] }
 0x132   : > { %1391 = vmatmul.bf16.gmra.mxu3 %v857_v4  ;;  %v861_v10 = vpack.c.bf16 %v823_v1, %v821_v63  ;;  %v5378_v63 = vld [vmem:[#allocation13 + $0x24] sm:$0xf] }
 0x134   : > { %v1263_v15 = vpop.f32.mrf.mxu2  ;;  %v1087_v19 = vpop.f32.mrf.mxu0 }
 0x135   : > { %v1264_v17 = vadd.f32 %v1263_v15, %v6452_v6  ;;  %v1352_v18 = vpop.f32.mrf.mxu3  ;;  %v1088_v20 = vadd.f32 %v1087_v19, %v6447_v61  ;;  %v1176_v21 = vpop.f32.mrf.mxu1  ;;  %v4804_v15 = vld [vmem:[#allocation8] sm:$0xf]  ;;  %v4806_v19 = vld [vmem:[#allocation8 + $0x8] sm:$0xf0] }
 0x137   : > { %v6482_v22 = vadd.f32 %v1352_v18, %v1264_v17  ;;  %v1177_v23 = vadd.f32 %v1176_v21, %v1088_v20  ;;  %v4805_v17 = vor.u32 %v5359_v16, %v4804_v15  ;;  %v5358_v18 = vld [vmem:[#allocation8 + $0x4] sm:$0xf]  ;;  %v4876_v15 = vld [vmem:[#allocation13 + $0x10] sm:$0xf]  ;;  %v5377_v16 = vld [vmem:[#allocation13 + $0x14] sm:$0xf0] }
 0x138   : > { %v4809_v21 = vor.u32 %v5358_v18, %v4806_v19  ;;  %v828_v18 = vld [vmem:[%s6387_s11 + $0x1c0] sm:$0xff]  ;;  %v830_v19 = vld [vmem:[%s6387_s11 + $0x1d0] sm:$0xff] }
 0x139   : > { %v1432_v29 = vmax.f32 %v1177_v23, 0.0  ;;  %1611 = vmatpush.bf16.msrb.mxu0 %v4805_v17  ;;  %v5376_v17 = vld [vmem:[#allocation13 + $0x14] sm:$0xf] }
 0x13a   : > { %1700 = vmatpush.bf16.msrb.mxu1 %v4809_v21  ;;  %v4878_v21 = vld [vmem:[#allocation13 + $0x18] sm:$0xf0] }
 0x13b   : > { %v6488_v39 = vpack.c.bf16 %v1432_v29, %v1430_v28 }
 0x13c   : > { %v1265_v36 = vpop.f32.mrf.mxu2  ;;  %v1090_v42 = vpop.f32.mrf.mxu0 }
 0x13d   : > { %v1266_v40 = vadd.f32 %v1265_v36, %v6452_v6  ;;  %v1354_v41 = vpop.f32.mrf.mxu3  ;;  %v1091_v44 = vadd.f32 %v1090_v42, %v6447_v61  ;;  %v1179_v45 = vpop.f32.mrf.mxu1  ;;  %v4894_v42 = vld [vmem:[#allocation13 + $0x38] sm:$0xf0] }
 0x13f   : > { %v6492_v47 = vadd.f32 %v1354_v41, %v1266_v40  ;;  %v1180_v48 = vadd.f32 %v1179_v45, %v1091_v44  ;;  %1129 = vmatmul.bf16.gmra.mxu0 %v858_v37  ;;  %v5380_v41 = vld [vmem:[#allocation13 + $0x34] sm:$0xf]  ;;  %v862_v44 = vpack.c.bf16 %v826_v31, %v824_v30  ;;  %v864_v30 = vpack.c.bf16 %v830_v19, %v828_v18  ;;  %v4868_v31 = vld [vmem:[#allocation13] sm:$0xf] }
 0x140   : > { %1218 = vmatmul.bf16.gmra.mxu1 %v859_v43  ;;  %v4897_v45 = vor.u32 %v5380_v41, %v4894_v42  ;;  %v4870_v42 = vld [vmem:[#allocation13 + $0x8] sm:$0xf0] }
 0x141   : > { %1307 = vmatmul.bf16.gmra.mxu2 %v858_v37  ;;  %v1434_v60 = vmax.f32 %v1180_v48, 0.0  ;;  %v4892_v37 = vld [vmem:[#allocation13 + $0x30] sm:$0xf] }
 0x142   : > { %1396 = vmatmul.bf16.gmra.mxu3 %v859_v43  ;;  %v4893_v40 = vor.u32 %v5381_v38, %v4892_v37 }
 0x143   : > { %2057 = vmatpush.bf16.msrb.mxu3 %v4897_v45 }
 0x144   : > { %v1268_v49 = vpop.f32.mrf.mxu2  ;;  %v1092_v52 = vpop.f32.mrf.mxu0  ;;  %1968 = vmatpush.bf16.msrb.mxu2 %v4893_v40 }
 0x145   : > { %v1269_v50 = vadd.f32 %v1268_v49, %v6452_v6  ;;  %v1357_v51 = vpop.f32.mrf.mxu3  ;;  %v1093_v54 = vadd.f32 %v1092_v52, %v6447_v61  ;;  %v1181_v55 = vpop.f32.mrf.mxu1  ;;  %v863_v52 = vpack.c.bf16 %v827_v34, %v825_v33  ;;  %v5375_v33 = vld [vmem:[#allocation13 + $0x4] sm:$0xf0]  ;;  %v5374_v34 = vld [vmem:[#allocation13 + $0x4] sm:$0xf] }
 0x146   : > { %v4869_v41 = vor.u32 %v5375_v33, %v4868_v31  ;;  %v4873_v45 = vor.u32 %v5374_v34, %v4870_v42  ;;  %v1431_v31 = vmax.f32 %v6482_v22, 0.0  ;;  %v1433_v33 = vmax.f32 %v6492_v47, 0.0 }
 0x147   : > { %v6496_v56 = vadd.f32 %v1357_v51, %v1269_v50  ;;  %v1182_v57 = vadd.f32 %v1181_v55, %v1093_v54 }
 0x148   : > { %v6560_v42 = vpack.c.bf16 %v1433_v33, %v1431_v31 }
 0x149   : > { %v1436_v62 = vmax.f32 %v1182_v57, 0.0 }
 0x14b   : > { %v6502_v4 = vpack.c.bf16 %v1436_v62, %v1434_v60  ;;  %v4884_v60 = vld [vmem:[#allocation13 + $0x20] sm:$0xf]  ;;  %v5379_v62 = vld [vmem:[#allocation13 + $0x24] sm:$0xf0] }
 0x14c   : > { %v1270_v2 = vpop.f32.mrf.mxu2  ;;  %v1095_v9 = vpop.f32.mrf.mxu0 }
 0x14d   : > { %v1271_v5 = vadd.f32 %v1270_v2, %v6452_v6  ;;  %v1359_v7 = vpop.f32.mrf.mxu3  ;;  %v1096_v11 = vadd.f32 %v1095_v9, %v6447_v61  ;;  %v1184_v12 = vpop.f32.mrf.mxu1 }
 0x14f   : > { %v6506_v13 = vadd.f32 %v1359_v7, %v1271_v5  ;;  %v1185_v14 = vadd.f32 %v1184_v12, %v1096_v11  ;;  %1134 = vmatmul.bf16.gmra.mxu0 %v860_v3  ;;  %v4885_v5 = vor.u32 %v5379_v62, %v4884_v60  ;;  %v4886_v7 = vld [vmem:[#allocation13 + $0x28] sm:$0xf0]  ;;  %v1427_v60 = vmax.f32 %v6468_v53, 0.0 }
 0x150   : > { %1223 = vmatmul.bf16.gmra.mxu1 %v861_v10  ;;  %v4889_v11 = vor.u32 %v5378_v63, %v4886_v7  ;;  %v1429_v62 = vmax.f32 %v6478_v8, 0.0  ;;  %v834_v7 = vld [vmem:[%s6387_s11 + $0x1f0] sm:$0xff] }
 0x151   : > { %1312 = vmatmul.bf16.gmra.mxu2 %v860_v3  ;;  %v1438_v35 = vmax.f32 %v1185_v14, 0.0 }
 0x152   : > { %1401 = vmatmul.bf16.gmra.mxu3 %v861_v10  ;;  %1969 = vmatpush.bf16.msrb.mxu2 %v4885_v5  ;;  %v832_v5 = vld [vmem:[%s6387_s11 + $0x1e0] sm:$0xff] }
 0x153   : > { %2058 = vmatpush.bf16.msrb.mxu3 %v4889_v11  ;;  %v833_v11 = vld [vmem:[%s6387_s11 + $0x1e8] sm:$0xff] }
 0x154   : > { %v1273_v20 = vpop.f32.mrf.mxu2  ;;  %v1097_v25 = vpop.f32.mrf.mxu0 }
 0x155   : > { %v1274_v23 = vadd.f32 %v1273_v20, %v6452_v6  ;;  %v1362_v24 = vpop.f32.mrf.mxu3  ;;  %v1098_v26 = vadd.f32 %v1097_v25, %v6447_v61  ;;  %v1186_v27 = vpop.f32.mrf.mxu1  ;;  %v4877_v20 = vor.u32 %v5377_v16, %v4876_v15  ;;  %v829_v25 = vld [vmem:[%s6387_s11 + $0x1c8] sm:$0xff]  ;;  %v6546_v15 = vpack.c.bf16 %v1429_v62, %v1427_v60 }
 0x157   : > { %v6510_v28 = vadd.f32 %v1362_v24, %v1274_v23  ;;  %v1187_v29 = vadd.f32 %v1186_v27, %v1098_v26  ;;  %v831_v26 = vld [vmem:[%s6387_s11 + $0x1d8] sm:$0xff]  ;;  %v4881_v27 = vor.u32 %v5376_v17, %v4878_v21  ;;  %1970 = vmatpush.bf16.msrb.mxu2 %v4877_v20  ;;  %v866_v17 = vpack.c.bf16 %v834_v7, %v832_v5 }
 0x158   : > { %v865_v40 = vpack.c.bf16 %v831_v26, %v829_v25 }
 0x159   : > { %v1440_v36 = vmax.f32 %v1187_v29, 0.0  ;;  %2059 = vmatpush.bf16.msrb.mxu3 %v4881_v27 }
 0x15b   : > { %v6516_v48 = vpack.c.bf16 %v1440_v36, %v1438_v35  ;;  %1971 = vmatpush.bf16.msrb.mxu2 %v4869_v41 }
 0x15c   : > { %v1275_v43 = vpop.f32.mrf.mxu2  ;;  %v1100_v51 = vpop.f32.mrf.mxu0 }
 0x15d   : > { %v1276_v49 = vadd.f32 %v1275_v43, %v6452_v6  ;;  %v1364_v50 = vpop.f32.mrf.mxu3  ;;  %v1101_v54 = vadd.f32 %v1100_v51, %v6447_v61  ;;  %v1189_v55 = vpop.f32.mrf.mxu1  ;;  %2060 = vmatpush.bf16.msrb.mxu3 %v4873_v45  ;;  %v5397_v51 = vld [vmem:[#allocation10 + $0x38] sm:$0xff] }
 0x15e   : > { %2370 = vmatpush.bf16.msra.mxu0 %v5397_v51 }
 0x15f   : > { %v6520_v57 = vadd.f32 %v1364_v50, %v1276_v49  ;;  %v1190_v58 = vadd.f32 %v1189_v55, %v1101_v54  ;;  %1139 = vmatmul.bf16.gmra.mxu0 %v862_v44 }
 0x160   : > { %1228 = vmatmul.bf16.gmra.mxu1 %v863_v52 }
 0x161   : > { %1317 = vmatmul.bf16.gmra.mxu2 %v862_v44  ;;  %v1442_v23 = vmax.f32 %v1190_v58, 0.0 }
 0x162   : > { %1406 = vmatmul.bf16.gmra.mxu3 %v863_v52  ;;  %v5405_v52 = vld [vmem:[#allocation10 + $0x78] sm:$0xff] }
 0x163   : > { %2459 = vmatpush.bf16.msra.mxu1 %v5405_v52 }
 0x164   : > { %v1278_v59 = vpop.f32.mrf.mxu2  ;;  %v1102_v3 = vpop.f32.mrf.mxu0 }
 0x165   : > { %v1279_v1 = vadd.f32 %v1278_v59, %v6452_v6  ;;  %v1367_v2 = vpop.f32.mrf.mxu3  ;;  %v1103_v9 = vadd.f32 %v1102_v3, %v6447_v61  ;;  %v1191_v10 = vpop.f32.mrf.mxu1 }
 0x167   : > { %v6524_v12 = vadd.f32 %v1367_v2, %v1279_v1  ;;  %v1192_v14 = vadd.f32 %v1191_v10, %v1103_v9 }
 0x169   : > { %v1444_v24 = vmax.f32 %v1192_v14, 0.0  ;;  %v835_v14 = vld [vmem:[%s6387_s11 + $0x1f8] sm:$0xff] }
 0x16a   : > { %v867_v20 = vpack.c.bf16 %v835_v14, %v833_v11 }
 0x16b   : > { %v6530_v35 = vpack.c.bf16 %v1444_v24, %v1442_v23 }
 0x16c   : > { %v1280_v29 = vpop.f32.mrf.mxu2  ;;  %v1105_v38 = vpop.f32.mrf.mxu0 }
 0x16d   : > { %v1281_v36 = vadd.f32 %v1280_v29, %v6452_v6  ;;  %v1369_v37 = vpop.f32.mrf.mxu3  ;;  %v1106_v43 = vadd.f32 %v1105_v38, %v6447_v61  ;;  %v1194_v44 = vpop.f32.mrf.mxu1 }
 0x16f   : > { %v6534_v49 = vadd.f32 %v1369_v37, %v1281_v36  ;;  %v1195_v50 = vadd.f32 %v1194_v44, %v1106_v43  ;;  %1144 = vmatmul.bf16.gmra.mxu0 %v864_v30 }
 0x170   : > { %1233 = vmatmul.bf16.gmra.mxu1 %v865_v40 }
 0x171   : > { %1322 = vmatmul.bf16.gmra.mxu2 %v864_v30  ;;  %v1446_v9 = vmax.f32 %v1195_v50, 0.0 }
 0x172   : > { %1411 = vmatmul.bf16.gmra.mxu3 %v865_v40 }
 0x174   : > { %v1283_v54 = vpop.f32.mrf.mxu2  ;;  %v1107_v59 = vpop.f32.mrf.mxu0 }
 0x175   : > { %v1284_v55 = vadd.f32 %v1283_v54, %v6452_v6  ;;  %v1372_v58 = vpop.f32.mrf.mxu3  ;;  %v1108_v63 = vadd.f32 %v1107_v59, %v6447_v61  ;;  %v1196_v1 = vpop.f32.mrf.mxu1 }
 0x177   : > { %v6540_v2 = vadd.f32 %v1372_v58, %v1284_v55  ;;  %v1197_v3 = vadd.f32 %v1196_v1, %v1108_v63  ;;  %v5396_v55 = vld [vmem:[#allocation10 + $0x30] sm:$0xff]  ;;  %v1435_v1 = vmax.f32 %v6496_v56, 0.0 }
 0x178   : > { %v5404_v58 = vld [vmem:[#allocation10 + $0x70] sm:$0xff]  ;;  %2371 = vmatpush.bf16.msra.mxu0 %v5396_v55 }
 0x179   : > { %v1448_v10 = vmax.f32 %v1197_v3, 0.0  ;;  %2460 = vmatpush.bf16.msra.mxu1 %v5404_v58  ;;  %v1437_v3 = vmax.f32 %v6506_v13, 0.0 }
 0x17b   : > { %v6548_v18 = vpack.c.bf16 %v1448_v10, %v1446_v9  ;;  %v6578_v11 = vpack.c.bf16 %v1437_v3, %v1435_v1 }
 0x17c   : > { %v1285_v16 = vpop.f32.mrf.mxu2  ;;  %v1110_v19 = vpop.f32.mrf.mxu0 }
 0x17d   : > { %v1286_v53 = vadd.f32 %v1285_v16, %v6452_v6  ;;  %v1374_v8 = vpop.f32.mrf.mxu3  ;;  %v1111_v21 = vadd.f32 %v1110_v19, %v6447_v61  ;;  %v1199_v23 = vpop.f32.mrf.mxu1 }
 0x17f   : > { %v6552_v24 = vadd.f32 %v1374_v8, %v1286_v53  ;;  %v1200_v25 = vadd.f32 %v1199_v23, %v1111_v21  ;;  %1149 = vmatmul.bf16.gmra.mxu0 %v866_v17 }
 0x180   : > { %1238 = vmatmul.bf16.gmra.mxu1 %v867_v20 }
 0x181   : > { %1327 = vmatmul.bf16.gmra.mxu2 %v866_v17  ;;  %v1450_v40 = vmax.f32 %v1200_v25, 0.0 }
 0x182   : > { %1416 = vmatmul.bf16.gmra.mxu3 %v867_v20 }
 0x184   : > { %v1288_v26 = vpop.f32.mrf.mxu2  ;;  %v1112_v30 = vpop.f32.mrf.mxu0 }
 0x185   : > { %v1289_v27 = vadd.f32 %v1288_v26, %v6452_v6  ;;  %v1377_v29 = vpop.f32.mrf.mxu3  ;;  %v1113_v34 = vadd.f32 %v1112_v30, %v6447_v61  ;;  %v1201_v36 = vpop.f32.mrf.mxu1 }
 0x187   : > { %v6558_v37 = vadd.f32 %v1377_v29, %v1289_v27  ;;  %v1202_v38 = vadd.f32 %v1201_v36, %v1113_v34  ;;  %v1439_v27 = vmax.f32 %v6510_v28, 0.0  ;;  %v1441_v29 = vmax.f32 %v6520_v57, 0.0 }
 0x189   : > { %v1452_v41 = vmax.f32 %v1202_v38, 0.0  ;;  %v6596_v38 = vpack.c.bf16 %v1441_v29, %v1439_v27 }
 0x18b   : > { %v6562_v44 = vpack.c.bf16 %v1452_v41, %v1450_v40 }
 0x18c   : > { %v1290_v43 = vpop.f32.mrf.mxu2  ;;  %v1115_v51 = vpop.f32.mrf.mxu0 }
 0x18d   : > { %v1291_v45 = vadd.f32 %v1290_v43, %v6452_v6  ;;  %v1379_v50 = vpop.f32.mrf.mxu3  ;;  %v1116_v22 = vadd.f32 %v1115_v51, %v6447_v61  ;;  %v1204_v47 = vpop.f32.mrf.mxu1 }
 0x18f   : > { %v6566_v52 = vadd.f32 %v1379_v50, %v1291_v45  ;;  %v1205_v54 = vadd.f32 %v1204_v47, %v1116_v22  ;;  %1612 = vmatmul.bf16.vlgmr.msrb.gmra.mxu0 %v6460_v32  ;;  %v5395_v22 = vld [vmem:[#allocation10 + $0x28] sm:$0xff] }
 0x190   : > { %1701 = vmatmul.bf16.vlgmr.msrb.gmra.mxu1 %v6460_v32  ;;  %v5403_v47 = vld [vmem:[#allocation10 + $0x68] sm:$0xff]  ;;  %2372 = vmatpush.bf16.msra.mxu0 %v5395_v22 }
 0x191   : > { %1972 = vmatmul.bf16.vlgmr.msrb.gmra.mxu2 %v6464_v46  ;;  %2461 = vmatpush.bf16.msra.mxu1 %v5403_v47 }
 0x192   : > { %2061 = vmatmul.bf16.vlgmr.msrb.gmra.mxu3 %v6464_v46  ;;  %v1454_v46 = vmax.f32 %v1205_v54, 0.0 }
 0x194   : > { %v1293_v59 = vpop.f32.mrf.mxu2  ;;  %v1117_v63 = vpop.f32.mrf.mxu0 }
 0x195   : > { %v1294_v60 = vadd.f32 %v1293_v59, %v6452_v6  ;;  %v1382_v62 = vpop.f32.mrf.mxu3  ;;  %v1118_v5 = vadd.f32 %v1117_v63, %v6447_v61  ;;  %v1206_v32 = vpop.f32.mrf.mxu1 }
 0x197   : > { %v6576_v7 = vadd.f32 %v1382_v62, %v1294_v60  ;;  %v1207_v9 = vadd.f32 %v1206_v32, %v1118_v5  ;;  %v1443_v60 = vmax.f32 %v6524_v12, 0.0  ;;  %v1445_v62 = vmax.f32 %v6534_v49, 0.0 }
 0x199   : > { %v1456_v10 = vmax.f32 %v1207_v9, 0.0  ;;  %v6614_v32 = vpack.c.bf16 %v1445_v62, %v1443_v60 }
 0x19b   : > { %v6580_v16 = vpack.c.bf16 %v1456_v10, %v1454_v46 }
 0x19c   : > { %v1295_v14 = vpop.f32.mrf.mxu2  ;;  %v1120_v8 = vpop.f32.mrf.mxu0 }
 0x19d   : > { %v1296_v17 = vadd.f32 %v1295_v14, %v6452_v6  ;;  %v1384_v53 = vpop.f32.mrf.mxu3  ;;  %v1121_v56 = vadd.f32 %v1120_v8, %v6447_v61  ;;  %v1209_v13 = vpop.f32.mrf.mxu1 }
 0x19f   : > { %v6584_v19 = vadd.f32 %v1384_v53, %v1296_v17  ;;  %v1210_v20 = vadd.f32 %v1209_v13, %v1121_v56  ;;  %1617 = vmatmul.bf16.gmra.mxu0 %v6474_v0 }
 0x1a0   : > { %1706 = vmatmul.bf16.gmra.mxu1 %v6474_v0 }
 0x1a1   : > { %1977 = vmatmul.bf16.gmra.mxu2 %v6546_v15  ;;  %v1458_v0 = vmax.f32 %v1210_v20, 0.0 }
 0x1a2   : > { %2066 = vmatmul.bf16.gmra.mxu3 %v6546_v15 }
 0x1a4   : > { %v1298_v21 = vpop.f32.mrf.mxu2  ;;  %v1122_v26 = vpop.f32.mrf.mxu0 }
 0x1a5   : > { %v1299_v23 = vadd.f32 %v1298_v21, %v6452_v6  ;;  %v1387_v25 = vpop.f32.mrf.mxu3  ;;  %v1123_v30 = vadd.f32 %v1122_v26, %v6447_v61  ;;  %v1211_v31 = vpop.f32.mrf.mxu1 }
 0x1a7   : > { %v6594_v33 = vadd.f32 %v1387_v25, %v1299_v23  ;;  %v1212_v34 = vadd.f32 %v1211_v31, %v1123_v30  ;;  %v1447_v23 = vmax.f32 %v6540_v2, 0.0  ;;  %v1449_v25 = vmax.f32 %v6552_v24, 0.0 }
 0x1a9   : > { %v1460_v36 = vmax.f32 %v1212_v34, 0.0  ;;  %v6632_v34 = vpack.c.bf16 %v1449_v25, %v1447_v23  ;;  %v1457_v23 = vmax.f32 %v6584_v19, 0.0 }
 0x1ab   : > { %v6598_v40 = vpack.c.bf16 %v1460_v36, %v1458_v0 }
 0x1ac   : > { %v1300_v15 = vpop.f32.mrf.mxu2  ;;  %v1125_v45 = vpop.f32.mrf.mxu0 }
 0x1ad   : > { %v1301_v41 = vadd.f32 %v1300_v15, %v6452_v6  ;;  %v1389_v43 = vpop.f32.mrf.mxu3  ;;  %v1126_v28 = vadd.f32 %v1125_v45, %v6447_v61  ;;  %v1214_v57 = vpop.f32.mrf.mxu1 }
 0x1af   : > { %v6602_v50 = vadd.f32 %v1389_v43, %v1301_v41  ;;  %v1215_v51 = vadd.f32 %v1214_v57, %v1126_v28  ;;  %1622 = vmatmul.bf16.gmra.mxu0 %v6488_v39  ;;  %v5394_v28 = vld [vmem:[#allocation10 + $0x20] sm:$0xff] }
 0x1b0   : > { %1711 = vmatmul.bf16.gmra.mxu1 %v6488_v39  ;;  %v5402_v57 = vld [vmem:[#allocation10 + $0x60] sm:$0xff]  ;;  %2373 = vmatpush.bf16.msra.mxu0 %v5394_v28  ;;  %v5401_v28 = vld [vmem:[#allocation10 + $0x58] sm:$0xff] }
 0x1b1   : > { %1982 = vmatmul.bf16.gmra.mxu2 %v6560_v42  ;;  %2462 = vmatpush.bf16.msra.mxu1 %v5402_v57 }
 0x1b2   : > { %2071 = vmatmul.bf16.gmra.mxu3 %v6560_v42  ;;  %v1462_v42 = vmax.f32 %v1215_v51, 0.0 }
 0x1b4   : > { %v1303_v54 = vpop.f32.mrf.mxu2  ;;  %v1127_v59 = vpop.f32.mrf.mxu0 }
 0x1b5   : > { %v1304_v55 = vadd.f32 %v1303_v54, %v6452_v6  ;;  %v1392_v58 = vpop.f32.mrf.mxu3  ;;  %v1128_v63 = vadd.f32 %v1127_v59, %v6447_v61  ;;  %v1216_v39 = vpop.f32.mrf.mxu1  ;;  %2463 = vmatpush.bf16.msra.mxu1 %v5401_v28  ;;  %v1878_v28 = vld [vmem:[%s7823_s8] sm:$0x3] }
 0x1b7   : > { %v6612_v1 = vadd.f32 %v1392_v58, %v1304_v55  ;;  %v1217_v3 = vadd.f32 %v1216_v39, %v1128_v63  ;;  %v1451_v55 = vmax.f32 %v6558_v37, 0.0  ;;  %v1453_v58 = vmax.f32 %v6566_v52, 0.0  ;;  %v5413_v39 = vld [vmem:[#allocation14 + $0x38] sm:$0xff] }
 0x1b8   : > { %2712 = vmatpush.bf16.msra.mxu2 %v5413_v39  ;;  %v5420_v39 = vld [vmem:[#allocation14 + $0x70] sm:$0xff] }
 0x1b9   : > { %v1464_v5 = vmax.f32 %v1217_v3, 0.0  ;;  %v5421_v3 = vld [vmem:[#allocation14 + $0x78] sm:$0xff] }
 0x1ba   : > { %2801 = vmatpush.bf16.msra.mxu3 %v5421_v3 }
 0x1bb   : > { %v6616_v46 = vpack.c.bf16 %v1464_v5, %v1462_v42  ;;  %v6650_v42 = vpack.c.bf16 %v1453_v58, %v1451_v55  ;;  %v1461_v55 = vmax.f32 %v6602_v50, 0.0 }
 0x1bc   : > { %v1305_v9 = vpop.f32.mrf.mxu2  ;;  %v1130_v17 = vpop.f32.mrf.mxu0 }
 0x1bd   : > { %v1306_v10 = vadd.f32 %v1305_v9, %v6452_v6  ;;  %v1394_v14 = vpop.f32.mrf.mxu3  ;;  %v1131_v12 = vadd.f32 %v1130_v17, %v6447_v61  ;;  %v1219_v49 = vpop.f32.mrf.mxu1 }
 0x1be   : > { %2802 = vmatpush.bf16.msra.mxu3 %v5420_v39 }
 0x1bf   : > { %v6620_v53 = vadd.f32 %v1394_v14, %v1306_v10  ;;  %v1220_v8 = vadd.f32 %v1219_v49, %v1131_v12  ;;  %1627 = vmatmul.bf16.gmra.mxu0 %v6502_v4 }
 0x1c0   : > { %1716 = vmatmul.bf16.gmra.mxu1 %v6502_v4 }
 0x1c1   : > { %1987 = vmatmul.bf16.gmra.mxu2 %v6578_v11  ;;  %v1466_v4 = vmax.f32 %v1220_v8, 0.0 }
 0x1c2   : > { %2076 = vmatmul.bf16.gmra.mxu3 %v6578_v11 }
 0x1c4   : > { %v1308_v56 = vpop.f32.mrf.mxu2  ;;  %v1132_v21 = vpop.f32.mrf.mxu0 }
 0x1c5   : > { %v1309_v13 = vadd.f32 %v1308_v56, %v6452_v6  ;;  %v1397_v20 = vpop.f32.mrf.mxu3  ;;  %v1133_v26 = vadd.f32 %v1132_v21, %v6447_v61  ;;  %v1221_v27 = vpop.f32.mrf.mxu1  ;;  %v1455_v21 = vmax.f32 %v6576_v7, 0.0 }
 0x1c7   : > { %v6630_v29 = vadd.f32 %v1397_v20, %v1309_v13  ;;  %v1222_v30 = vadd.f32 %v1221_v27, %v1133_v26 }
 0x1c9   : > { %v1468_v31 = vmax.f32 %v1222_v30, 0.0 }
 0x1cb   : > { %v6634_v0 = vpack.c.bf16 %v1468_v31, %v1466_v4  ;;  %v6668_v31 = vpack.c.bf16 %v1457_v23, %v1455_v21  ;;  %v1465_v21 = vmax.f32 %v6620_v53, 0.0 }
 0x1cc   : > { %v1310_v11 = vpop.f32.mrf.mxu2  ;;  %v1135_v41 = vpop.f32.mrf.mxu0 }
 0x1cd   : > { %v1311_v36 = vadd.f32 %v1310_v11, %v6452_v6  ;;  %v1399_v15 = vpop.f32.mrf.mxu3  ;;  %v1136_v2 = vadd.f32 %v1135_v41, %v6447_v61  ;;  %v1224_v24 = vpop.f32.mrf.mxu1 }
 0x1cf   : > { %v6638_v43 = vadd.f32 %v1399_v15, %v1311_v36  ;;  %v1225_v45 = vadd.f32 %v1224_v24, %v1136_v2  ;;  %1632 = vmatmul.bf16.gmra.mxu0 %v6516_v48 }
 0x1d0   : > { %1721 = vmatmul.bf16.gmra.mxu1 %v6516_v48 }
 0x1d1   : > { %1992 = vmatmul.bf16.gmra.mxu2 %v6596_v38 }
 0x1d2   : > { %2081 = vmatmul.bf16.gmra.mxu3 %v6596_v38  ;;  %v1470_v38 = vmax.f32 %v1225_v45, 0.0  ;;  %v5393_v45 = vld [vmem:[#allocation10 + $0x18] sm:$0xff] }
 0x1d3   : > { %2374 = vmatpush.bf16.msra.mxu0 %v5393_v45 }
 0x1d4   : > { %v1313_v51 = vpop.f32.mrf.mxu2  ;;  %v1137_v54 = vpop.f32.mrf.mxu0 }
 0x1d5   : > { %v1314_v22 = vadd.f32 %v1313_v51, %v6452_v6  ;;  %v1402_v47 = vpop.f32.mrf.mxu3  ;;  %v1138_v59 = vadd.f32 %v1137_v54, %v6447_v61  ;;  %v1226_v48 = vpop.f32.mrf.mxu1  ;;  %v1459_v54 = vmax.f32 %v6594_v33, 0.0 }
 0x1d7   : > { %v6648_v60 = vadd.f32 %v1402_v47, %v1314_v22  ;;  %v1227_v62 = vadd.f32 %v1226_v48, %v1138_v59 }
 0x1d9   : > { %v1472_v63 = vmax.f32 %v1227_v62, 0.0 }
 0x1db   : > { %v6652_v9 = vpack.c.bf16 %v1472_v63, %v1470_v38  ;;  %v6686_v38 = vpack.c.bf16 %v1461_v55, %v1459_v54  ;;  %v5412_v63 = vld [vmem:[#allocation14 + $0x30] sm:$0xff]  ;;  %v1469_v54 = vmax.f32 %v6638_v43, 0.0 }
 0x1dc   : > { %v1315_v5 = vpop.f32.mrf.mxu2  ;;  %v1140_v10 = vpop.f32.mrf.mxu0  ;;  %2713 = vmatpush.bf16.msra.mxu2 %v5412_v63 }
 0x1dd   : > { %v1316_v37 = vadd.f32 %v1315_v5, %v6452_v6  ;;  %v1404_v52 = vpop.f32.mrf.mxu3  ;;  %v1141_v14 = vadd.f32 %v1140_v10, %v6447_v61  ;;  %v1229_v17 = vpop.f32.mrf.mxu1 }
 0x1df   : > { %v6656_v12 = vadd.f32 %v1404_v52, %v1316_v37  ;;  %v1230_v49 = vadd.f32 %v1229_v17, %v1141_v14  ;;  %1637 = vmatmul.bf16.gmra.mxu0 %v6530_v35 }
 0x1e0   : > { %1726 = vmatmul.bf16.gmra.mxu1 %v6530_v35 }
 0x1e1   : > { %1997 = vmatmul.bf16.gmra.mxu2 %v6614_v32  ;;  %v1474_v35 = vmax.f32 %v1230_v49, 0.0 }
 0x1e2   : > { %2086 = vmatmul.bf16.gmra.mxu3 %v6614_v32 }
 0x1e4   : > { %v1318_v8 = vpop.f32.mrf.mxu2  ;;  %v1142_v20 = vpop.f32.mrf.mxu0 }
 0x1e5   : > { %v1319_v56 = vadd.f32 %v1318_v8, %v6452_v6  ;;  %v1407_v13 = vpop.f32.mrf.mxu3  ;;  %v1143_v25 = vadd.f32 %v1142_v20, %v6447_v61  ;;  %v1231_v26 = vpop.f32.mrf.mxu1  ;;  %v1463_v20 = vmax.f32 %v6612_v1, 0.0  ;;  %v1518_v1 = vld [vmem:[%s7819_s4] sm:$0x3] }
 0x1e7   : > { %v6666_v27 = vadd.f32 %v1407_v13, %v1319_v56  ;;  %v1232_v30 = vadd.f32 %v1231_v26, %v1143_v25 }
 0x1e9   : > { %v1476_v4 = vmax.f32 %v1232_v30, 0.0 }
 0x1eb   : > { %v6670_v11 = vpack.c.bf16 %v1476_v4, %v1474_v35  ;;  %v6704_v4 = vpack.c.bf16 %v1465_v21, %v1463_v20 }
 0x1ec   : > { %v1320_v32 = vpop.f32.mrf.mxu2  ;;  %v1145_v41 = vpop.f32.mrf.mxu0 }
 0x1ed   : > { %v1321_v36 = vadd.f32 %v1320_v32, %v6452_v6  ;;  %v1409_v15 = vpop.f32.mrf.mxu3  ;;  %v1146_v7 = vadd.f32 %v1145_v41, %v6447_v61  ;;  %v1234_v19 = vpop.f32.mrf.mxu1 }
 0x1ef   : > { %v6674_v2 = vadd.f32 %v1409_v15, %v1321_v36  ;;  %v1235_v24 = vadd.f32 %v1234_v19, %v1146_v7  ;;  %1642 = vmatmul.bf16.gmra.mxu0 %v6548_v18  ;;  %v6714_v7 = vperm.slane %v1518_v1, 0  ;;  %v6717_v19 = vperm.slane %v1518_v1, 1 }
 0x1f0   : > { %1731 = vmatmul.bf16.gmra.mxu1 %v6548_v18 }
 0x1f1   : > { %2002 = vmatmul.bf16.gmra.mxu2 %v6632_v34 }
 0x1f2   : > { %2091 = vmatmul.bf16.gmra.mxu3 %v6632_v34  ;;  %v1478_v34 = vmax.f32 %v1235_v24, 0.0  ;;  %v5400_v24 = vld [vmem:[#allocation10 + $0x50] sm:$0xff] }
 0x1f3   : > { %2464 = vmatpush.bf16.msra.mxu1 %v5400_v24 }
 0x1f4   : > { %v1323_v57 = vpop.f32.mrf.mxu2  ;;  %v1147_v47 = vpop.f32.mrf.mxu0 }
 0x1f5   : > { %v1324_v51 = vadd.f32 %v1323_v57, %v6452_v6  ;;  %v1412_v22 = vpop.f32.mrf.mxu3  ;;  %v1148_v58 = vadd.f32 %v1147_v47, %v6447_v61  ;;  %v1236_v18 = vpop.f32.mrf.mxu1 }
 0x1f7   : > { %v6684_v59 = vadd.f32 %v1412_v22, %v1324_v51  ;;  %v1237_v48 = vadd.f32 %v1236_v18, %v1148_v58  ;;  %v6730_v58 = vperm.slane %v1878_v28, 0 }
 0x1f9   : > { %v1480_v62 = vmax.f32 %v1237_v48, 0.0 }
 0x1fb   : > { %v6688_v5 = vpack.c.bf16 %v1480_v62, %v1478_v34  ;;  %v6733_v34 = vperm.slane %v1878_v28, 1 }
 0x1fc   : > { %v1325_v3 = vpop.f32.mrf.mxu2  ;;  %v1150_v52 = vpop.f32.mrf.mxu0 }
 0x1fd   : > { %v1326_v37 = vadd.f32 %v1325_v3, %v6452_v6  ;;  %v1414_v33 = vpop.f32.mrf.mxu3  ;;  %v1151_v50 = vadd.f32 %v1150_v52, %v6447_v61  ;;  %v1239_v10 = vpop.f32.mrf.mxu1  ;;  %v5411_v3 = vld [vmem:[#allocation14 + $0x28] sm:$0xff] }
 0x1fe   : > { %2714 = vmatpush.bf16.msra.mxu2 %v5411_v3 }
 0x1ff   : > { %v6692_v14 = vadd.f32 %v1414_v33, %v1326_v37  ;;  %v1240_v17 = vadd.f32 %v1239_v10, %v1151_v50  ;;  %1647 = vmatmul.bf16.gmra.mxu0 %v6562_v44  ;;  %v5419_v37 = vld [vmem:[#allocation14 + $0x68] sm:$0xff] }
 0x200   : > { %1736 = vmatmul.bf16.gmra.mxu1 %v6562_v44  ;;  %2803 = vmatpush.bf16.msra.mxu3 %v5419_v37 }
 0x201   : > { %2007 = vmatmul.bf16.gmra.mxu2 %v6650_v42  ;;  %v1482_v44 = vmax.f32 %v1240_v17, 0.0 }
 0x202   : > { %2096 = vmatmul.bf16.gmra.mxu3 %v6650_v42 }
 0x204   : > { %v1328_v49 = vpop.f32.mrf.mxu2  ;;  %v1152_v13 = vpop.f32.mrf.mxu0 }
 0x205   : > { %v1329_v8 = vadd.f32 %v1328_v49, %v6452_v6  ;;  %v1417_v56 = vpop.f32.mrf.mxu3  ;;  %v1153_v23 = vadd.f32 %v1152_v13, %v6447_v61  ;;  %v1241_v25 = vpop.f32.mrf.mxu1 }
 0x207   : > { %v6702_v26 = vadd.f32 %v1417_v56, %v1329_v8  ;;  %v1242_v30 = vadd.f32 %v1241_v25, %v1153_v23 }
 0x209   : > { %v1484_v35 = vmax.f32 %v1242_v30, 0.0 }
 0x20b   : > { %v6706_v32 = vpack.c.bf16 %v1484_v35, %v1482_v44 }
 0x20c   : > { %v1330_v42 = vpop.f32.mrf.mxu2  ;;  %v1613_v53 = vpop.f32.mrf.mxu0 }
 0x20d   : > { %v1331_v36 = vadd.f32 %v1330_v42, %v6452_v6  ;;  %v1419_v15 = vpop.f32.mrf.mxu3  ;;  %v1702_v61 = vpop.f32.mrf.mxu1  ;;  %v5392_v6 = vld [vmem:[#allocation10 + $0x10] sm:$0xff]  ;;  %v1614_v45 = vadd.f32 %v1613_v53, %v6714_v7  ;;  %v1471_v53 = vmax.f32 %v6648_v60, 0.0 }
 0x20e   : > { %2375 = vmatpush.bf16.msra.mxu0 %v5392_v6  ;;  %v1703_v51 = vadd.f32 %v1702_v61, %v6717_v19  ;;  %v1473_v61 = vmax.f32 %v6656_v12, 0.0 }
 0x20f   : > { %v6712_v41 = vadd.f32 %v1419_v15, %v1331_v36  ;;  %1652 = vmatmul.bf16.gmra.mxu0 %v6580_v16  ;;  %v1782_v48 = vmax.f32 %v1614_v45, 0.0 }
 0x210   : > { %1741 = vmatmul.bf16.gmra.mxu1 %v6580_v16  ;;  %v1467_v16 = vmax.f32 %v6630_v29, 0.0  ;;  %v1783_v63 = vmax.f32 %v1703_v51, 0.0  ;;  %v6759_v51 = vpack.c.bf16 %v1473_v61, %v1471_v53 }
 0x211   : > { %2012 = vmatmul.bf16.gmra.mxu2 %v6668_v31 }
 0x212   : > { %2101 = vmatmul.bf16.gmra.mxu3 %v6668_v31  ;;  %v6737_v29 = vpack.c.bf16 %v1469_v54, %v1467_v16 }
 0x214   : > { %v1973_v57 = vpop.f32.mrf.mxu2  ;;  %v1615_v47 = vpop.f32.mrf.mxu0 }
 0x215   : > { %v2062_v22 = vpop.f32.mrf.mxu3  ;;  %v1616_v31 = vadd.f32 %v1615_v47, %v6714_v7  ;;  %v1704_v55 = vpop.f32.mrf.mxu1  ;;  %v1974_v43 = vadd.f32 %v1973_v57, %v6730_v58 }
 0x216   : > { %v1705_v18 = vadd.f32 %v1704_v55, %v6717_v19  ;;  %v2063_v50 = vadd.f32 %v2062_v22, %v6733_v34 }
 0x217   : > { %v1784_v62 = vmax.f32 %v1616_v31, 0.0  ;;  %v2142_v20 = vmax.f32 %v1974_v43, 0.0  ;;  %v5391_v43 = vld [vmem:[#allocation10 + $0x8] sm:$0xff] }
 0x218   : > { %v1785_v39 = vmax.f32 %v1705_v18, 0.0  ;;  %v2143_v23 = vmax.f32 %v2063_v50, 0.0  ;;  %v5399_v50 = vld [vmem:[#allocation10 + $0x48] sm:$0xff]  ;;  %2376 = vmatpush.bf16.msra.mxu0 %v5391_v43  ;;  %v1481_v43 = vmax.f32 %v6692_v14, 0.0 }
 0x219   : > { %v6735_v33 = vpack.c.bf16 %v1784_v62, %v1782_v48  ;;  %2465 = vmatpush.bf16.msra.mxu1 %v5399_v50 }
 0x21a   : > { %v6740_v52 = vpack.c.bf16 %v1785_v39, %v1783_v63 }
 0x21c   : > { %v1975_v10 = vpop.f32.mrf.mxu2  ;;  %v1618_v8 = vpop.f32.mrf.mxu0 }
 0x21d   : > { %v1976_v17 = vadd.f32 %v1975_v10, %v6730_v58  ;;  %v2064_v49 = vpop.f32.mrf.mxu3  ;;  %v1707_v13 = vpop.f32.mrf.mxu1  ;;  %v1619_v35 = vadd.f32 %v1618_v8, %v6714_v7 }
 0x21e   : > { %v2065_v56 = vadd.f32 %v2064_v49, %v6733_v34  ;;  %v1708_v36 = vadd.f32 %v1707_v13, %v6717_v19 }
 0x21f   : > { %v2144_v21 = vmax.f32 %v1976_v17, 0.0  ;;  %1657 = vmatmul.bf16.gmra.mxu0 %v6598_v40  ;;  %v1786_v45 = vmax.f32 %v1619_v35, 0.0 }
 0x220   : > { %v2145_v25 = vmax.f32 %v2065_v56, 0.0  ;;  %1746 = vmatmul.bf16.gmra.mxu1 %v6598_v40  ;;  %v1787_v57 = vmax.f32 %v1708_v36, 0.0 }
 0x221   : > { %v6746_v30 = vpack.c.bf16 %v2144_v21, %v2142_v20  ;;  %2017 = vmatmul.bf16.gmra.mxu2 %v6686_v38  ;;  %v1477_v20 = vmax.f32 %v6674_v2, 0.0 }
 0x222   : > { %v6750_v44 = vpack.c.bf16 %v2145_v25, %v2143_v23  ;;  %2106 = vmatmul.bf16.gmra.mxu3 %v6686_v38 }
 0x224   : > { %v1978_v42 = vpop.f32.mrf.mxu2  ;;  %v1620_v1 = vpop.f32.mrf.mxu0 }
 0x225   : > { %v2067_v15 = vpop.f32.mrf.mxu3  ;;  %v1621_v6 = vadd.f32 %v1620_v1, %v6714_v7  ;;  %v1709_v40 = vpop.f32.mrf.mxu1  ;;  %v1979_v47 = vadd.f32 %v1978_v42, %v6730_v58  ;;  %v5418_v1 = vld [vmem:[#allocation14 + $0x60] sm:$0xff] }
 0x226   : > { %v1710_v24 = vadd.f32 %v1709_v40, %v6717_v19  ;;  %v2068_v60 = vadd.f32 %v2067_v15, %v6733_v34  ;;  %v5410_v15 = vld [vmem:[#allocation14 + $0x20] sm:$0xff]  ;;  %2804 = vmatpush.bf16.msra.mxu3 %v5418_v1 }
 0x227   : > { %v1788_v28 = vmax.f32 %v1621_v6, 0.0  ;;  %v2146_v62 = vmax.f32 %v1979_v47, 0.0  ;;  %2715 = vmatpush.bf16.msra.mxu2 %v5410_v15 }
 0x228   : > { %v1789_v38 = vmax.f32 %v1710_v24, 0.0  ;;  %v2147_v39 = vmax.f32 %v2068_v60, 0.0 }
 0x229   : > { %v6761_v22 = vpack.c.bf16 %v1788_v28, %v1786_v45 }
 0x22a   : > { %v6764_v16 = vpack.c.bf16 %v1789_v38, %v1787_v57 }
 0x22c   : > { %v1980_v12 = vpop.f32.mrf.mxu2  ;;  %v1623_v55 = vpop.f32.mrf.mxu0 }
 0x22d   : > { %v1981_v54 = vadd.f32 %v1980_v12, %v6730_v58  ;;  %v2069_v31 = vpop.f32.mrf.mxu3  ;;  %v1712_v48 = vpop.f32.mrf.mxu1  ;;  %v1624_v17 = vadd.f32 %v1623_v55, %v6714_v7 }
 0x22e   : > { %v2070_v18 = vadd.f32 %v2069_v31, %v6733_v34  ;;  %v1713_v8 = vadd.f32 %v1712_v48, %v6717_v19 }
 0x22f   : > { %v2148_v63 = vmax.f32 %v1981_v54, 0.0  ;;  %1662 = vmatmul.bf16.gmra.mxu0 %v6616_v46  ;;  %v1790_v25 = vmax.f32 %v1624_v17, 0.0 }
 0x230   : > { %v2149_v3 = vmax.f32 %v2070_v18, 0.0  ;;  %1751 = vmatmul.bf16.gmra.mxu1 %v6616_v46  ;;  %v1475_v46 = vmax.f32 %v6666_v27, 0.0  ;;  %v1791_v42 = vmax.f32 %v1713_v8, 0.0 }
 0x231   : > { %2022 = vmatmul.bf16.gmra.mxu2 %v6704_v4  ;;  %v6772_v37 = vpack.c.bf16 %v2148_v63, %v2146_v62 }
 0x232   : > { %2111 = vmatmul.bf16.gmra.mxu3 %v6704_v4  ;;  %v6775_v10 = vpack.c.bf16 %v2149_v3, %v2147_v39  ;;  %v6783_v53 = vpack.c.bf16 %v1477_v20, %v1475_v46  ;;  %v1479_v3 = vmax.f32 %v6684_v59, 0.0 }
 0x234   : > { %v1983_v49 = vpop.f32.mrf.mxu2  ;;  %v1625_v13 = vpop.f32.mrf.mxu0 }
 0x235   : > { %v2072_v56 = vpop.f32.mrf.mxu3  ;;  %v1626_v21 = vadd.f32 %v1625_v13, %v6714_v7  ;;  %v1714_v4 = vpop.f32.mrf.mxu1  ;;  %v1984_v6 = vadd.f32 %v1983_v49, %v6730_v58  ;;  %v6807_v13 = vpack.c.bf16 %v1481_v43, %v1479_v3  ;;  %v5409_v3 = vld [vmem:[#allocation14 + $0x18] sm:$0xff] }
 0x236   : > { %v1715_v23 = vadd.f32 %v1714_v4, %v6717_v19  ;;  %v2073_v2 = vadd.f32 %v2072_v56, %v6733_v34  ;;  %v5417_v43 = vld [vmem:[#allocation14 + $0x58] sm:$0xff]  ;;  %2716 = vmatpush.bf16.msra.mxu2 %v5409_v3 }
 0x237   : > { %v1792_v35 = vmax.f32 %v1626_v21, 0.0  ;;  %v2150_v47 = vmax.f32 %v1984_v6, 0.0  ;;  %2805 = vmatpush.bf16.msra.mxu3 %v5417_v43 }
 0x238   : > { %v1793_v36 = vmax.f32 %v1715_v23, 0.0  ;;  %v2151_v12 = vmax.f32 %v2073_v2, 0.0 }
 0x239   : > { %v6785_v61 = vpack.c.bf16 %v1792_v35, %v1790_v25 }
 0x23a   : > { %v6788_v27 = vpack.c.bf16 %v1793_v36, %v1791_v42 }
 0x23c   : > { %v1985_v40 = vpop.f32.mrf.mxu2  ;;  %v1628_v28 = vpop.f32.mrf.mxu0 }
 0x23d   : > { %v1986_v24 = vadd.f32 %v1985_v40, %v6730_v58  ;;  %v2074_v45 = vpop.f32.mrf.mxu3  ;;  %v1717_v38 = vpop.f32.mrf.mxu1  ;;  %v1629_v18 = vadd.f32 %v1628_v28, %v6714_v7  ;;  %v5390_v40 = vld [vmem:[#allocation10] sm:$0xff] }
 0x23e   : > { %v2075_v57 = vadd.f32 %v2074_v45, %v6733_v34  ;;  %v1718_v62 = vadd.f32 %v1717_v38, %v6717_v19  ;;  %2377 = vmatpush.bf16.msra.mxu0 %v5390_v40 }
 0x23f   : > { %v2152_v60 = vmax.f32 %v1986_v24, 0.0  ;;  %1667 = vmatmul.bf16.gmra.mxu0 %v6634_v0  ;;  %v1794_v49 = vmax.f32 %v1629_v18, 0.0  ;;  %v5398_v24 = vld [vmem:[#allocation10 + $0x40] sm:$0xff] }
 0x240   : > { %v2153_v54 = vmax.f32 %v2075_v57, 0.0  ;;  %1756 = vmatmul.bf16.gmra.mxu1 %v6634_v0  ;;  %v1795_v8 = vmax.f32 %v1718_v62, 0.0 }
 0x241   : > { %2027 = vmatmul.bf16.gmra.mxu2 %v6737_v29  ;;  %v6796_v31 = vpack.c.bf16 %v2152_v60, %v2150_v47  ;;  %2466 = vmatpush.bf16.msra.mxu1 %v5398_v24  ;;  %v5408_v24 = vld [vmem:[#allocation14 + $0x10] sm:$0xff] }
 0x242   : > { %2116 = vmatmul.bf16.gmra.mxu3 %v6737_v29  ;;  %v6799_v55 = vpack.c.bf16 %v2153_v54, %v2151_v12  ;;  %v1485_v12 = vmax.f32 %v6712_v41, 0.0  ;;  %2717 = vmatpush.bf16.msra.mxu2 %v5408_v24 }
 0x244   : > { %v1988_v48 = vpop.f32.mrf.mxu2  ;;  %v1630_v39 = vpop.f32.mrf.mxu0 }
 0x245   : > { %v2077_v63 = vpop.f32.mrf.mxu3  ;;  %v1631_v0 = vadd.f32 %v1630_v39, %v6714_v7  ;;  %v1719_v50 = vpop.f32.mrf.mxu1  ;;  %v1989_v20 = vadd.f32 %v1988_v48, %v6730_v58 }
 0x246   : > { %v1720_v17 = vadd.f32 %v1719_v50, %v6717_v19  ;;  %v2078_v59 = vadd.f32 %v2077_v63, %v6733_v34 }
 0x247   : > { %v1796_v29 = vmax.f32 %v1631_v0, 0.0  ;;  %v2154_v36 = vmax.f32 %v1989_v20, 0.0 }
 0x248   : > { %v1797_v56 = vmax.f32 %v1720_v17, 0.0  ;;  %v2155_v1 = vmax.f32 %v2078_v59, 0.0 }
 0x249   : > { %v6809_v46 = vpack.c.bf16 %v1796_v29, %v1794_v49 }
 0x24a   : > { %v6812_v21 = vpack.c.bf16 %v1797_v56, %v1795_v8 }
 0x24c   : > { %v1990_v14 = vpop.f32.mrf.mxu2  ;;  %v1633_v25 = vpop.f32.mrf.mxu0 }
 0x24d   : > { %v1991_v4 = vadd.f32 %v1990_v14, %v6730_v58  ;;  %v2079_v23 = vpop.f32.mrf.mxu3  ;;  %v1722_v42 = vpop.f32.mrf.mxu1  ;;  %v1634_v28 = vadd.f32 %v1633_v25, %v6714_v7 }
 0x24e   : > { %v2080_v35 = vadd.f32 %v2079_v23, %v6733_v34  ;;  %v1723_v38 = vadd.f32 %v1722_v42, %v6717_v19 }
 0x24f   : > { %v2156_v15 = vmax.f32 %v1991_v4, 0.0  ;;  %1672 = vmatmul.bf16.gmra.mxu0 %v6652_v9  ;;  %v1798_v48 = vmax.f32 %v1634_v28, 0.0  ;;  %v5416_v28 = vld [vmem:[#allocation14 + $0x50] sm:$0xff] }
 0x250   : > { %v2157_v6 = vmax.f32 %v2080_v35, 0.0  ;;  %1761 = vmatmul.bf16.gmra.mxu1 %v6652_v9  ;;  %v1483_v9 = vmax.f32 %v6702_v26, 0.0  ;;  %v1799_v63 = vmax.f32 %v1723_v38, 0.0  ;;  %2806 = vmatpush.bf16.msra.mxu3 %v5416_v28 }
 0x251   : > { %2032 = vmatmul.bf16.gmra.mxu2 %v6759_v51  ;;  %v6820_v2 = vpack.c.bf16 %v2156_v15, %v2154_v36 }
 0x252   : > { %2121 = vmatmul.bf16.gmra.mxu3 %v6759_v51  ;;  %v6823_v45 = vpack.c.bf16 %v2157_v6, %v2155_v1  ;;  %v6831_v0 = vpack.c.bf16 %v1485_v12, %v1483_v9  ;;  %v5407_v12 = vld [vmem:[#allocation14 + $0x8] sm:$0xff] }
 0x253   : > { %2718 = vmatpush.bf16.msra.mxu2 %v5407_v12 }
 0x254   : > { %v1993_v57 = vpop.f32.mrf.mxu2  ;;  %v1635_v60 = vpop.f32.mrf.mxu0 }
 0x255   : > { %v2082_v47 = vpop.f32.mrf.mxu3  ;;  %v1636_v54 = vadd.f32 %v1635_v60, %v6714_v7  ;;  %v1724_v51 = vpop.f32.mrf.mxu1  ;;  %v1994_v17 = vadd.f32 %v1993_v57, %v6730_v58 }
 0x256   : > { %v1725_v18 = vadd.f32 %v1724_v51, %v6717_v19  ;;  %v2083_v41 = vadd.f32 %v2082_v47, %v6733_v34 }
 0x257   : > { %v1800_v62 = vmax.f32 %v1636_v54, 0.0  ;;  %v2158_v14 = vmax.f32 %v1994_v17, 0.0  ;;  %v5415_v54 = vld [vmem:[#allocation14 + $0x48] sm:$0xff]  ;;  %v5406_v17 = vld [vmem:[#allocation14] sm:$0xff] }
 0x258   : > { %v1801_v39 = vmax.f32 %v1725_v18, 0.0  ;;  %v2159_v23 = vmax.f32 %v2083_v41, 0.0  ;;  %2807 = vmatpush.bf16.msra.mxu3 %v5415_v54  ;;  %v5414_v41 = vld [vmem:[#allocation14 + $0x40] sm:$0xff]  ;;  %2719 = vmatpush.bf16.msra.mxu2 %v5406_v17 }
 0x259   : > { %v6833_v50 = vpack.c.bf16 %v1800_v62, %v1798_v48 }
 0x25a   : > { %v6836_v26 = vpack.c.bf16 %v1801_v39, %v1799_v63 }
 0x25c   : > { %v1995_v49 = vpop.f32.mrf.mxu2  ;;  %v1638_v56 = vpop.f32.mrf.mxu0  ;;  %2808 = vmatpush.bf16.msra.mxu3 %v5414_v41 }
 0x25d   : > { %v1996_v29 = vadd.f32 %v1995_v49, %v6730_v58  ;;  %v2084_v8 = vpop.f32.mrf.mxu3  ;;  %v1727_v59 = vpop.f32.mrf.mxu1  ;;  %v1639_v36 = vadd.f32 %v1638_v56, %v6714_v7 }
 0x25e   : > { %v2085_v20 = vadd.f32 %v2084_v8, %v6733_v34  ;;  %v1728_v1 = vadd.f32 %v1727_v59, %v6717_v19 }
 0x25f   : > { %v2160_v4 = vmax.f32 %v1996_v29, 0.0  ;;  %1677 = vmatmul.bf16.gmra.mxu0 %v6670_v11  ;;  %v1802_v47 = vmax.f32 %v1639_v36, 0.0 }
 0x260   : > { %v2161_v25 = vmax.f32 %v2085_v20, 0.0  ;;  %1766 = vmatmul.bf16.gmra.mxu1 %v6670_v11  ;;  %v1803_v60 = vmax.f32 %v1728_v1, 0.0  ;;  %v5453_v1 = vld [vmem:[#allocation16 + $0xf4] sm:$0xf0] }
 0x261   : > { %2037 = vmatmul.bf16.gmra.mxu2 %v6783_v53  ;;  %v6844_v35 = vpack.c.bf16 %v2160_v4, %v2158_v14  ;;  %v5116_v4 = vld [vmem:[#allocation16 + $0x70] sm:$0xf] }
 0x262   : > { %2126 = vmatmul.bf16.gmra.mxu3 %v6783_v53  ;;  %v6847_v42 = vpack.c.bf16 %v2161_v25, %v2159_v23  ;;  %v5437_v23 = vld [vmem:[#allocation16 + $0x74] sm:$0xf0]  ;;  %v5180_v25 = vld [vmem:[#allocation16 + $0xf0] sm:$0xf] }
 0x263   : > { %v5181_v24 = vor.u32 %v5453_v1, %v5180_v25 }
 0x264   : > { %v1998_v15 = vpop.f32.mrf.mxu2  ;;  %v1640_v40 = vpop.f32.mrf.mxu0 }
 0x265   : > { %v2087_v6 = vpop.f32.mrf.mxu3  ;;  %v1641_v57 = vadd.f32 %v1640_v40, %v6714_v7  ;;  %v1729_v11 = vpop.f32.mrf.mxu1  ;;  %v1999_v18 = vadd.f32 %v1998_v15, %v6730_v58  ;;  %v5117_v15 = vor.u32 %v5437_v23, %v5116_v4  ;;  %3337 = vmatpush.bf16.msrb.mxu1 %v5181_v24 }
 0x266   : > { %v1730_v38 = vadd.f32 %v1729_v11, %v6717_v19  ;;  %v2088_v62 = vadd.f32 %v2087_v6, %v6733_v34 }
 0x267   : > { %v1804_v53 = vmax.f32 %v1641_v57, 0.0  ;;  %v2162_v8 = vmax.f32 %v1999_v18, 0.0  ;;  %3248 = vmatpush.bf16.msrb.mxu0 %v5117_v15 }
 0x268   : > { %v1805_v9 = vmax.f32 %v1730_v38, 0.0  ;;  %v2163_v20 = vmax.f32 %v2088_v62, 0.0 }
 0x269   : > { %v6853_v51 = vpack.c.bf16 %v1804_v53, %v1802_v47 }
 0x26a   : > { %v6856_v48 = vpack.c.bf16 %v1805_v9, %v1803_v60 }
 0x26c   : > { %v2000_v63 = vpop.f32.mrf.mxu2  ;;  %v1643_v43 = vpop.f32.mrf.mxu0 }
 0x26d   : > { %v2001_v39 = vadd.f32 %v2000_v63, %v6730_v58  ;;  %v2089_v3 = vpop.f32.mrf.mxu3  ;;  %v1732_v29 = vpop.f32.mrf.mxu1  ;;  %v1644_v6 = vadd.f32 %v1643_v43, %v6714_v7 }
 0x26e   : > { %v2090_v49 = vadd.f32 %v2089_v3, %v6733_v34  ;;  %v1733_v28 = vadd.f32 %v1732_v29, %v6717_v19 }
 0x26f   : > { %v2164_v56 = vmax.f32 %v2001_v39, 0.0  ;;  %1682 = vmatmul.bf16.gmra.mxu0 %v6688_v5  ;;  %v1806_v47 = vmax.f32 %v1644_v6, 0.0 }
 0x270   : > { %v2165_v59 = vmax.f32 %v2090_v49, 0.0  ;;  %1771 = vmatmul.bf16.gmra.mxu1 %v6688_v5  ;;  %v1807_v60 = vmax.f32 %v1733_v28, 0.0 }
 0x271   : > { %2042 = vmatmul.bf16.gmra.mxu2 %v6807_v13  ;;  %v6864_v14 = vpack.c.bf16 %v2164_v56, %v2162_v8 }
 0x272   : > { %2131 = vmatmul.bf16.gmra.mxu3 %v6807_v13  ;;  %v6867_v36 = vpack.c.bf16 %v2165_v59, %v2163_v20 }
 0x274   : > { %v2003_v40 = vpop.f32.mrf.mxu2  ;;  %v1645_v57 = vpop.f32.mrf.mxu0 }
 0x275   : > { %v2092_v5 = vpop.f32.mrf.mxu3  ;;  %v1646_v11 = vadd.f32 %v1645_v57, %v6714_v7  ;;  %v1734_v38 = vpop.f32.mrf.mxu1  ;;  %v2004_v54 = vadd.f32 %v2003_v40, %v6730_v58 }
 0x276   : > { %v1735_v13 = vadd.f32 %v1734_v38, %v6717_v19  ;;  %v2093_v62 = vadd.f32 %v2092_v5, %v6733_v34 }
 0x277   : > { %v1808_v53 = vmax.f32 %v1646_v11, 0.0  ;;  %v2166_v49 = vmax.f32 %v2004_v54, 0.0 }
 0x278   : > { %v1809_v9 = vmax.f32 %v1735_v13, 0.0  ;;  %v2167_v8 = vmax.f32 %v2093_v62, 0.0 }
 0x279   : > { %v6873_v12 = vpack.c.bf16 %v1808_v53, %v1806_v47 }
 0x27a   : > { %v6876_v18 = vpack.c.bf16 %v1809_v9, %v1807_v60 }
 0x27c   : > { %v2005_v63 = vpop.f32.mrf.mxu2  ;;  %v1648_v43 = vpop.f32.mrf.mxu0 }
 0x27d   : > { %v2006_v39 = vadd.f32 %v2005_v63, %v6730_v58  ;;  %v2094_v3 = vpop.f32.mrf.mxu3  ;;  %v1737_v41 = vpop.f32.mrf.mxu1  ;;  %v1649_v4 = vadd.f32 %v1648_v43, %v6714_v7 }
 0x27e   : > { %v2095_v17 = vadd.f32 %v2094_v3, %v6733_v34  ;;  %v1738_v25 = vadd.f32 %v1737_v41, %v6717_v19  ;;  %v5108_v41 = vld [vmem:[#allocation16 + $0x60] sm:$0xf] }
 0x27f   : > { %v2168_v29 = vmax.f32 %v2006_v39, 0.0  ;;  %1687 = vmatmul.bf16.gmra.mxu0 %v6706_v32  ;;  %v1810_v24 = vmax.f32 %v1649_v4, 0.0  ;;  %v5451_v4 = vld [vmem:[#allocation16 + $0xe4] sm:$0xf0] }
 0x280   : > { %v2169_v56 = vmax.f32 %v2095_v17, 0.0  ;;  %1776 = vmatmul.bf16.gmra.mxu1 %v6706_v32  ;;  %v1811_v5 = vmax.f32 %v1738_v25, 0.0 }
 0x281   : > { %2047 = vmatmul.bf16.gmra.mxu2 %v6831_v0  ;;  %v6884_v20 = vpack.c.bf16 %v2168_v29, %v2166_v49  ;;  %v5435_v49 = vld [vmem:[#allocation16 + $0x64] sm:$0xf0]  ;;  %v5172_v29 = vld [vmem:[#allocation16 + $0xe0] sm:$0xf] }
 0x282   : > { %2136 = vmatmul.bf16.gmra.mxu3 %v6831_v0  ;;  %v6887_v59 = vpack.c.bf16 %v2169_v56, %v2167_v8  ;;  %v5109_v56 = vor.u32 %v5435_v49, %v5108_v41 }
 0x284   : > { %v2008_v23 = vpop.f32.mrf.mxu2  ;;  %v1650_v1 = vpop.f32.mrf.mxu0  ;;  %3249 = vmatpush.bf16.msrb.mxu0 %v5109_v56 }
 0x285   : > { %v2097_v15 = vpop.f32.mrf.mxu3  ;;  %v1651_v6 = vadd.f32 %v1650_v1, %v6714_v7  ;;  %v1739_v40 = vpop.f32.mrf.mxu1  ;;  %v2009_v0 = vadd.f32 %v2008_v23, %v6730_v58 }
 0x286   : > { %v1740_v32 = vadd.f32 %v1739_v40, %v6717_v19  ;;  %v2098_v13 = vadd.f32 %v2097_v15, %v6733_v34  ;;  %v5173_v15 = vor.u32 %v5451_v4, %v5172_v29 }
 0x287   : > { %v1812_v28 = vmax.f32 %v1651_v6, 0.0  ;;  %v2170_v63 = vmax.f32 %v2009_v0, 0.0 }
 0x288   : > { %v1813_v57 = vmax.f32 %v1740_v32, 0.0  ;;  %v2171_v3 = vmax.f32 %v2098_v13, 0.0  ;;  %3338 = vmatpush.bf16.msrb.mxu1 %v5173_v15 }
 0x289   : > { %v6893_v11 = vpack.c.bf16 %v1812_v28, %v1810_v24 }
 0x28a   : > { %v6896_v38 = vpack.c.bf16 %v1813_v57, %v1811_v5 }
 0x28c   : > { %v2010_v47 = vpop.f32.mrf.mxu2  ;;  %v1653_v9 = vpop.f32.mrf.mxu0 }
 0x28d   : > { %v2011_v53 = vadd.f32 %v2010_v47, %v6730_v58  ;;  %v2099_v60 = vpop.f32.mrf.mxu3  ;;  %v1742_v62 = vpop.f32.mrf.mxu1  ;;  %v1654_v23 = vadd.f32 %v1653_v9, %v6714_v7 }
 0x28e   : > { %v2100_v54 = vadd.f32 %v2099_v60, %v6733_v34 }
 0x28f   : > { %v2172_v39 = vmax.f32 %v2011_v53, 0.0  ;;  %2378 = vmatmul.bf16.vlgmr.msra.gmra.mxu0 %v6735_v33  ;;  %v1743_v33 = vadd.f32 %v1742_v62, %v6717_v19  ;;  %v1814_v40 = vmax.f32 %v1654_v23, 0.0 }
 0x290   : > { %v2173_v43 = vmax.f32 %v2100_v54, 0.0  ;;  %2467 = vmatmul.bf16.vlgmr.msra.gmra.mxu1 %v6740_v52 }
 0x291   : > { %2720 = vmatmul.bf16.vlgmr.msra.gmra.mxu2 %v6746_v30  ;;  %v6904_v17 = vpack.c.bf16 %v2172_v39, %v2170_v63  ;;  %v1815_v24 = vmax.f32 %v1743_v33, 0.0 }
 0x292   : > { %2809 = vmatmul.bf16.vlgmr.msra.gmra.mxu3 %v6750_v44  ;;  %v6907_v8 = vpack.c.bf16 %v2173_v43, %v2171_v3 }
 0x294   : > { %v2013_v25 = vpop.f32.mrf.mxu2  ;;  %v1655_v1 = vpop.f32.mrf.mxu0 }
 0x295   : > { %v2102_v52 = vpop.f32.mrf.mxu3  ;;  %v1656_v30 = vadd.f32 %v1655_v1, %v6714_v7  ;;  %v1744_v6 = vpop.f32.mrf.mxu1  ;;  %v2014_v57 = vadd.f32 %v2013_v25, %v6730_v58 }
 0x296   : > { %v1745_v44 = vadd.f32 %v1744_v6, %v6717_v19  ;;  %v2103_v13 = vadd.f32 %v2102_v52, %v6733_v34 }
 0x297   : > { %v1816_v32 = vmax.f32 %v1656_v30, 0.0  ;;  %v2174_v63 = vmax.f32 %v2014_v57, 0.0 }
 0x298   : > { %v1817_v28 = vmax.f32 %v1745_v44, 0.0  ;;  %v2175_v3 = vmax.f32 %v2103_v13, 0.0 }
 0x299   : > { %v6913_v5 = vpack.c.bf16 %v1816_v32, %v1814_v40 }
 0x29a   : > { %v6916_v0 = vpack.c.bf16 %v1817_v28, %v1815_v24 }
 0x29c   : > { %v2015_v47 = vpop.f32.mrf.mxu2  ;;  %v1658_v9 = vpop.f32.mrf.mxu0 }
 0x29d   : > { %v2016_v53 = vadd.f32 %v2015_v47, %v6730_v58  ;;  %v2104_v60 = vpop.f32.mrf.mxu3  ;;  %v1747_v62 = vpop.f32.mrf.mxu1  ;;  %v1659_v29 = vadd.f32 %v1658_v9, %v6714_v7 }
 0x29e   : > { %v2105_v54 = vadd.f32 %v2104_v60, %v6733_v34  ;;  %v1748_v4 = vadd.f32 %v1747_v62, %v6717_v19  ;;  %v5100_v62 = vld [vmem:[#allocation16 + $0x50] sm:$0xf] }
 0x29f   : > { %v2176_v39 = vmax.f32 %v2016_v53, 0.0  ;;  %2383 = vmatmul.bf16.gmra.mxu0 %v6761_v22  ;;  %v1818_v33 = vmax.f32 %v1659_v29, 0.0  ;;  %v5449_v29 = vld [vmem:[#allocation16 + $0xd4] sm:$0xf0] }
 0x2a0   : > { %v2177_v43 = vmax.f32 %v2105_v54, 0.0  ;;  %2472 = vmatmul.bf16.gmra.mxu1 %v6764_v16  ;;  %v1819_v52 = vmax.f32 %v1748_v4, 0.0 }
 0x2a1   : > { %2725 = vmatmul.bf16.gmra.mxu2 %v6772_v37  ;;  %v6924_v41 = vpack.c.bf16 %v2176_v39, %v2174_v63  ;;  %v5433_v63 = vld [vmem:[#allocation16 + $0x54] sm:$0xf0]  ;;  %v5164_v39 = vld [vmem:[#allocation16 + $0xd0] sm:$0xf] }
 0x2a2   : > { %2814 = vmatmul.bf16.gmra.mxu3 %v6775_v10  ;;  %v6927_v49 = vpack.c.bf16 %v2177_v43, %v2175_v3  ;;  %v5101_v43 = vor.u32 %v5433_v63, %v5100_v62 }
 0x2a4   : > { %v2018_v56 = vpop.f32.mrf.mxu2  ;;  %v1660_v25 = vpop.f32.mrf.mxu0  ;;  %3250 = vmatpush.bf16.msrb.mxu0 %v5101_v43 }
 0x2a5   : > { %v2107_v23 = vpop.f32.mrf.mxu3  ;;  %v1661_v15 = vadd.f32 %v1660_v25, %v6714_v7  ;;  %v1749_v22 = vpop.f32.mrf.mxu1  ;;  %v2019_v10 = vadd.f32 %v2018_v56, %v6730_v58 }
 0x2a6   : > { %v1750_v16 = vadd.f32 %v1749_v22, %v6717_v19  ;;  %v2108_v44 = vadd.f32 %v2107_v23, %v6733_v34  ;;  %v5165_v23 = vor.u32 %v5449_v29, %v5164_v39 }
 0x2a7   : > { %v1820_v37 = vmax.f32 %v1661_v15, 0.0  ;;  %v2178_v47 = vmax.f32 %v2019_v10, 0.0 }
 0x2a8   : > { %v1821_v1 = vmax.f32 %v1750_v16, 0.0  ;;  %v2179_v60 = vmax.f32 %v2108_v44, 0.0  ;;  %3339 = vmatpush.bf16.msrb.mxu1 %v5165_v23 }
 0x2a9   : > { %v6933_v30 = vpack.c.bf16 %v1820_v37, %v1818_v33 }
 0x2aa   : > { %v6936_v6 = vpack.c.bf16 %v1821_v1, %v1819_v52 }
 0x2ac   : > { %v2020_v40 = vpop.f32.mrf.mxu2  ;;  %v1663_v28 = vpop.f32.mrf.mxu0 }
 0x2ad   : > { %v2021_v32 = vadd.f32 %v2020_v40, %v6730_v58  ;;  %v2109_v24 = vpop.f32.mrf.mxu3  ;;  %v1752_v13 = vpop.f32.mrf.mxu1  ;;  %v1664_v56 = vadd.f32 %v1663_v28, %v6714_v7 }
 0x2ae   : > { %v2110_v57 = vadd.f32 %v2109_v24, %v6733_v34 }
 0x2af   : > { %v2180_v53 = vmax.f32 %v2021_v32, 0.0  ;;  %2388 = vmatmul.bf16.gmra.mxu0 %v6785_v61  ;;  %v1753_v61 = vadd.f32 %v1752_v13, %v6717_v19  ;;  %v1822_v22 = vmax.f32 %v1664_v56, 0.0 }
 0x2b0   : > { %v2181_v9 = vmax.f32 %v2110_v57, 0.0  ;;  %2477 = vmatmul.bf16.gmra.mxu1 %v6788_v27 }
 0x2b1   : > { %2730 = vmatmul.bf16.gmra.mxu2 %v6796_v31  ;;  %v6944_v54 = vpack.c.bf16 %v2180_v53, %v2178_v47  ;;  %v1823_v33 = vmax.f32 %v1753_v61, 0.0 }
 0x2b2   : > { %2819 = vmatmul.bf16.gmra.mxu3 %v6799_v55  ;;  %v6947_v3 = vpack.c.bf16 %v2181_v9, %v2179_v60 }
 0x2b4   : > { %v2023_v4 = vpop.f32.mrf.mxu2  ;;  %v1665_v25 = vpop.f32.mrf.mxu0 }
 0x2b5   : > { %v2112_v27 = vpop.f32.mrf.mxu3  ;;  %v1666_v31 = vadd.f32 %v1665_v25, %v6714_v7  ;;  %v1754_v15 = vpop.f32.mrf.mxu1  ;;  %v2024_v1 = vadd.f32 %v2023_v4, %v6730_v58 }
 0x2b6   : > { %v1755_v55 = vadd.f32 %v1754_v15, %v6717_v19  ;;  %v2113_v44 = vadd.f32 %v2112_v27, %v6733_v34 }
 0x2b7   : > { %v1824_v16 = vmax.f32 %v1666_v31, 0.0  ;;  %v2182_v47 = vmax.f32 %v2024_v1, 0.0 }
 0x2b8   : > { %v1825_v37 = vmax.f32 %v1755_v55, 0.0  ;;  %v2183_v60 = vmax.f32 %v2113_v44, 0.0 }
 0x2b9   : > { %v6953_v52 = vpack.c.bf16 %v1824_v16, %v1822_v22 }
 0x2ba   : > { %v6956_v10 = vpack.c.bf16 %v1825_v37, %v1823_v33 }
 0x2bc   : > { %v2025_v40 = vpop.f32.mrf.mxu2  ;;  %v1668_v28 = vpop.f32.mrf.mxu0 }
 0x2bd   : > { %v2026_v32 = vadd.f32 %v2025_v40, %v6730_v58  ;;  %v2114_v24 = vpop.f32.mrf.mxu3  ;;  %v1757_v13 = vpop.f32.mrf.mxu1  ;;  %v1669_v39 = vadd.f32 %v1668_v28, %v6714_v7 }
 0x2be   : > { %v2115_v57 = vadd.f32 %v2114_v24, %v6733_v34  ;;  %v1758_v29 = vadd.f32 %v1757_v13, %v6717_v19  ;;  %v5092_v13 = vld [vmem:[#allocation16 + $0x40] sm:$0xf] }
 0x2bf   : > { %v2184_v53 = vmax.f32 %v2026_v32, 0.0  ;;  %2393 = vmatmul.bf16.gmra.mxu0 %v6809_v46  ;;  %v1826_v61 = vmax.f32 %v1669_v39, 0.0  ;;  %v5447_v39 = vld [vmem:[#allocation16 + $0xc4] sm:$0xf0] }
 0x2c0   : > { %v2185_v9 = vmax.f32 %v2115_v57, 0.0  ;;  %2482 = vmatmul.bf16.gmra.mxu1 %v6812_v21  ;;  %v1827_v27 = vmax.f32 %v1758_v29, 0.0 }
 0x2c1   : > { %2735 = vmatmul.bf16.gmra.mxu2 %v6820_v2  ;;  %v6964_v62 = vpack.c.bf16 %v2184_v53, %v2182_v47  ;;  %v5431_v47 = vld [vmem:[#allocation16 + $0x44] sm:$0xf0]  ;;  %v5156_v53 = vld [vmem:[#allocation16 + $0xc0] sm:$0xf] }
 0x2c2   : > { %2824 = vmatmul.bf16.gmra.mxu3 %v6823_v45  ;;  %v6967_v63 = vpack.c.bf16 %v2185_v9, %v2183_v60  ;;  %v5093_v9 = vor.u32 %v5431_v47, %v5092_v13  ;;  %v5436_v13 = vld [vmem:[#allocation16 + $0x74] sm:$0xf]  ;;  %v5118_v47 = vld [vmem:[#allocation16 + $0x78] sm:$0xf0] }
 0x2c4   : > { %v2028_v43 = vpop.f32.mrf.mxu2  ;;  %v1670_v4 = vpop.f32.mrf.mxu0  ;;  %3251 = vmatpush.bf16.msrb.mxu0 %v5093_v9  ;;  %v5121_v9 = vor.u32 %v5436_v13, %v5118_v47  ;;  %v5084_v47 = vld [vmem:[#allocation16 + $0x30] sm:$0xf] }
 0x2c5   : > { %v2117_v56 = vpop.f32.mrf.mxu3  ;;  %v1671_v23 = vadd.f32 %v1670_v4, %v6714_v7  ;;  %v1759_v46 = vpop.f32.mrf.mxu1  ;;  %v2029_v45 = vadd.f32 %v2028_v43, %v6730_v58 }
 0x2c6   : > { %v1760_v21 = vadd.f32 %v1759_v46, %v6717_v19  ;;  %v2118_v55 = vadd.f32 %v2117_v56, %v6733_v34  ;;  %v5157_v56 = vor.u32 %v5447_v39, %v5156_v53  ;;  %v5452_v39 = vld [vmem:[#allocation16 + $0xf4] sm:$0xf]  ;;  %3426 = vmatpush.bf16.msrb.mxu2 %v5121_v9  ;;  %v5429_v9 = vld [vmem:[#allocation16 + $0x34] sm:$0xf0] }
 0x2c7   : > { %v1828_v2 = vmax.f32 %v1671_v23, 0.0  ;;  %v2186_v40 = vmax.f32 %v2029_v45, 0.0 }
 0x2c8   : > { %v1829_v25 = vmax.f32 %v1760_v21, 0.0  ;;  %v2187_v24 = vmax.f32 %v2118_v55, 0.0  ;;  %3340 = vmatpush.bf16.msrb.mxu1 %v5157_v56 }
 0x2c9   : > { %v6973_v31 = vpack.c.bf16 %v1828_v2, %v1826_v61 }
 0x2ca   : > { %v6976_v15 = vpack.c.bf16 %v1829_v25, %v1827_v27 }
 0x2cc   : > { %v2030_v22 = vpop.f32.mrf.mxu2  ;;  %v1673_v37 = vpop.f32.mrf.mxu0 }
 0x2cd   : > { %v2031_v16 = vadd.f32 %v2030_v22, %v6730_v58  ;;  %v2119_v33 = vpop.f32.mrf.mxu3  ;;  %v1762_v44 = vpop.f32.mrf.mxu1  ;;  %v1674_v43 = vadd.f32 %v1673_v37, %v6714_v7 }
 0x2ce   : > { %v2120_v1 = vadd.f32 %v2119_v33, %v6733_v34 }
 0x2cf   : > { %v2188_v32 = vmax.f32 %v2031_v16, 0.0  ;;  %2398 = vmatmul.bf16.gmra.mxu0 %v6833_v50  ;;  %v1763_v50 = vadd.f32 %v1762_v44, %v6717_v19  ;;  %v1830_v46 = vmax.f32 %v1674_v43, 0.0  ;;  %v5182_v43 = vld [vmem:[#allocation16 + $0xf8] sm:$0xf0] }
 0x2d0   : > { %v2189_v28 = vmax.f32 %v2120_v1, 0.0  ;;  %2487 = vmatmul.bf16.gmra.mxu1 %v6836_v26  ;;  %v5185_v56 = vor.u32 %v5452_v39, %v5182_v43  ;;  %v5148_v39 = vld [vmem:[#allocation16 + $0xb0] sm:$0xf] }
 0x2d1   : > { %2740 = vmatmul.bf16.gmra.mxu2 %v6844_v35  ;;  %v6984_v57 = vpack.c.bf16 %v2188_v32, %v2186_v40  ;;  %v1831_v61 = vmax.f32 %v1763_v50, 0.0 }
 0x2d2   : > { %2829 = vmatmul.bf16.gmra.mxu3 %v6847_v42  ;;  %v6987_v60 = vpack.c.bf16 %v2189_v28, %v2187_v24 }
 0x2d3   : > { %3515 = vmatpush.bf16.msrb.mxu3 %v5185_v56  ;;  %v5085_v56 = vor.u32 %v5429_v9, %v5084_v47  ;;  %v5434_v9 = vld [vmem:[#allocation16 + $0x64] sm:$0xf] }
 0x2d4   : > { %v2033_v29 = vpop.f32.mrf.mxu2  ;;  %v1675_v4 = vpop.f32.mrf.mxu0 }
 0x2d5   : > { %v2122_v26 = vpop.f32.mrf.mxu3  ;;  %v1676_v35 = vadd.f32 %v1675_v4, %v6714_v7  ;;  %v1764_v23 = vpop.f32.mrf.mxu1  ;;  %v2034_v25 = vadd.f32 %v2033_v29, %v6730_v58  ;;  %3252 = vmatpush.bf16.msrb.mxu0 %v5085_v56  ;;  %v5450_v56 = vld [vmem:[#allocation16 + $0xe4] sm:$0xf] }
 0x2d6   : > { %v1765_v42 = vadd.f32 %v1764_v23, %v6717_v19  ;;  %v2123_v55 = vadd.f32 %v2122_v26, %v6733_v34 }
 0x2d7   : > { %v1832_v21 = vmax.f32 %v1676_v35, 0.0  ;;  %v2190_v40 = vmax.f32 %v2034_v25, 0.0 }
 0x2d8   : > { %v1833_v2 = vmax.f32 %v1765_v42, 0.0  ;;  %v2191_v24 = vmax.f32 %v2123_v55, 0.0 }
 0x2d9   : > { %v6993_v27 = vpack.c.bf16 %v1832_v21, %v1830_v46 }
 0x2da   : > { %v6996_v45 = vpack.c.bf16 %v1833_v2, %v1831_v61 }
 0x2dc   : > { %v2035_v22 = vpop.f32.mrf.mxu2  ;;  %v1678_v37 = vpop.f32.mrf.mxu0 }
 0x2dd   : > { %v2036_v16 = vadd.f32 %v2035_v22, %v6730_v58  ;;  %v2124_v33 = vpop.f32.mrf.mxu3  ;;  %v1767_v44 = vpop.f32.mrf.mxu1  ;;  %v1679_v50 = vadd.f32 %v1678_v37, %v6714_v7 }
 0x2de   : > { %v2125_v1 = vadd.f32 %v2124_v33, %v6733_v34 }
 0x2df   : > { %v2192_v32 = vmax.f32 %v2036_v16, 0.0  ;;  %2403 = vmatmul.bf16.gmra.mxu0 %v6853_v51  ;;  %v1768_v51 = vadd.f32 %v1767_v44, %v6717_v19  ;;  %v1834_v23 = vmax.f32 %v1679_v50, 0.0  ;;  %v5445_v50 = vld [vmem:[#allocation16 + $0xb4] sm:$0xf0] }
 0x2e0   : > { %v2193_v28 = vmax.f32 %v2125_v1, 0.0  ;;  %2492 = vmatmul.bf16.gmra.mxu1 %v6856_v48 }
 0x2e1   : > { %2745 = vmatmul.bf16.gmra.mxu2 %v6864_v14  ;;  %v7004_v53 = vpack.c.bf16 %v2192_v32, %v2190_v40  ;;  %v1835_v46 = vmax.f32 %v1768_v51, 0.0 }
 0x2e2   : > { %2834 = vmatmul.bf16.gmra.mxu3 %v6867_v36  ;;  %v7007_v29 = vpack.c.bf16 %v2193_v28, %v2191_v24 }
 0x2e4   : > { %v2038_v26 = vpop.f32.mrf.mxu2  ;;  %v1680_v14 = vpop.f32.mrf.mxu0 }
 0x2e5   : > { %v2127_v48 = vpop.f32.mrf.mxu3  ;;  %v1681_v4 = vadd.f32 %v1680_v14, %v6714_v7  ;;  %v1769_v35 = vpop.f32.mrf.mxu1  ;;  %v2039_v2 = vadd.f32 %v2038_v26, %v6730_v58 }
 0x2e6   : > { %v1770_v36 = vadd.f32 %v1769_v35, %v6717_v19  ;;  %v2128_v55 = vadd.f32 %v2127_v48, %v6733_v34  ;;  %v5149_v48 = vor.u32 %v5445_v50, %v5148_v39  ;;  %v5110_v39 = vld [vmem:[#allocation16 + $0x68] sm:$0xf0] }
 0x2e7   : > { %v1836_v42 = vmax.f32 %v1681_v4, 0.0  ;;  %v2194_v40 = vmax.f32 %v2039_v2, 0.0 }
 0x2e8   : > { %v1837_v21 = vmax.f32 %v1770_v36, 0.0  ;;  %v2195_v24 = vmax.f32 %v2128_v55, 0.0  ;;  %3341 = vmatpush.bf16.msrb.mxu1 %v5149_v48 }
 0x2e9   : > { %v7013_v61 = vpack.c.bf16 %v1836_v42, %v1834_v23 }
 0x2ea   : > { %v7016_v25 = vpack.c.bf16 %v1837_v21, %v1835_v46 }
 0x2ec   : > { %v2040_v22 = vpop.f32.mrf.mxu2  ;;  %v1683_v37 = vpop.f32.mrf.mxu0 }
 0x2ed   : > { %v2041_v16 = vadd.f32 %v2040_v22, %v6730_v58  ;;  %v2129_v33 = vpop.f32.mrf.mxu3  ;;  %v1772_v44 = vpop.f32.mrf.mxu1  ;;  %v1684_v26 = vadd.f32 %v1683_v37, %v6714_v7 }
 0x2ee   : > { %v2130_v1 = vadd.f32 %v2129_v33, %v6733_v34 }
 0x2ef   : > { %v2196_v32 = vmax.f32 %v2041_v16, 0.0  ;;  %2408 = vmatmul.bf16.gmra.mxu0 %v6873_v12  ;;  %v1773_v12 = vadd.f32 %v1772_v44, %v6717_v19  ;;  %v1838_v35 = vmax.f32 %v1684_v26, 0.0  ;;  %v5113_v26 = vor.u32 %v5434_v9, %v5110_v39  ;;  %v5076_v39 = vld [vmem:[#allocation16 + $0x20] sm:$0xf] }
 0x2f0   : > { %v2197_v28 = vmax.f32 %v2130_v1, 0.0  ;;  %2497 = vmatmul.bf16.gmra.mxu1 %v6876_v18 }
 0x2f1   : > { %2750 = vmatmul.bf16.gmra.mxu2 %v6884_v20  ;;  %v7024_v13 = vpack.c.bf16 %v2196_v32, %v2194_v40  ;;  %v1839_v23 = vmax.f32 %v1773_v12, 0.0 }
 0x2f2   : > { %2839 = vmatmul.bf16.gmra.mxu3 %v6887_v59  ;;  %v7027_v43 = vpack.c.bf16 %v2197_v28, %v2195_v24  ;;  %3427 = vmatpush.bf16.msrb.mxu2 %v5113_v26  ;;  %v5443_v26 = vld [vmem:[#allocation16 + $0xa4] sm:$0xf0] }
 0x2f4   : > { %v2043_v51 = vpop.f32.mrf.mxu2  ;;  %v1685_v14 = vpop.f32.mrf.mxu0 }
 0x2f5   : > { %v2132_v18 = vpop.f32.mrf.mxu3  ;;  %v1686_v20 = vadd.f32 %v1685_v14, %v6714_v7  ;;  %v1774_v4 = vpop.f32.mrf.mxu1  ;;  %v2044_v21 = vadd.f32 %v2043_v51, %v6730_v58  ;;  %v5174_v51 = vld [vmem:[#allocation16 + $0xe8] sm:$0xf0] }
 0x2f6   : > { %v1775_v59 = vadd.f32 %v1774_v4, %v6717_v19  ;;  %v2133_v55 = vadd.f32 %v2132_v18, %v6733_v34  ;;  %v5177_v18 = vor.u32 %v5450_v56, %v5174_v51  ;;  %v5427_v56 = vld [vmem:[#allocation16 + $0x24] sm:$0xf0] }
 0x2f7   : > { %v1840_v36 = vmax.f32 %v1686_v20, 0.0  ;;  %v2198_v40 = vmax.f32 %v2044_v21, 0.0 }
 0x2f8   : > { %v1841_v42 = vmax.f32 %v1775_v59, 0.0  ;;  %v2199_v24 = vmax.f32 %v2133_v55, 0.0  ;;  %3516 = vmatpush.bf16.msrb.mxu3 %v5177_v18 }
 0x2f9   : > { %v7033_v46 = vpack.c.bf16 %v1840_v36, %v1838_v35 }
 0x2fa   : > { %v7036_v2 = vpack.c.bf16 %v1841_v42, %v1839_v23  ;;  %v7053_v23 = vld [vmem:[#allocation11] ss:$0 sm:$0xff] }
 0x2fc   : > { %v2045_v22 = vpop.f32.mrf.mxu2  ;;  %v1688_v37 = vpop.f32.mrf.mxu0 }
 0x2fd   : > { %v2046_v16 = vadd.f32 %v2045_v22, %v6730_v58  ;;  %v2134_v33 = vpop.f32.mrf.mxu3  ;;  %v1777_v44 = vpop.f32.mrf.mxu1  ;;  %v1689_v48 = vadd.f32 %v1688_v37, %v6714_v7 }
 0x2fe   : > { %v2135_v1 = vadd.f32 %v2134_v33, %v6733_v34 }
 0x2ff   : > { %v2200_v32 = vmax.f32 %v2046_v16, 0.0  ;;  %2413 = vmatmul.bf16.gmra.mxu0 %v6893_v11  ;;  %v1778_v11 = vadd.f32 %v1777_v44, %v6717_v19  ;;  %v1842_v4 = vmax.f32 %v1689_v48, 0.0 }
 0x300   : > { %v2201_v28 = vmax.f32 %v2135_v1, 0.0  ;;  %2502 = vmatmul.bf16.gmra.mxu1 %v6896_v38 }
 0x301   : > { %2755 = vmatmul.bf16.gmra.mxu2 %v6904_v17  ;;  %v7044_v47 = vpack.c.bf16 %v2200_v32, %v2198_v40  ;;  %v1843_v35 = vmax.f32 %v1778_v11, 0.0 }
 0x302   : > { %2844 = vmatmul.bf16.gmra.mxu3 %v6907_v8  ;;  %v7047_v50 = vpack.c.bf16 %v2201_v28, %v2199_v24 }
 0x304   : > { %v2048_v12 = vpop.f32.mrf.mxu2  ;;  %v1690_v14 = vpop.f32.mrf.mxu0 }
 0x305   : > { %v2137_v38 = vpop.f32.mrf.mxu3  ;;  %v1691_v17 = vadd.f32 %v1690_v14, %v6714_v7  ;;  %v1779_v20 = vpop.f32.mrf.mxu1  ;;  %v2049_v21 = vadd.f32 %v2048_v12, %v6730_v58 }
 0x306   : > { %v1780_v8 = vadd.f32 %v1779_v20, %v6717_v19  ;;  %v2138_v22 = vadd.f32 %v2137_v38, %v6733_v34 }
 0x307   : > { %v1844_v59 = vmax.f32 %v1691_v17, 0.0  ;;  %v2202_v40 = vmax.f32 %v2049_v21, 0.0 }
 0x308   : > { %v1845_v36 = vmax.f32 %v1780_v8, 0.0  ;;  %v2203_v24 = vmax.f32 %v2138_v22, 0.0 }
 0x309   : > { %v7055_v42 = vpack.c.bf16 %v1844_v59, %v1842_v4 }
 0x30a   : > { %v7058_v55 = vpack.c.bf16 %v1845_v36, %v1843_v35 }
 0x30c   : > { %v2050_v16 = vpop.f32.mrf.mxu2  ;;  %v2379_v19 = vpop.f32.mrf.mxu0 }
 0x30d   : > { %v2051_v7 = vadd.f32 %v2050_v16, %v6730_v58  ;;  %v2139_v33 = vpop.f32.mrf.mxu3  ;;  %v2380_v1 = vadd.f32 %v7053_v23, %v2379_v19  ;;  %v2468_v44 = vpop.f32.mrf.mxu1  ;;  %v7070_v58 = vld [vmem:[%s7825_s10] ss:$0 sm:$0xff] }
 0x30e   : > { %v2140_v37 = vadd.f32 %v2139_v33, %v6733_v34  ;;  %v5432_v33 = vld [vmem:[#allocation16 + $0x54] sm:$0xf]  ;;  %v5102_v19 = vld [vmem:[#allocation16 + $0x58] sm:$0xf0] }
 0x30f   : > { %v2204_v32 = vmax.f32 %v2051_v7, 0.0  ;;  %v2469_v9 = vadd.f32 %v2468_v44, %v2380_v1  ;;  %2418 = vmatmul.bf16.gmra.mxu0 %v6913_v5  ;;  %v5140_v5 = vld [vmem:[#allocation16 + $0xa0] sm:$0xf]  ;;  %v5448_v1 = vld [vmem:[#allocation16 + $0xd4] sm:$0xf] }
 0x310   : > { %v2205_v28 = vmax.f32 %v2140_v37, 0.0  ;;  %2507 = vmatmul.bf16.gmra.mxu1 %v6916_v0  ;;  %v5141_v48 = vor.u32 %v5443_v26, %v5140_v5  ;;  %v5105_v37 = vor.u32 %v5432_v33, %v5102_v19  ;;  %v5166_v44 = vld [vmem:[#allocation16 + $0xd8] sm:$0xf0] }
 0x311   : > { %2760 = vmatmul.bf16.gmra.mxu2 %v6924_v41  ;;  %v7072_v34 = vpack.c.bf16 %v2204_v32, %v2202_v40  ;;  %2890 = vst [vmem:[%s7075_s9] sm:$0xff] %v2469_v9  ;;  %v5077_v41 = vor.u32 %v5427_v56, %v5076_v39  ;;  %v5169_v32 = vor.u32 %v5448_v1, %v5166_v44 }
 0x312   : > { %2849 = vmatmul.bf16.gmra.mxu3 %v6927_v49  ;;  %v7079_v0 = vpack.c.bf16 %v2205_v28, %v2203_v24  ;;  %3342 = vmatpush.bf16.msrb.mxu1 %v5141_v48 }
 0x313   : > { %3253 = vmatpush.bf16.msrb.mxu0 %v5077_v41  ;;  %3428 = vmatpush.bf16.msrb.mxu2 %v5105_v37 }
 0x314   : > { %v2721_v51 = vpop.f32.mrf.mxu2  ;;  %v2381_v11 = vpop.f32.mrf.mxu0  ;;  %3517 = vmatpush.bf16.msrb.mxu3 %v5169_v32 }
 0x315   : > { %v2722_v12 = vadd.f32 %v7070_v58, %v2721_v51  ;;  %v2810_v18 = vpop.f32.mrf.mxu3  ;;  %v2382_v38 = vadd.f32 %v7053_v23, %v2381_v11  ;;  %v2470_v14 = vpop.f32.mrf.mxu1 }
 0x317   : > { %v2811_v49 = vadd.f32 %v2810_v18, %v2722_v12  ;;  %v2471_v17 = vadd.f32 %v2470_v14, %v2382_v38  ;;  %v5068_v38 = vld [vmem:[#allocation16 + $0x10] sm:$0xf]  ;;  %v5425_v14 = vld [vmem:[#allocation16 + $0x14] sm:$0xf0] }
 0x319   : > { %2922 = vst [vmem:[%s7075_s9 + $0x8] sm:$0xff] %v2811_v49  ;;  %v7085_v20 = vpack.c.bf16 %v2471_v17, %v2469_v9 }
 0x31a   : > { %2891 = vst [vmem:[%s7075_s9 + $0x10] sm:$0xff] %v2471_v17  ;;  %v5132_v17 = vld [vmem:[#allocation16 + $0x90] sm:$0xf] }
 0x31c   : > { %v2723_v8 = vpop.f32.mrf.mxu2  ;;  %v2384_v35 = vpop.f32.mrf.mxu0 }
 0x31d   : > { %v2724_v4 = vadd.f32 %v7070_v58, %v2723_v8  ;;  %v2812_v59 = vpop.f32.mrf.mxu3  ;;  %v2385_v36 = vadd.f32 %v7053_v23, %v2384_v35  ;;  %v2473_v21 = vpop.f32.mrf.mxu1  ;;  %v5441_v8 = vld [vmem:[#allocation16 + $0x94] sm:$0xf0] }
 0x31f   : > { %v2813_v22 = vadd.f32 %v2812_v59, %v2724_v4  ;;  %v2474_v16 = vadd.f32 %v2473_v21, %v2385_v36  ;;  %2423 = vmatmul.bf16.gmra.mxu0 %v6933_v30  ;;  %v5133_v59 = vor.u32 %v5441_v8, %v5132_v17 }
 0x320   : > { %2512 = vmatmul.bf16.gmra.mxu1 %v6936_v6 }
 0x321   : > { %2923 = vst [vmem:[%s7075_s9 + $0x18] sm:$0xff] %v2813_v22  ;;  %2765 = vmatmul.bf16.gmra.mxu2 %v6944_v54  ;;  %v7093_v7 = vpack.c.bf16 %v2813_v22, %v2811_v49  ;;  %v5069_v49 = vor.u32 %v5425_v14, %v5068_v38  ;;  %3343 = vmatpush.bf16.msrb.mxu1 %v5133_v59  ;;  %v5060_v59 = vld [vmem:[#allocation16] sm:$0xf] }
 0x322   : > { %2892 = vst [vmem:[%s7075_s9 + $0x20] sm:$0xff] %v2474_v16  ;;  %2854 = vmatmul.bf16.gmra.mxu3 %v6947_v3 }
 0x323   : > { %3254 = vmatpush.bf16.msrb.mxu0 %v5069_v49 }
 0x324   : > { %v2726_v40 = vpop.f32.mrf.mxu2  ;;  %v2386_v6 = vpop.f32.mrf.mxu0 }
 0x325   : > { %v2727_v30 = vadd.f32 %v7070_v58, %v2726_v40  ;;  %v2815_v24 = vpop.f32.mrf.mxu3  ;;  %v2387_v54 = vadd.f32 %v7053_v23, %v2386_v6  ;;  %v2475_v28 = vpop.f32.mrf.mxu1  ;;  %v5094_v6 = vld [vmem:[#allocation16 + $0x48] sm:$0xf0] }
 0x327   : > { %v2816_v3 = vadd.f32 %v2815_v24, %v2727_v30  ;;  %v2476_v9 = vadd.f32 %v2475_v28, %v2387_v54  ;;  %v5430_v24 = vld [vmem:[#allocation16 + $0x44] sm:$0xf] }
 0x328   : > { %v5097_v54 = vor.u32 %v5430_v24, %v5094_v6  ;;  %v5446_v28 = vld [vmem:[#allocation16 + $0xc4] sm:$0xf] }
 0x329   : > { %2924 = vst [vmem:[%s7075_s9 + $0x28] sm:$0xff] %v2816_v3  ;;  %v7101_v39 = vpack.c.bf16 %v2476_v9, %v2474_v16 }
 0x32a   : > { %2893 = vst [vmem:[%s7075_s9 + $0x30] sm:$0xff] %v2476_v9  ;;  %3429 = vmatpush.bf16.msrb.mxu2 %v5097_v54 }
 0x32c   : > { %v2728_v56 = vpop.f32.mrf.mxu2  ;;  %v2389_v26 = vpop.f32.mrf.mxu0 }
 0x32d   : > { %v2729_v5 = vadd.f32 %v7070_v58, %v2728_v56  ;;  %v2817_v41 = vpop.f32.mrf.mxu3  ;;  %v2390_v51 = vadd.f32 %v7053_v23, %v2389_v26  ;;  %v2478_v48 = vpop.f32.mrf.mxu1 }
 0x32f   : > { %v2818_v12 = vadd.f32 %v2817_v41, %v2729_v5  ;;  %v2479_v18 = vadd.f32 %v2478_v48, %v2390_v51  ;;  %2428 = vmatmul.bf16.gmra.mxu0 %v6953_v52 }
 0x330   : > { %2517 = vmatmul.bf16.gmra.mxu1 %v6956_v10 }
 0x331   : > { %2925 = vst [vmem:[%s7075_s9 + $0x38] sm:$0xff] %v2818_v12  ;;  %2770 = vmatmul.bf16.gmra.mxu2 %v6964_v62  ;;  %v7109_v11 = vpack.c.bf16 %v2818_v12, %v2816_v3  ;;  %v5158_v3 = vld [vmem:[#allocation16 + $0xc8] sm:$0xf0] }
 0x332   : > { %2894 = vst [vmem:[%s7075_s9 + $0x40] sm:$0xff] %v2479_v18  ;;  %2859 = vmatmul.bf16.gmra.mxu3 %v6967_v63  ;;  %v5161_v56 = vor.u32 %v5446_v28, %v5158_v3  ;;  %v5428_v28 = vld [vmem:[#allocation16 + $0x34] sm:$0xf]  ;;  %v5086_v3 = vld [vmem:[#allocation16 + $0x38] sm:$0xf0] }
 0x334   : > { %v2731_v4 = vpop.f32.mrf.mxu2  ;;  %v2391_v10 = vpop.f32.mrf.mxu0  ;;  %3518 = vmatpush.bf16.msrb.mxu3 %v5161_v56  ;;  %v5089_v56 = vor.u32 %v5428_v28, %v5086_v3 }
 0x335   : > { %v2732_v52 = vadd.f32 %v7070_v58, %v2731_v4  ;;  %v2820_v35 = vpop.f32.mrf.mxu3  ;;  %v2392_v62 = vadd.f32 %v7053_v23, %v2391_v10  ;;  %v2480_v36 = vpop.f32.mrf.mxu1  ;;  %v5124_v10 = vld [vmem:[#allocation16 + $0x80] sm:$0xf] }
 0x336   : > { %3430 = vmatpush.bf16.msrb.mxu2 %v5089_v56 }
 0x337   : > { %v2821_v63 = vadd.f32 %v2820_v35, %v2732_v52  ;;  %v2481_v21 = vadd.f32 %v2480_v36, %v2392_v62  ;;  %v5423_v52 = vld [vmem:[#allocation16 + $0x4] sm:$0xf0] }
 0x338   : > { %v5061_v35 = vor.u32 %v5423_v52, %v5060_v59  ;;  %v5439_v62 = vld [vmem:[#allocation16 + $0x84] sm:$0xf0]  ;;  %v5440_v59 = vld [vmem:[#allocation16 + $0x94] sm:$0xf] }
 0x339   : > { %2926 = vst [vmem:[%s7075_s9 + $0x48] sm:$0xff] %v2821_v63  ;;  %v7117_v22 = vpack.c.bf16 %v2481_v21, %v2479_v18 }
 0x33a   : > { %2895 = vst [vmem:[%s7075_s9 + $0x50] sm:$0xff] %v2481_v21  ;;  %3255 = vmatpush.bf16.msrb.mxu0 %v5061_v35  ;;  %v5134_v35 = vld [vmem:[#allocation16 + $0x98] sm:$0xf0] }
 0x33c   : > { %v2733_v16 = vpop.f32.mrf.mxu2  ;;  %v2394_v37 = vpop.f32.mrf.mxu0 }
 0x33d   : > { %v2734_v33 = vadd.f32 %v7070_v58, %v2733_v16  ;;  %v2822_v19 = vpop.f32.mrf.mxu3  ;;  %v2395_v1 = vadd.f32 %v7053_v23, %v2394_v37  ;;  %v2483_v44 = vpop.f32.mrf.mxu1 }
 0x33f   : > { %v2823_v40 = vadd.f32 %v2822_v19, %v2734_v33  ;;  %v2484_v32 = vadd.f32 %v2483_v44, %v2395_v1  ;;  %2433 = vmatmul.bf16.gmra.mxu0 %v6973_v31 }
 0x340   : > { %2522 = vmatmul.bf16.gmra.mxu1 %v6976_v15 }
 0x341   : > { %2927 = vst [vmem:[%s7075_s9 + $0x58] sm:$0xff] %v2823_v40  ;;  %2775 = vmatmul.bf16.gmra.mxu2 %v6984_v57  ;;  %v7125_v30 = vpack.c.bf16 %v2823_v40, %v2821_v63  ;;  %v5125_v63 = vor.u32 %v5439_v62, %v5124_v10  ;;  %v5137_v10 = vor.u32 %v5440_v59, %v5134_v35 }
 0x342   : > { %2896 = vst [vmem:[%s7075_s9 + $0x60] sm:$0xff] %v2484_v32  ;;  %2864 = vmatmul.bf16.gmra.mxu3 %v6987_v60 }
 0x343   : > { %3344 = vmatpush.bf16.msrb.mxu1 %v5125_v63  ;;  %v5422_v63 = vld [vmem:[#allocation16 + $0x4] sm:$0xf] }
 0x344   : > { %v2736_v9 = vpop.f32.mrf.mxu2  ;;  %v2396_v15 = vpop.f32.mrf.mxu0 }
 0x345   : > { %v2737_v31 = vadd.f32 %v7070_v58, %v2736_v9  ;;  %v2825_v5 = vpop.f32.mrf.mxu3  ;;  %v2397_v57 = vadd.f32 %v7053_v23, %v2396_v15  ;;  %v2485_v41 = vpop.f32.mrf.mxu1  ;;  %v5444_v9 = vld [vmem:[#allocation16 + $0xb4] sm:$0xf] }
 0x347   : > { %v2826_v60 = vadd.f32 %v2825_v5, %v2737_v31  ;;  %v2486_v26 = vadd.f32 %v2485_v41, %v2397_v57  ;;  %v5150_v31 = vld [vmem:[#allocation16 + $0xb8] sm:$0xf0]  ;;  %v5078_v41 = vld [vmem:[#allocation16 + $0x28] sm:$0xf0] }
 0x348   : > { %v5153_v15 = vor.u32 %v5444_v9, %v5150_v31 }
 0x349   : > { %2928 = vst [vmem:[%s7075_s9 + $0x68] sm:$0xff] %v2826_v60  ;;  %v7133_v51 = vpack.c.bf16 %v2486_v26, %v2484_v32 }
 0x34a   : > { %2897 = vst [vmem:[%s7075_s9 + $0x70] sm:$0xff] %v2486_v26  ;;  %3519 = vmatpush.bf16.msrb.mxu3 %v5153_v15 }
 0x34c   : > { %v2738_v48 = vpop.f32.mrf.mxu2  ;;  %v2399_v38 = vpop.f32.mrf.mxu0 }
 0x34d   : > { %v2739_v12 = vadd.f32 %v7070_v58, %v2738_v48  ;;  %v2827_v18 = vpop.f32.mrf.mxu3  ;;  %v2400_v14 = vadd.f32 %v7053_v23, %v2399_v38  ;;  %v2488_v49 = vpop.f32.mrf.mxu1 }
 0x34f   : > { %v2828_v17 = vadd.f32 %v2827_v18, %v2739_v12  ;;  %v2489_v8 = vadd.f32 %v2488_v49, %v2400_v14  ;;  %2438 = vmatmul.bf16.gmra.mxu0 %v6993_v27  ;;  %v5142_v12 = vld [vmem:[#allocation16 + $0xa8] sm:$0xf0] }
 0x350   : > { %2527 = vmatmul.bf16.gmra.mxu1 %v6996_v45 }
 0x351   : > { %2929 = vst [vmem:[%s7075_s9 + $0x78] sm:$0xff] %v2828_v17  ;;  %2780 = vmatmul.bf16.gmra.mxu2 %v7004_v53  ;;  %v7141_v4 = vpack.c.bf16 %v2828_v17, %v2826_v60  ;;  %v5442_v60 = vld [vmem:[#allocation16 + $0xa4] sm:$0xf]  ;;  %v5424_v17 = vld [vmem:[#allocation16 + $0x14] sm:$0xf] }
 0x352   : > { %2898 = vst [vmem:[%s7075_s9 + $0x80] sm:$0xff] %v2489_v8  ;;  %2869 = vmatmul.bf16.gmra.mxu3 %v7007_v29  ;;  %v5145_v14 = vor.u32 %v5442_v60, %v5142_v12 }
 0x354   : > { %v2741_v36 = vpop.f32.mrf.mxu2  ;;  %v2401_v45 = vpop.f32.mrf.mxu0  ;;  %3520 = vmatpush.bf16.msrb.mxu3 %v5145_v14 }
 0x355   : > { %v2742_v27 = vadd.f32 %v7070_v58, %v2741_v36  ;;  %v2830_v21 = vpop.f32.mrf.mxu3  ;;  %v2402_v53 = vadd.f32 %v7053_v23, %v2401_v45  ;;  %v2490_v16 = vpop.f32.mrf.mxu1 }
 0x357   : > { %v2831_v33 = vadd.f32 %v2830_v21, %v2742_v27  ;;  %v2491_v29 = vadd.f32 %v2490_v16, %v2402_v53  ;;  %v5062_v27 = vld [vmem:[#allocation16 + $0x8] sm:$0xf0]  ;;  %v5438_v21 = vld [vmem:[#allocation16 + $0x84] sm:$0xf] }
 0x358   : > { %3521 = vmatpush.bf16.msrb.mxu3 %v5137_v10 }
 0x359   : > { %2930 = vst [vmem:[%s7075_s9 + $0x88] sm:$0xff] %v2831_v33  ;;  %v7149_v19 = vpack.c.bf16 %v2491_v29, %v2489_v8  ;;  %v5070_v8 = vld [vmem:[#allocation16 + $0x18] sm:$0xf0] }
 0x35a   : > { %2899 = vst [vmem:[%s7075_s9 + $0x90] sm:$0xff] %v2491_v29  ;;  %v5073_v52 = vor.u32 %v5424_v17, %v5070_v8  ;;  %v5126_v29 = vld [vmem:[#allocation16 + $0x88] sm:$0xf0] }
 0x35c   : > { %v2743_v37 = vpop.f32.mrf.mxu2  ;;  %v2404_v40 = vpop.f32.mrf.mxu0 }
 0x35d   : > { %v2744_v1 = vadd.f32 %v7070_v58, %v2743_v37  ;;  %v2832_v44 = vpop.f32.mrf.mxu3  ;;  %v2405_v32 = vadd.f32 %v7053_v23, %v2404_v40  ;;  %v2493_v24 = vpop.f32.mrf.mxu1 }
 0x35f   : > { %v2833_v6 = vadd.f32 %v2832_v44, %v2744_v1  ;;  %v2494_v54 = vadd.f32 %v2493_v24, %v2405_v32  ;;  %2443 = vmatmul.bf16.gmra.mxu0 %v7013_v61  ;;  %v5426_v61 = vld [vmem:[#allocation16 + $0x24] sm:$0xf]  ;;  %v5129_v44 = vor.u32 %v5438_v21, %v5126_v29  ;;  %v5468_v21 = vld [vmem:[#allocation17 + $0x70] sm:$0xff] }
 0x360   : > { %2532 = vmatmul.bf16.gmra.mxu1 %v7016_v25 }
 0x361   : > { %2931 = vst [vmem:[%s7075_s9 + $0x98] sm:$0xff] %v2833_v6  ;;  %2785 = vmatmul.bf16.gmra.mxu2 %v7024_v13  ;;  %v7157_v5 = vpack.c.bf16 %v2833_v6, %v2831_v33  ;;  %v5081_v13 = vor.u32 %v5426_v61, %v5078_v41  ;;  %v5065_v33 = vor.u32 %v5422_v63, %v5062_v27  ;;  %v5461_v6 = vld [vmem:[#allocation17 + $0x38] sm:$0xff]  ;;  %v5460_v27 = vld [vmem:[#allocation17 + $0x30] sm:$0xff] }
 0x362   : > { %2900 = vst [vmem:[%s7075_s9 + $0xa0] sm:$0xff] %v2494_v54  ;;  %2874 = vmatmul.bf16.gmra.mxu3 %v7027_v43  ;;  %3832 = vmatpush.bf16.msra.mxu0 %v5461_v6 }
 0x363   : > { %3431 = vmatpush.bf16.msrb.mxu2 %v5081_v13  ;;  %3522 = vmatpush.bf16.msrb.mxu3 %v5129_v44 }
 0x364   : > { %v2746_v57 = vpop.f32.mrf.mxu2  ;;  %v2406_v48 = vpop.f32.mrf.mxu0 }
 0x365   : > { %v2747_v26 = vadd.f32 %v7070_v58, %v2746_v57  ;;  %v2835_v25 = vpop.f32.mrf.mxu3  ;;  %v2407_v18 = vadd.f32 %v7053_v23, %v2406_v48  ;;  %v2495_v38 = vpop.f32.mrf.mxu1 }
 0x366   : > { %3833 = vmatpush.bf16.msra.mxu0 %v5460_v27 }
 0x367   : > { %v2836_v43 = vadd.f32 %v2835_v25, %v2747_v26  ;;  %v2496_v49 = vadd.f32 %v2495_v38, %v2407_v18  ;;  %3432 = vmatpush.bf16.msrb.mxu2 %v5073_v52 }
 0x369   : > { %2932 = vst [vmem:[%s7075_s9 + $0xa8] sm:$0xff] %v2836_v43  ;;  %v7165_v62 = vpack.c.bf16 %v2496_v49, %v2494_v54  ;;  %v5469_v54 = vld [vmem:[#allocation17 + $0x78] sm:$0xff] }
 0x36a   : > { %2901 = vst [vmem:[%s7075_s9 + $0xb0] sm:$0xff] %v2496_v49  ;;  %3921 = vmatpush.bf16.msra.mxu1 %v5469_v54 }
 0x36b   : > { %3433 = vmatpush.bf16.msrb.mxu2 %v5065_v33 }
 0x36c   : > { %v2748_v36 = vpop.f32.mrf.mxu2  ;;  %v2409_v16 = vpop.f32.mrf.mxu0 }
 0x36d   : > { %v2749_v45 = vadd.f32 %v7070_v58, %v2748_v36  ;;  %v2837_v53 = vpop.f32.mrf.mxu3  ;;  %v2410_v37 = vadd.f32 %v7053_v23, %v2409_v16  ;;  %v2498_v1 = vpop.f32.mrf.mxu1 }
 0x36e   : > { %3922 = vmatpush.bf16.msra.mxu1 %v5468_v21 }
 0x36f   : > { %v2838_v40 = vadd.f32 %v2837_v53, %v2749_v45  ;;  %v2499_v32 = vadd.f32 %v2498_v1, %v2410_v37  ;;  %2448 = vmatmul.bf16.gmra.mxu0 %v7033_v46 }
 0x370   : > { %2537 = vmatmul.bf16.gmra.mxu1 %v7036_v2 }
 0x371   : > { %2933 = vst [vmem:[%s7075_s9 + $0xb8] sm:$0xff] %v2838_v40  ;;  %2790 = vmatmul.bf16.gmra.mxu2 %v7044_v47  ;;  %v7173_v24 = vpack.c.bf16 %v2838_v40, %v2836_v43 }
 0x372   : > { %2902 = vst [vmem:[%s7075_s9 + $0xc0] sm:$0xff] %v2499_v32  ;;  %2879 = vmatmul.bf16.gmra.mxu3 %v7047_v50 }
 0x374   : > { %v2751_v28 = vpop.f32.mrf.mxu2  ;;  %v2411_v9 = vpop.f32.mrf.mxu0 }
 0x375   : > { %v2752_v46 = vadd.f32 %v7070_v58, %v2751_v28  ;;  %v2840_v3 = vpop.f32.mrf.mxu3  ;;  %v2412_v2 = vadd.f32 %v7053_v23, %v2411_v9  ;;  %v2500_v47 = vpop.f32.mrf.mxu1 }
 0x377   : > { %v2841_v56 = vadd.f32 %v2840_v3, %v2752_v46  ;;  %v2501_v31 = vadd.f32 %v2500_v47, %v2412_v2 }
 0x379   : > { %2934 = vst [vmem:[%s7075_s9 + $0xc8] sm:$0xff] %v2841_v56  ;;  %v7181_v15 = vpack.c.bf16 %v2501_v31, %v2499_v32 }
 0x37a   : > { %2903 = vst [vmem:[%s7075_s9 + $0xd0] sm:$0xff] %v2501_v31 }
 0x37c   : > { %v2753_v50 = vpop.f32.mrf.mxu2  ;;  %v2414_v41 = vpop.f32.mrf.mxu0 }
 0x37d   : > { %v2754_v57 = vadd.f32 %v7070_v58, %v2753_v50  ;;  %v2842_v61 = vpop.f32.mrf.mxu3  ;;  %v2415_v60 = vadd.f32 %v7053_v23, %v2414_v41  ;;  %v2503_v26 = vpop.f32.mrf.mxu1 }
 0x37f   : > { %v2843_v25 = vadd.f32 %v2842_v61, %v2754_v57  ;;  %v2504_v48 = vadd.f32 %v2503_v26, %v2415_v60  ;;  %2453 = vmatmul.bf16.gmra.mxu0 %v7055_v42 }
 0x380   : > { %2542 = vmatmul.bf16.gmra.mxu1 %v7058_v55 }
 0x381   : > { %2935 = vst [vmem:[%s7075_s9 + $0xd8] sm:$0xff] %v2843_v25  ;;  %2795 = vmatmul.bf16.gmra.mxu2 %v7072_v34  ;;  %v7189_v13 = vpack.c.bf16 %v2843_v25, %v2841_v56 }
 0x382   : > { %2904 = vst [vmem:[%s7075_s9 + $0xe0] sm:$0xff] %v2504_v48  ;;  %2884 = vmatmul.bf16.gmra.mxu3 %v7079_v0 }
 0x384   : > { %v2756_v12 = vpop.f32.mrf.mxu2  ;;  %v2416_v14 = vpop.f32.mrf.mxu0 }
 0x385   : > { %v2757_v18 = vadd.f32 %v7070_v58, %v2756_v12  ;;  %v2845_v38 = vpop.f32.mrf.mxu3  ;;  %v2417_v43 = vadd.f32 %v7053_v23, %v2416_v14  ;;  %v2505_v42 = vpop.f32.mrf.mxu1 }
 0x387   : > { %v2846_v49 = vadd.f32 %v2845_v38, %v2757_v18  ;;  %v2506_v17 = vadd.f32 %v2505_v42, %v2417_v43  ;;  %v5459_v43 = vld [vmem:[#allocation17 + $0x28] sm:$0xff] }
 0x388   : > { %v5467_v42 = vld [vmem:[#allocation17 + $0x68] sm:$0xff]  ;;  %3834 = vmatpush.bf16.msra.mxu0 %v5459_v43 }
 0x389   : > { %2936 = vst [vmem:[%s7075_s9 + $0xe8] sm:$0xff] %v2846_v49  ;;  %v7197_v55 = vpack.c.bf16 %v2506_v17, %v2504_v48  ;;  %3923 = vmatpush.bf16.msra.mxu1 %v5467_v42 }
 0x38a   : > { %2905 = vst [vmem:[%s7075_s9 + $0xf0] sm:$0xff] %v2506_v17 }
 0x38c   : > { %v2758_v34 = vpop.f32.mrf.mxu2  ;;  %v2419_v59 = vpop.f32.mrf.mxu0 }
 0x38d   : > { %v2759_v8 = vadd.f32 %v7070_v58, %v2758_v34  ;;  %v2847_v0 = vpop.f32.mrf.mxu3  ;;  %v2420_v52 = vadd.f32 %v7053_v23, %v2419_v59  ;;  %v2508_v35 = vpop.f32.mrf.mxu1 }
 0x38f   : > { %v2848_v10 = vadd.f32 %v2847_v0, %v2759_v8  ;;  %v2509_v36 = vadd.f32 %v2508_v35, %v2420_v52  ;;  %3256 = vmatmul.bf16.vlgmr.msrb.gmra.mxu0 %v7085_v20 }
 0x390   : > { %3345 = vmatmul.bf16.vlgmr.msrb.gmra.mxu1 %v7093_v7 }
 0x391   : > { %2937 = vst [vmem:[%s7075_s9 + $0xf8] sm:$0xff] %v2848_v10  ;;  %3434 = vmatmul.bf16.vlgmr.msrb.gmra.mxu2 %v7085_v20  ;;  %v7205_v63 = vpack.c.bf16 %v2848_v10, %v2846_v49 }
 0x392   : > { %2906 = vst [vmem:[%s7075_s9 + $0x100] sm:$0xff] %v2509_v36  ;;  %3523 = vmatmul.bf16.vlgmr.msrb.gmra.mxu3 %v7093_v7 }
 0x394   : > { %v2761_v45 = vpop.f32.mrf.mxu2  ;;  %v2421_v33 = vpop.f32.mrf.mxu0 }
 0x395   : > { %v2762_v53 = vadd.f32 %v7070_v58, %v2761_v45  ;;  %v2850_v16 = vpop.f32.mrf.mxu3  ;;  %v2422_v29 = vadd.f32 %v7053_v23, %v2421_v33  ;;  %v2510_v20 = vpop.f32.mrf.mxu1 }
 0x397   : > { %v2851_v37 = vadd.f32 %v2850_v16, %v2762_v53  ;;  %v2511_v1 = vadd.f32 %v2510_v20, %v2422_v29 }
 0x399   : > { %2938 = vst [vmem:[%s7075_s9 + $0x108] sm:$0xff] %v2851_v37  ;;  %v7213_v44 = vpack.c.bf16 %v2511_v1, %v2509_v36 }
 0x39a   : > { %2907 = vst [vmem:[%s7075_s9 + $0x110] sm:$0xff] %v2511_v1 }
 0x39c   : > { %v2763_v7 = vpop.f32.mrf.mxu2  ;;  %v2424_v6 = vpop.f32.mrf.mxu0 }
 0x39d   : > { %v2764_v40 = vadd.f32 %v7070_v58, %v2763_v7  ;;  %v2852_v32 = vpop.f32.mrf.mxu3  ;;  %v2425_v54 = vadd.f32 %v7053_v23, %v2424_v6  ;;  %v2513_v28 = vpop.f32.mrf.mxu1 }
 0x39f   : > { %v2853_v46 = vadd.f32 %v2852_v32, %v2764_v40  ;;  %v2514_v3 = vadd.f32 %v2513_v28, %v2425_v54  ;;  %3261 = vmatmul.bf16.gmra.mxu0 %v7101_v39 }
 0x3a0   : > { %3350 = vmatmul.bf16.gmra.mxu1 %v7109_v11 }
 0x3a1   : > { %2939 = vst [vmem:[%s7075_s9 + $0x118] sm:$0xff] %v2853_v46  ;;  %3439 = vmatmul.bf16.gmra.mxu2 %v7101_v39  ;;  %v7221_v9 = vpack.c.bf16 %v2853_v46, %v2851_v37 }
 0x3a2   : > { %2908 = vst [vmem:[%s7075_s9 + $0x120] sm:$0xff] %v2514_v3  ;;  %3528 = vmatmul.bf16.gmra.mxu3 %v7109_v11 }
 0x3a4   : > { %v2766_v2 = vpop.f32.mrf.mxu2  ;;  %v2426_v31 = vpop.f32.mrf.mxu0 }
 0x3a5   : > { %v2767_v47 = vadd.f32 %v7070_v58, %v2766_v2  ;;  %v2855_v56 = vpop.f32.mrf.mxu3  ;;  %v2427_v50 = vadd.f32 %v7053_v23, %v2426_v31  ;;  %v2515_v57 = vpop.f32.mrf.mxu1 }
 0x3a7   : > { %v2856_v61 = vadd.f32 %v2855_v56, %v2767_v47  ;;  %v2516_v41 = vadd.f32 %v2515_v57, %v2427_v50  ;;  %v5458_v50 = vld [vmem:[#allocation17 + $0x20] sm:$0xff] }
 0x3a8   : > { %v5466_v57 = vld [vmem:[#allocation17 + $0x60] sm:$0xff]  ;;  %3835 = vmatpush.bf16.msra.mxu0 %v5458_v50 }
 0x3a9   : > { %2940 = vst [vmem:[%s7075_s9 + $0x128] sm:$0xff] %v2856_v61  ;;  %v7229_v39 = vpack.c.bf16 %v2516_v41, %v2514_v3  ;;  %3924 = vmatpush.bf16.msra.mxu1 %v5466_v57 }
 0x3aa   : > { %2909 = vst [vmem:[%s7075_s9 + $0x130] sm:$0xff] %v2516_v41 }
 0x3ac   : > { %v2768_v60 = vpop.f32.mrf.mxu2  ;;  %v2429_v25 = vpop.f32.mrf.mxu0 }
 0x3ad   : > { %v2769_v26 = vadd.f32 %v7070_v58, %v2768_v60  ;;  %v2857_v11 = vpop.f32.mrf.mxu3  ;;  %v2430_v48 = vadd.f32 %v7053_v23, %v2429_v25  ;;  %v2518_v12 = vpop.f32.mrf.mxu1 }
 0x3af   : > { %v2858_v18 = vadd.f32 %v2857_v11, %v2769_v26  ;;  %v2519_v38 = vadd.f32 %v2518_v12, %v2430_v48  ;;  %3266 = vmatmul.bf16.gmra.mxu0 %v7117_v22 }
 0x3b0   : > { %3355 = vmatmul.bf16.gmra.mxu1 %v7125_v30 }
 0x3b1   : > { %2941 = vst [vmem:[%s7075_s9 + $0x138] sm:$0xff] %v2858_v18  ;;  %3444 = vmatmul.bf16.gmra.mxu2 %v7117_v22  ;;  %v7237_v14 = vpack.c.bf16 %v2858_v18, %v2856_v61 }
 0x3b2   : > { %2910 = vst [vmem:[%s7075_s9 + $0x140] sm:$0xff] %v2519_v38  ;;  %3533 = vmatmul.bf16.gmra.mxu3 %v7125_v30 }
 0x3b4   : > { %v2771_v49 = vpop.f32.mrf.mxu2  ;;  %v2431_v8 = vpop.f32.mrf.mxu0 }
 0x3b5   : > { %v2772_v17 = vadd.f32 %v7070_v58, %v2771_v49  ;;  %v2860_v34 = vpop.f32.mrf.mxu3  ;;  %v2432_v0 = vadd.f32 %v7053_v23, %v2431_v8  ;;  %v2520_v22 = vpop.f32.mrf.mxu1 }
 0x3b7   : > { %v2861_v59 = vadd.f32 %v2860_v34, %v2772_v17  ;;  %v2521_v52 = vadd.f32 %v2520_v22, %v2432_v0 }
 0x3b9   : > { %2942 = vst [vmem:[%s7075_s9 + $0x148] sm:$0xff] %v2861_v59  ;;  %v7245_v35 = vpack.c.bf16 %v2521_v52, %v2519_v38 }
 0x3ba   : > { %2911 = vst [vmem:[%s7075_s9 + $0x150] sm:$0xff] %v2521_v52 }
 0x3bc   : > { %v2773_v30 = vpop.f32.mrf.mxu2  ;;  %v2434_v27 = vpop.f32.mrf.mxu0 }
 0x3bd   : > { %v2774_v10 = vadd.f32 %v7070_v58, %v2773_v30  ;;  %v2862_v36 = vpop.f32.mrf.mxu3  ;;  %v2435_v21 = vadd.f32 %v7053_v23, %v2434_v27  ;;  %v2523_v45 = vpop.f32.mrf.mxu1 }
 0x3bf   : > { %v2863_v53 = vadd.f32 %v2862_v36, %v2774_v10  ;;  %v2524_v16 = vadd.f32 %v2523_v45, %v2435_v21  ;;  %3271 = vmatmul.bf16.gmra.mxu0 %v7133_v51 }
 0x3c0   : > { %3360 = vmatmul.bf16.gmra.mxu1 %v7141_v4 }
 0x3c1   : > { %2943 = vst [vmem:[%s7075_s9 + $0x158] sm:$0xff] %v2863_v53  ;;  %3449 = vmatmul.bf16.gmra.mxu2 %v7133_v51  ;;  %v7253_v33 = vpack.c.bf16 %v2863_v53, %v2861_v59 }
 0x3c2   : > { %2912 = vst [vmem:[%s7075_s9 + $0x160] sm:$0xff] %v2524_v16  ;;  %3538 = vmatmul.bf16.gmra.mxu3 %v7141_v4 }
 0x3c4   : > { %v2776_v29 = vpop.f32.mrf.mxu2  ;;  %v2436_v1 = vpop.f32.mrf.mxu0 }
 0x3c5   : > { %v2777_v20 = vadd.f32 %v7070_v58, %v2776_v29  ;;  %v2865_v37 = vpop.f32.mrf.mxu3  ;;  %v2437_v7 = vadd.f32 %v7053_v23, %v2436_v1  ;;  %v2525_v40 = vpop.f32.mrf.mxu1 }
 0x3c7   : > { %v2866_v32 = vadd.f32 %v2865_v37, %v2777_v20  ;;  %v2526_v6 = vadd.f32 %v2525_v40, %v2437_v7  ;;  %v5457_v7 = vld [vmem:[#allocation17 + $0x18] sm:$0xff] }
 0x3c8   : > { %v5465_v40 = vld [vmem:[#allocation17 + $0x58] sm:$0xff]  ;;  %3836 = vmatpush.bf16.msra.mxu0 %v5457_v7 }
 0x3c9   : > { %2944 = vst [vmem:[%s7075_s9 + $0x168] sm:$0xff] %v2866_v32  ;;  %v7261_v51 = vpack.c.bf16 %v2526_v6, %v2524_v16  ;;  %3925 = vmatpush.bf16.msra.mxu1 %v5465_v40 }
 0x3ca   : > { %2913 = vst [vmem:[%s7075_s9 + $0x170] sm:$0xff] %v2526_v6 }
 0x3cc   : > { %v2778_v54 = vpop.f32.mrf.mxu2  ;;  %v2439_v46 = vpop.f32.mrf.mxu0 }
 0x3cd   : > { %v2779_v28 = vadd.f32 %v7070_v58, %v2778_v54  ;;  %v2867_v4 = vpop.f32.mrf.mxu3  ;;  %v2440_v3 = vadd.f32 %v7053_v23, %v2439_v46  ;;  %v2528_v2 = vpop.f32.mrf.mxu1 }
 0x3cf   : > { %v2868_v47 = vadd.f32 %v2867_v4, %v2779_v28  ;;  %v2529_v56 = vadd.f32 %v2528_v2, %v2440_v3  ;;  %3276 = vmatmul.bf16.gmra.mxu0 %v7149_v19 }
 0x3d0   : > { %3365 = vmatmul.bf16.gmra.mxu1 %v7157_v5 }
 0x3d1   : > { %2945 = vst [vmem:[%s7075_s9 + $0x178] sm:$0xff] %v2868_v47  ;;  %3454 = vmatmul.bf16.gmra.mxu2 %v7149_v19  ;;  %v7269_v31 = vpack.c.bf16 %v2868_v47, %v2866_v32 }
 0x3d2   : > { %2914 = vst [vmem:[%s7075_s9 + $0x180] sm:$0xff] %v2529_v56  ;;  %3543 = vmatmul.bf16.gmra.mxu3 %v7157_v5 }
 0x3d4   : > { %v2781_v61 = vpop.f32.mrf.mxu2  ;;  %v2441_v26 = vpop.f32.mrf.mxu0 }
 0x3d5   : > { %v2782_v41 = vadd.f32 %v7070_v58, %v2781_v61  ;;  %v2870_v60 = vpop.f32.mrf.mxu3  ;;  %v2442_v11 = vadd.f32 %v7053_v23, %v2441_v26  ;;  %v2530_v19 = vpop.f32.mrf.mxu1 }
 0x3d7   : > { %v2871_v25 = vadd.f32 %v2870_v60, %v2782_v41  ;;  %v2531_v48 = vadd.f32 %v2530_v19, %v2442_v11  ;;  %v5308_v11 = vld [vmem:[#allocation19 + $0x70] sm:$0xf]  ;;  %v5485_v19 = vld [vmem:[#allocation19 + $0x74] sm:$0xf0] }
 0x3d9   : > { %2946 = vst [vmem:[%s7075_s9 + $0x188] sm:$0xff] %v2871_v25  ;;  %v7277_v12 = vpack.c.bf16 %v2531_v48, %v2529_v56 }
 0x3da   : > { %2915 = vst [vmem:[%s7075_s9 + $0x190] sm:$0xff] %v2531_v48  ;;  %v5309_v48 = vor.u32 %v5485_v19, %v5308_v11 }
 0x3dc   : > { %v2783_v5 = vpop.f32.mrf.mxu2  ;;  %v2444_v43 = vpop.f32.mrf.mxu0  ;;  %4160 = vmatpush.bf16.msra.mxu2 %v5309_v48  ;;  %v5463_v48 = vld [vmem:[#allocation17 + $0x48] sm:$0xff] }
 0x3dd   : > { %v2784_v18 = vadd.f32 %v7070_v58, %v2783_v5  ;;  %v2872_v38 = vpop.f32.mrf.mxu3  ;;  %v2445_v42 = vadd.f32 %v7053_v23, %v2444_v43  ;;  %v2533_v49 = vpop.f32.mrf.mxu1  ;;  %v5310_v5 = vld [vmem:[#allocation19 + $0x78] sm:$0xf0] }
 0x3df   : > { %v2873_v17 = vadd.f32 %v2872_v38, %v2784_v18  ;;  %v2534_v34 = vadd.f32 %v2533_v49, %v2445_v42  ;;  %3281 = vmatmul.bf16.gmra.mxu0 %v7165_v62  ;;  %v5653_v49 = vld [vmem:[#allocation11] ss:$0 sm:$0xff] }
 0x3e0   : > { %3370 = vmatmul.bf16.gmra.mxu1 %v7173_v24 }
 0x3e1   : > { %2947 = vst [vmem:[%s7075_s9 + $0x198] sm:$0xff] %v2873_v17  ;;  %3459 = vmatmul.bf16.gmra.mxu2 %v7165_v62  ;;  %v7285_v8 = vpack.c.bf16 %v2873_v17, %v2871_v25  ;;  %v5484_v25 = vld [vmem:[#allocation19 + $0x74] sm:$0xf] }
 0x3e2   : > { %2916 = vst [vmem:[%s7075_s9 + $0x1a0] sm:$0xff] %v2534_v34  ;;  %3548 = vmatmul.bf16.gmra.mxu3 %v7173_v24  ;;  %v5313_v42 = vor.u32 %v5484_v25, %v5310_v5 }
 0x3e4   : > { %v2786_v0 = vpop.f32.mrf.mxu2  ;;  %v2446_v52 = vpop.f32.mrf.mxu0  ;;  %4249 = vmatpush.bf16.msra.mxu3 %v5313_v42 }
 0x3e5   : > { %v2787_v22 = vadd.f32 %v7070_v58, %v2786_v0  ;;  %v2875_v59 = vpop.f32.mrf.mxu3  ;;  %v2447_v30 = vadd.f32 %v7053_v23, %v2446_v52  ;;  %v2535_v10 = vpop.f32.mrf.mxu1 }
 0x3e7   : > { %v2876_v36 = vadd.f32 %v2875_v59, %v2787_v22  ;;  %v2536_v27 = vadd.f32 %v2535_v10, %v2447_v30 }
 0x3e9   : > { %2948 = vst [vmem:[%s7075_s9 + $0x1a8] sm:$0xff] %v2876_v36  ;;  %v7293_v62 = vpack.c.bf16 %v2536_v27, %v2534_v34 }
 0x3ea   : > { %2917 = vst [vmem:[%s7075_s9 + $0x1b0] sm:$0xff] %v2536_v27 }
 0x3ec   : > { %v2788_v21 = vpop.f32.mrf.mxu2  ;;  %v2449_v53 = vpop.f32.mrf.mxu0 }
 0x3ed   : > { %v2789_v45 = vadd.f32 %v7070_v58, %v2788_v21  ;;  %v2877_v24 = vpop.f32.mrf.mxu3  ;;  %v2450_v16 = vadd.f32 %v7053_v23, %v2449_v53  ;;  %v2538_v29 = vpop.f32.mrf.mxu1 }
 0x3ef   : > { %v2878_v20 = vadd.f32 %v2877_v24, %v2789_v45  ;;  %v2539_v37 = vadd.f32 %v2538_v29, %v2450_v16  ;;  %3286 = vmatmul.bf16.gmra.mxu0 %v7181_v15  ;;  %v5456_v16 = vld [vmem:[#allocation17 + $0x10] sm:$0xff] }
 0x3f0   : > { %3375 = vmatmul.bf16.gmra.mxu1 %v7189_v13  ;;  %3837 = vmatpush.bf16.msra.mxu0 %v5456_v16 }
 0x3f1   : > { %2949 = vst [vmem:[%s7075_s9 + $0x1b8] sm:$0xff] %v2878_v20  ;;  %3464 = vmatmul.bf16.gmra.mxu2 %v7181_v15  ;;  %v7301_v1 = vpack.c.bf16 %v2878_v20, %v2876_v36 }
 0x3f2   : > { %2918 = vst [vmem:[%s7075_s9 + $0x1c0] sm:$0xff] %v2539_v37  ;;  %3553 = vmatmul.bf16.gmra.mxu3 %v7189_v13 }
 0x3f4   : > { %v2791_v32 = vpop.f32.mrf.mxu2  ;;  %v2451_v28 = vpop.f32.mrf.mxu0 }
 0x3f5   : > { %v2792_v6 = vadd.f32 %v7070_v58, %v2791_v32  ;;  %v2880_v54 = vpop.f32.mrf.mxu3  ;;  %v2452_v4 = vadd.f32 %v7053_v23, %v2451_v28  ;;  %v2540_v15 = vpop.f32.mrf.mxu1 }
 0x3f7   : > { %v2881_v46 = vadd.f32 %v2880_v54, %v2792_v6  ;;  %v2541_v3 = vadd.f32 %v2540_v15, %v2452_v4  ;;  %v5483_v15 = vld [vmem:[#allocation19 + $0x64] sm:$0xf0] }
 0x3f9   : > { %2950 = vst [vmem:[%s7075_s9 + $0x1c8] sm:$0xff] %v2881_v46  ;;  %v7309_v2 = vpack.c.bf16 %v2541_v3, %v2539_v37 }
 0x3fa   : > { %2919 = vst [vmem:[%s7075_s9 + $0x1d0] sm:$0xff] %v2541_v3  ;;  %v5482_v3 = vld [vmem:[#allocation19 + $0x64] sm:$0xf] }
 0x3fc   : > { %v2793_v13 = vpop.f32.mrf.mxu2  ;;  %v2454_v50 = vpop.f32.mrf.mxu0 }
 0x3fd   : > { %v2794_v47 = vadd.f32 %v7070_v58, %v2793_v13  ;;  %v2882_v56 = vpop.f32.mrf.mxu3  ;;  %v2455_v57 = vadd.f32 %v7053_v23, %v2454_v50  ;;  %v2543_v61 = vpop.f32.mrf.mxu1  ;;  %v5302_v13 = vld [vmem:[#allocation19 + $0x68] sm:$0xf0] }
 0x3ff   : > { %v2883_v41 = vadd.f32 %v2882_v56, %v2794_v47  ;;  %v2544_v60 = vadd.f32 %v2543_v61, %v2455_v57  ;;  %3291 = vmatmul.bf16.gmra.mxu0 %v7197_v55  ;;  %v5305_v47 = vor.u32 %v5482_v3, %v5302_v13 }
 0x400   : > { %3380 = vmatmul.bf16.gmra.mxu1 %v7205_v63 }
 0x401   : > { %2951 = vst [vmem:[%s7075_s9 + $0x1d8] sm:$0xff] %v2883_v41  ;;  %3469 = vmatmul.bf16.gmra.mxu2 %v7197_v55  ;;  %v7317_v26 = vpack.c.bf16 %v2883_v41, %v2881_v46  ;;  %4250 = vmatpush.bf16.msra.mxu3 %v5305_v47 }
 0x402   : > { %2920 = vst [vmem:[%s7075_s9 + $0x1e0] sm:$0xff] %v2544_v60  ;;  %3558 = vmatmul.bf16.gmra.mxu3 %v7205_v63  ;;  %v7325_v63 = vld [vmem:[%s7873_s0] sm:$0x3]  ;;  %s4441_s0 = sshll.u32 %s4438_s18, 4  ;;  %s4442_s0 = int_to_ptr.hbm [resolvable:$true] %s4441_s0 }
 0x403   : > { %v7330_v22 = vperm.slane %v7325_v63, 0  ;;  %s5998_s23 = sshra.s32 %s4442_s0, 4  ;;  %s5999_s23 = int_to_ptr.hbm [resolvable:$true] %s5998_s23 }
 0x404   : > { %v2796_v23 = vpop.f32.mrf.mxu2  ;;  %v2456_v43 = vpop.f32.mrf.mxu0  ;;  %p6005_p12 = scmp.lt.s32.totalorder %s5999_s23, %s7876_s14 }
 0x405   : > { %v2797_v18 = vadd.f32 %v7070_v58, %v2796_v23  ;;  %v2885_v38 = vpop.f32.mrf.mxu3  ;;  %v2457_v55 = vadd.f32 %v5653_v49, %v2456_v43  ;;  %v2545_v17 = vpop.f32.mrf.mxu1  ;;  %v5455_v23 = vld [vmem:[#allocation17 + $0x8] sm:$0xff] }
 0x406   : > { %3838 = vmatpush.bf16.msra.mxu0 %v5455_v23 }
 0x407   : > { %v2886_v34 = vadd.f32 %v2885_v38, %v2797_v18  ;;  %v2546_v0 = vadd.f32 %v2545_v17, %v2457_v55 }
 0x409   : > { %2952 = vst [vmem:[%s7075_s9 + $0x1e8] sm:$0xff] %v2886_v34  ;;  %v7332_v59 = vpack.c.bf16 %v2546_v0, %v2544_v60 }
 0x40a   : > { %2921 = vst [vmem:[%s7075_s9 + $0x1f0] sm:$0xff] %v2546_v0 }
 0x40c   : > { %v2798_v52 = vpop.f32.mrf.mxu2  ;;  %v3257_v10 = vpop.f32.mrf.mxu0 }
 0x40d   : > { %v2799_v30 = vadd.f32 %v7070_v58, %v2798_v52  ;;  %v2887_v36 = vpop.f32.mrf.mxu3  ;;  %v3258_v27 = vadd.f32 %v3257_v10, %v7330_v22  ;;  %v3346_v21 = vpop.f32.mrf.mxu1  ;;  %v5464_v58 = vld [vmem:[#allocation17 + $0x50] sm:$0xff]  ;;  %v5481_v10 = vld [vmem:[#allocation19 + $0x54] sm:$0xf0] }
 0x40e   : > { %3926 = vmatpush.bf16.msra.mxu1 %v5464_v58 }
 0x40f   : > { %v2888_v45 = vadd.f32 %v2887_v36, %v2799_v30  ;;  %v3347_v24 = vadd.f32 %v3346_v21, %v3258_v27  ;;  %3296 = vmatmul.bf16.gmra.mxu0 %v7213_v44  ;;  %v5292_v30 = vld [vmem:[#allocation19 + $0x50] sm:$0xf]  ;;  %v5480_v27 = vld [vmem:[#allocation19 + $0x54] sm:$0xf]  ;;  %v5294_v21 = vld [vmem:[#allocation19 + $0x58] sm:$0xf0] }
 0x410   : > { %3385 = vmatmul.bf16.gmra.mxu1 %v7221_v9  ;;  %v5293_v36 = vor.u32 %v5481_v10, %v5292_v30 }
 0x411   : > { %2953 = vst [vmem:[%s7075_s9 + $0x1f8] sm:$0xff] %v2888_v45  ;;  %3474 = vmatmul.bf16.gmra.mxu2 %v7213_v44  ;;  %v7340_v53 = vpack.c.bf16 %v2888_v45, %v2886_v34  ;;  %v3604_v40 = vmax.f32 %v3347_v24, 0.0  ;;  %v5297_v24 = vor.u32 %v5480_v27, %v5294_v21 }
 0x412   : > { %3563 = vmatmul.bf16.gmra.mxu3 %v7221_v9  ;;  %v5300_v9 = vld [vmem:[#allocation19 + $0x60] sm:$0xf]  ;;  %3927 = vmatpush.bf16.msra.mxu1 %v5463_v48  ;;  %v5478_v48 = vld [vmem:[#allocation19 + $0x44] sm:$0xf] }
 0x413   : > { %v5301_v46 = vor.u32 %v5483_v15, %v5300_v9  ;;  %4251 = vmatpush.bf16.msra.mxu3 %v5297_v24  ;;  %v5454_v9 = vld [vmem:[#allocation17] sm:$0xff] }
 0x414   : > { %v3259_v29 = vpop.f32.mrf.mxu0  ;;  %v7360_v42 = vpop.f32.mrf.mxu2  ;;  %v5462_v15 = vld [vmem:[#allocation17 + $0x40] sm:$0xff]  ;;  %3839 = vmatpush.bf16.msra.mxu0 %v5454_v9  ;;  %v7427_v9 = vperm.slane %v7325_v63, 1 }
 0x415   : > { %v3260_v20 = vadd.f32 %v3259_v29, %v7330_v22  ;;  %v3348_v37 = vpop.f32.mrf.mxu1  ;;  %4161 = vmatpush.bf16.msra.mxu2 %v5301_v46  ;;  %v7362_v17 = vpop.f32.mrf.mxu3 }
 0x416   : > { %3928 = vmatpush.bf16.msra.mxu1 %v5462_v15  ;;  %v3436_v63 = vadd.f32 %v7360_v42, %v7427_v9 }
 0x417   : > { %v3349_v7 = vadd.f32 %v3348_v37, %v3260_v20 }
 0x419   : > { %v3606_v32 = vmax.f32 %v3349_v7, 0.0  ;;  %4162 = vmatpush.bf16.msra.mxu2 %v5293_v36 }
 0x41b   : > { %v7344_v6 = vpack.c.bf16 %v3606_v32, %v3604_v40 }
 0x41c   : > { %v3262_v54 = vpop.f32.mrf.mxu0  ;;  %v7371_v45 = vpop.f32.mrf.mxu2 }
 0x41d   : > { %v3263_v44 = vadd.f32 %v3262_v54, %v7330_v22  ;;  %v3351_v28 = vpop.f32.mrf.mxu1  ;;  %v7373_v58 = vpop.f32.mrf.mxu3 }
 0x41f   : > { %v3352_v4 = vadd.f32 %v3351_v28, %v3263_v44  ;;  %3301 = vmatmul.bf16.gmra.mxu0 %v7229_v39 }
 0x420   : > { %3390 = vmatmul.bf16.gmra.mxu1 %v7237_v14 }
 0x421   : > { %3479 = vmatmul.bf16.gmra.mxu2 %v7229_v39  ;;  %v3608_v41 = vmax.f32 %v3352_v4, 0.0 }
 0x422   : > { %3568 = vmatmul.bf16.gmra.mxu3 %v7237_v14 }
 0x424   : > { %v3264_v56 = vpop.f32.mrf.mxu0  ;;  %v7378_v32 = vpop.f32.mrf.mxu2 }
 0x425   : > { %v3265_v50 = vadd.f32 %v3264_v56, %v7330_v22  ;;  %v3353_v57 = vpop.f32.mrf.mxu1  ;;  %v7381_v28 = vpop.f32.mrf.mxu3 }
 0x427   : > { %v3354_v61 = vadd.f32 %v3353_v57, %v3265_v50 }
 0x429   : > { %v3610_v60 = vmax.f32 %v3354_v61, 0.0 }
 0x42b   : > { %v7352_v11 = vpack.c.bf16 %v3610_v60, %v3608_v41 }
 0x42c   : > { %v3267_v39 = vpop.f32.mrf.mxu0  ;;  %v7388_v47 = vpop.f32.mrf.mxu2 }
 0x42d   : > { %v3268_v14 = vadd.f32 %v3267_v39, %v7330_v22  ;;  %v3356_v19 = vpop.f32.mrf.mxu1  ;;  %v7390_v50 = vpop.f32.mrf.mxu3 }
 0x42f   : > { %v3357_v25 = vadd.f32 %v3356_v19, %v3268_v14  ;;  %3306 = vmatmul.bf16.gmra.mxu0 %v7245_v35  ;;  %v5284_v19 = vld [vmem:[#allocation19 + $0x40] sm:$0xf] }
 0x430   : > { %3395 = vmatmul.bf16.gmra.mxu1 %v7253_v33 }
 0x431   : > { %3484 = vmatmul.bf16.gmra.mxu2 %v7245_v35  ;;  %v3612_v49 = vmax.f32 %v3357_v25, 0.0  ;;  %v5479_v25 = vld [vmem:[#allocation19 + $0x44] sm:$0xf0] }
 0x432   : > { %3573 = vmatmul.bf16.gmra.mxu3 %v7253_v33  ;;  %v5285_v23 = vor.u32 %v5479_v25, %v5284_v19  ;;  %v3525_v19 = vadd.f32 %v7362_v17, %v3436_v63  ;;  %v3443_v17 = vadd.f32 %v7388_v47, %v7427_v9 }
 0x434   : > { %v3269_v5 = vpop.f32.mrf.mxu0  ;;  %v7398_v14 = vpop.f32.mrf.mxu2  ;;  %4163 = vmatpush.bf16.msra.mxu2 %v5285_v23 }
 0x435   : > { %v3270_v18 = vadd.f32 %v3269_v5, %v7330_v22  ;;  %v3358_v38 = vpop.f32.mrf.mxu1  ;;  %v5286_v5 = vld [vmem:[#allocation19 + $0x48] sm:$0xf0]  ;;  %v3446_v63 = vadd.f32 %v7398_v14, %v7427_v9 }
 0x437   : > { %v3359_v43 = vadd.f32 %v3358_v38, %v3270_v18  ;;  %v7401_v18 = vpop.f32.mrf.mxu3  ;;  %v5289_v38 = vor.u32 %v5478_v48, %v5286_v5 }
 0x439   : > { %v3614_v55 = vmax.f32 %v3359_v43, 0.0  ;;  %4252 = vmatpush.bf16.msra.mxu3 %v5289_v38  ;;  %v3605_v38 = vmax.f32 %v3525_v19, 0.0 }
 0x43b   : > { %v7364_v34 = vpack.c.bf16 %v3614_v55, %v3612_v49 }
 0x43c   : > { %v3272_v35 = vpop.f32.mrf.mxu0 }
 0x43d   : > { %v3273_v33 = vadd.f32 %v3272_v35, %v7330_v22  ;;  %v3361_v0 = vpop.f32.mrf.mxu1 }
 0x43f   : > { %v3362_v52 = vadd.f32 %v3361_v0, %v3273_v33  ;;  %3311 = vmatmul.bf16.gmra.mxu0 %v7261_v51  ;;  %v7404_v0 = vpop.f32.mrf.mxu2  ;;  %v7408_v30 = vpop.f32.mrf.mxu3 }
 0x440   : > { %3400 = vmatmul.bf16.gmra.mxu1 %v7269_v31 }
 0x441   : > { %3489 = vmatmul.bf16.gmra.mxu2 %v7261_v51  ;;  %v3616_v51 = vmax.f32 %v3362_v52, 0.0 }
 0x442   : > { %3578 = vmatmul.bf16.gmra.mxu3 %v7269_v31 }
 0x444   : > { %v3274_v16 = vpop.f32.mrf.mxu0 }
 0x445   : > { %v3275_v29 = vadd.f32 %v3274_v16, %v7330_v22  ;;  %v3363_v20 = vpop.f32.mrf.mxu1 }
 0x447   : > { %v3364_v37 = vadd.f32 %v3363_v20, %v3275_v29  ;;  %v7415_v24 = vpop.f32.mrf.mxu2  ;;  %v7418_v20 = vpop.f32.mrf.mxu3 }
 0x449   : > { %v3618_v7 = vmax.f32 %v3364_v37, 0.0 }
 0x44b   : > { %v7376_v31 = vpack.c.bf16 %v3618_v7, %v3616_v51 }
 0x44c   : > { %v3277_v40 = vpop.f32.mrf.mxu0 }
 0x44d   : > { %v3278_v54 = vadd.f32 %v3277_v40, %v7330_v22  ;;  %v3366_v44 = vpop.f32.mrf.mxu1 }
 0x44f   : > { %v3367_v4 = vadd.f32 %v3366_v44, %v3278_v54  ;;  %3316 = vmatmul.bf16.gmra.mxu0 %v7277_v12  ;;  %v7431_v15 = vpop.f32.mrf.mxu3 }
 0x450   : > { %3405 = vmatmul.bf16.gmra.mxu1 %v7285_v8 }
 0x451   : > { %3494 = vmatmul.bf16.gmra.mxu2 %v7277_v12  ;;  %v3620_v57 = vmax.f32 %v3367_v4, 0.0 }
 0x452   : > { %3583 = vmatmul.bf16.gmra.mxu3 %v7285_v8 }
 0x454   : > { %v3279_v46 = vpop.f32.mrf.mxu0 }
 0x455   : > { %v3280_v3 = vadd.f32 %v3279_v46, %v7330_v22  ;;  %v3368_v13 = vpop.f32.mrf.mxu1  ;;  %v5276_v46 = vld [vmem:[#allocation19 + $0x30] sm:$0xf] }
 0x457   : > { %v3369_v56 = vadd.f32 %v3368_v13, %v3280_v3  ;;  %v5477_v3 = vld [vmem:[#allocation19 + $0x34] sm:$0xf0]  ;;  %v3438_v13 = vadd.f32 %v7371_v45, %v7427_v9 }
 0x459   : > { %v3622_v61 = vmax.f32 %v3369_v56, 0.0  ;;  %v5277_v56 = vor.u32 %v5477_v3, %v5276_v46  ;;  %v3448_v3 = vadd.f32 %v7404_v0, %v7427_v9 }
 0x45b   : > { %v7392_v41 = vpack.c.bf16 %v3622_v61, %v3620_v57  ;;  %v5476_v57 = vld [vmem:[#allocation19 + $0x34] sm:$0xf]  ;;  %v5278_v61 = vld [vmem:[#allocation19 + $0x38] sm:$0xf0]  ;;  %4164 = vmatpush.bf16.msra.mxu2 %v5277_v56  ;;  %v5474_v56 = vld [vmem:[#allocation19 + $0x24] sm:$0xf] }
 0x45c   : > { %v3282_v12 = vpop.f32.mrf.mxu0 }
 0x45d   : > { %v3283_v8 = vadd.f32 %v3282_v12, %v7330_v22  ;;  %v3371_v60 = vpop.f32.mrf.mxu1  ;;  %v5281_v12 = vor.u32 %v5476_v57, %v5278_v61  ;;  %v5270_v57 = vld [vmem:[#allocation19 + $0x28] sm:$0xf0] }
 0x45f   : > { %v3372_v39 = vadd.f32 %v3371_v60, %v3283_v8  ;;  %3321 = vmatmul.bf16.gmra.mxu0 %v7293_v62  ;;  %4253 = vmatpush.bf16.msra.mxu3 %v5281_v12  ;;  %v5273_v12 = vor.u32 %v5474_v56, %v5270_v57 }
 0x460   : > { %3410 = vmatmul.bf16.gmra.mxu1 %v7301_v1 }
 0x461   : > { %3499 = vmatmul.bf16.gmra.mxu2 %v7293_v62  ;;  %v3624_v62 = vmax.f32 %v3372_v39, 0.0 }
 0x462   : > { %3588 = vmatmul.bf16.gmra.mxu3 %v7301_v1 }
 0x463   : > { %4254 = vmatpush.bf16.msra.mxu3 %v5273_v12 }
 0x464   : > { %v3284_v43 = vpop.f32.mrf.mxu0 }
 0x465   : > { %v3285_v49 = vadd.f32 %v3284_v43, %v7330_v22  ;;  %v3373_v55 = vpop.f32.mrf.mxu1 }
 0x467   : > { %v3374_v35 = vadd.f32 %v3373_v55, %v3285_v49 }
 0x469   : > { %v3626_v33 = vmax.f32 %v3374_v35, 0.0  ;;  %v7446_v35 = vpop.f32.mrf.mxu3 }
 0x46b   : > { %v7406_v1 = vpack.c.bf16 %v3626_v33, %v3624_v62  ;;  %v3441_v33 = vadd.f32 %v7378_v32, %v7427_v9 }
 0x46c   : > { %v3287_v52 = vpop.f32.mrf.mxu0 }
 0x46d   : > { %v3288_v10 = vadd.f32 %v3287_v52, %v7330_v22  ;;  %v3376_v36 = vpop.f32.mrf.mxu1 }
 0x46f   : > { %v3377_v27 = vadd.f32 %v3376_v36, %v3288_v10  ;;  %3326 = vmatmul.bf16.gmra.mxu0 %v7309_v2 }
 0x470   : > { %3415 = vmatmul.bf16.gmra.mxu1 %v7317_v26 }
 0x471   : > { %3504 = vmatmul.bf16.gmra.mxu2 %v7309_v2  ;;  %v3628_v51 = vmax.f32 %v3377_v27, 0.0  ;;  %v7423_v2 = vpop.f32.mrf.mxu2  ;;  %v3532_v27 = vadd.f32 %v7390_v50, %v3443_v17  ;;  %v5475_v50 = vld [vmem:[#allocation19 + $0x24] sm:$0xf0]  ;;  %v3451_v17 = vadd.f32 %v7415_v24, %v7427_v9 }
 0x472   : > { %3593 = vmatmul.bf16.gmra.mxu3 %v7317_v26 }
 0x474   : > { %v3289_v21 = vpop.f32.mrf.mxu0 }
 0x475   : > { %v3290_v16 = vadd.f32 %v3289_v21, %v7330_v22  ;;  %v3378_v29 = vpop.f32.mrf.mxu1 }
 0x477   : > { %v3379_v37 = vadd.f32 %v3378_v29, %v3290_v16  ;;  %v3530_v16 = vadd.f32 %v7381_v28, %v3441_v33  ;;  %v7458_v29 = vpop.f32.mrf.mxu3  ;;  %v5268_v28 = vld [vmem:[#allocation19 + $0x20] sm:$0xf] }
 0x479   : > { %v3630_v7 = vmax.f32 %v3379_v37, 0.0  ;;  %v7441_v25 = vpop.f32.mrf.mxu2 }
 0x47a   : > { %v3456_v57 = vadd.f32 %v7441_v25, %v7427_v9 }
 0x47b   : > { %v7420_v40 = vpack.c.bf16 %v3630_v7, %v3628_v51  ;;  %v3611_v51 = vmax.f32 %v3532_v27, 0.0  ;;  %v3609_v7 = vmax.f32 %v3530_v16, 0.0 }
 0x47c   : > { %v3292_v54 = vpop.f32.mrf.mxu0 }
 0x47d   : > { %v3293_v44 = vadd.f32 %v3292_v54, %v7330_v22  ;;  %v3381_v4 = vpop.f32.mrf.mxu1 }
 0x47f   : > { %v3382_v26 = vadd.f32 %v3381_v4, %v3293_v44  ;;  %3331 = vmatmul.bf16.gmra.mxu0 %v7332_v59  ;;  %v7468_v61 = vpop.f32.mrf.mxu3 }
 0x480   : > { %3420 = vmatmul.bf16.gmra.mxu1 %v7340_v53 }
 0x481   : > { %3509 = vmatmul.bf16.gmra.mxu2 %v7332_v59  ;;  %v3632_v45 = vmax.f32 %v3382_v26, 0.0  ;;  %v3671_v26 = vpack.c.bf16 %v3611_v51, %v3609_v7 }
 0x482   : > { %3598 = vmatmul.bf16.gmra.mxu3 %v7340_v53  ;;  %v3527_v53 = vadd.f32 %v7373_v58, %v3438_v13  ;;  %v7451_v58 = vpop.f32.mrf.mxu2  ;;  %v5269_v13 = vor.u32 %v5475_v50, %v5268_v28 }
 0x483   : > { %v3458_v28 = vadd.f32 %v7451_v58, %v7427_v9  ;;  %v3545_v58 = vadd.f32 %v7446_v35, %v3456_v57 }
 0x484   : > { %v3294_v8 = vpop.f32.mrf.mxu0  ;;  %v3607_v48 = vmax.f32 %v3527_v53, 0.0  ;;  %4165 = vmatpush.bf16.msra.mxu2 %v5269_v13  ;;  %v5262_v13 = vld [vmem:[#allocation19 + $0x18] sm:$0xf0] }
 0x485   : > { %v3295_v59 = vadd.f32 %v3294_v8, %v7330_v22  ;;  %v3383_v60 = vpop.f32.mrf.mxu1  ;;  %v3621_v25 = vmax.f32 %v3545_v58, 0.0 }
 0x486   : > { %v3669_v55 = vpack.c.bf16 %v3607_v48, %v3605_v38 }
 0x487   : > { %v3384_v39 = vadd.f32 %v3383_v60, %v3295_v59  ;;  %v3537_v60 = vadd.f32 %v7408_v30, %v3448_v3  ;;  %v5472_v3 = vld [vmem:[#allocation19 + $0x14] sm:$0xf] }
 0x488   : > { %v5265_v56 = vor.u32 %v5472_v3, %v5262_v13 }
 0x489   : > { %v3634_v23 = vmax.f32 %v3384_v39, 0.0  ;;  %v3535_v39 = vadd.f32 %v7401_v18, %v3446_v63  ;;  %v3453_v18 = vadd.f32 %v7423_v2, %v7427_v9 }
 0x48a   : > { %v7462_v44 = vpop.f32.mrf.mxu2  ;;  %4255 = vmatpush.bf16.msra.mxu3 %v5265_v56 }
 0x48b   : > { %v7443_v5 = vpack.c.bf16 %v3634_v23, %v3632_v45  ;;  %v3615_v23 = vmax.f32 %v3537_v60, 0.0  ;;  %v3613_v38 = vmax.f32 %v3535_v39, 0.0 }
 0x48c   : > { %v3297_v42 = vpop.f32.mrf.mxu0 }
 0x48d   : > { %v3298_v43 = vadd.f32 %v3297_v42, %v7330_v22  ;;  %v3386_v49 = vpop.f32.mrf.mxu1  ;;  %v7479_v42 = vpop.f32.mrf.mxu3 }
 0x48f   : > { %v3387_v62 = vadd.f32 %v3386_v49, %v3298_v43  ;;  %3840 = vmatmul.bf16.vlgmr.msra.gmra.mxu0 %v7344_v6 }
 0x490   : > { %3929 = vmatmul.bf16.vlgmr.msra.gmra.mxu1 %v3669_v55  ;;  %v3673_v55 = vpack.c.bf16 %v3615_v23, %v3613_v38 }
 0x491   : > { %v3636_v6 = vmax.f32 %v3387_v62, 0.0 }
 0x492   : > { %v7474_v53 = vpop.f32.mrf.mxu2 }
 0x493   : > { %v3463_v35 = vadd.f32 %v7474_v53, %v7427_v9 }
 0x494   : > { %v3299_v52 = vpop.f32.mrf.mxu0 }
 0x495   : > { %v3300_v10 = vadd.f32 %v3299_v52, %v7330_v22  ;;  %v3388_v36 = vpop.f32.mrf.mxu1  ;;  %v7491_v27 = vpop.f32.mrf.mxu3 }
 0x497   : > { %v3389_v21 = vadd.f32 %v3388_v36, %v3300_v10  ;;  %v3542_v36 = vadd.f32 %v7431_v15, %v3453_v18 }
 0x499   : > { %v3638_v37 = vmax.f32 %v3389_v21, 0.0 }
 0x49a   : > { %v7483_v30 = vpop.f32.mrf.mxu2 }
 0x49b   : > { %v7460_v47 = vpack.c.bf16 %v3638_v37, %v3636_v6  ;;  %v3619_v37 = vmax.f32 %v3542_v36, 0.0  ;;  %v3466_v3 = vadd.f32 %v7483_v30, %v7427_v9 }
 0x49c   : > { %v3302_v54 = vpop.f32.mrf.mxu0 }
 0x49d   : > { %v3303_v32 = vadd.f32 %v3302_v54, %v7330_v22  ;;  %v3391_v4 = vpop.f32.mrf.mxu1  ;;  %v7500_v15 = vpop.f32.mrf.mxu3 }
 0x49f   : > { %v3392_v46 = vadd.f32 %v3391_v4, %v3303_v32  ;;  %3845 = vmatmul.bf16.gmra.mxu0 %v7352_v11 }
 0x4a0   : > { %3934 = vmatmul.bf16.gmra.mxu1 %v3671_v26 }
 0x4a1   : > { %v3640_v19 = vmax.f32 %v3392_v46, 0.0  ;;  %v5473_v46 = vld [vmem:[#allocation19 + $0x14] sm:$0xf0] }
 0x4a2   : > { %v7494_v51 = vpop.f32.mrf.mxu2 }
 0x4a4   : > { %v3304_v8 = vpop.f32.mrf.mxu0 }
 0x4a5   : > { %v3305_v59 = vadd.f32 %v3304_v8, %v7330_v22  ;;  %v3393_v11 = vpop.f32.mrf.mxu1 }
 0x4a7   : > { %v3394_v0 = vadd.f32 %v3393_v11, %v3305_v59  ;;  %v3547_v59 = vadd.f32 %v7458_v29, %v3458_v28  ;;  %v3461_v29 = vadd.f32 %v7462_v44, %v7427_v9 }
 0x4a9   : > { %v3642_v45 = vmax.f32 %v3394_v0, 0.0  ;;  %v3623_v39 = vmax.f32 %v3547_v59, 0.0  ;;  %v3550_v36 = vadd.f32 %v7468_v61, %v3461_v29  ;;  %v5252_v61 = vld [vmem:[#allocation19] sm:$0xf] }
 0x4aa   : > { %v7506_v63 = vpop.f32.mrf.mxu2 }
 0x4ab   : > { %v7477_v48 = vpack.c.bf16 %v3642_v45, %v3640_v19  ;;  %v7511_v19 = vpop.f32.mrf.mxu3  ;;  %v3625_v53 = vmax.f32 %v3550_v36, 0.0 }
 0x4ac   : > { %v3307_v14 = vpop.f32.mrf.mxu0 }
 0x4ad   : > { %v3308_v43 = vadd.f32 %v3307_v14, %v7330_v22  ;;  %v3396_v49 = vpop.f32.mrf.mxu1 }
 0x4af   : > { %v3397_v62 = vadd.f32 %v3396_v49, %v3308_v43  ;;  %3850 = vmatmul.bf16.gmra.mxu0 %v7364_v34  ;;  %v3540_v34 = vadd.f32 %v7418_v20, %v3451_v17  ;;  %v5260_v20 = vld [vmem:[#allocation19 + $0x10] sm:$0xf]  ;;  %v3677_v43 = vpack.c.bf16 %v3623_v39, %v3621_v25 }
 0x4b0   : > { %3939 = vmatmul.bf16.gmra.mxu1 %v3673_v55  ;;  %v5261_v50 = vor.u32 %v5473_v46, %v5260_v20  ;;  %v5470_v20 = vld [vmem:[#allocation19 + $0x4] sm:$0xf]  ;;  %v5254_v46 = vld [vmem:[#allocation19 + $0x8] sm:$0xf0] }
 0x4b1   : > { %v3644_v16 = vmax.f32 %v3397_v62, 0.0  ;;  %v3617_v7 = vmax.f32 %v3540_v34, 0.0 }
 0x4b2   : > { %4166 = vmatpush.bf16.msra.mxu2 %v5261_v50  ;;  %v3472_v49 = vpop.f32.mrf.mxu2  ;;  %v5257_v50 = vor.u32 %v5470_v20, %v5254_v46 }
 0x4b3   : > { %v3675_v4 = vpack.c.bf16 %v3619_v37, %v3617_v7  ;;  %v3561_v18 = vpop.f32.mrf.mxu3 }
 0x4b4   : > { %v3309_v33 = vpop.f32.mrf.mxu0  ;;  %4256 = vmatpush.bf16.msra.mxu3 %v5257_v50 }
 0x4b5   : > { %v3310_v52 = vadd.f32 %v3309_v33, %v7330_v22  ;;  %v3398_v10 = vpop.f32.mrf.mxu1 }
 0x4b7   : > { %v3399_v21 = vadd.f32 %v3398_v10, %v3310_v52  ;;  %v3552_v52 = vadd.f32 %v7479_v42, %v3463_v35  ;;  %v5471_v42 = vld [vmem:[#allocation19 + $0x4] sm:$0xf0] }
 0x4b9   : > { %v3646_v6 = vmax.f32 %v3399_v21, 0.0 }
 0x4ba   : > { %v7524_v21 = vpop.f32.mrf.mxu2 }
 0x4bb   : > { %v7496_v2 = vpack.c.bf16 %v3646_v6, %v3644_v16  ;;  %v3627_v16 = vmax.f32 %v3552_v52, 0.0 }
 0x4bc   : > { %v3312_v24 = vpop.f32.mrf.mxu0 }
 0x4bd   : > { %v3313_v54 = vadd.f32 %v3312_v24, %v7330_v22  ;;  %v3401_v32 = vpop.f32.mrf.mxu1  ;;  %v3679_v24 = vpack.c.bf16 %v3627_v16, %v3625_v53 }
 0x4bf   : > { %v3402_v26 = vadd.f32 %v3401_v32, %v3313_v54  ;;  %3855 = vmatmul.bf16.gmra.mxu0 %v7376_v31  ;;  %v7529_v54 = vpop.f32.mrf.mxu3 }
 0x4c0   : > { %3944 = vmatmul.bf16.gmra.mxu1 %v3675_v4  ;;  %v3468_v4 = vadd.f32 %v7494_v51, %v7427_v9 }
 0x4c1   : > { %v3648_v60 = vmax.f32 %v3402_v26, 0.0  ;;  %v5253_v26 = vor.u32 %v5471_v42, %v5252_v61 }
 0x4c2   : > { %v3477_v28 = vpop.f32.mrf.mxu2 }
 0x4c3   : > { %4167 = vmatpush.bf16.msra.mxu2 %v5253_v26 }
 0x4c4   : > { %v3314_v12 = vpop.f32.mrf.mxu0 }
 0x4c5   : > { %v3315_v31 = vadd.f32 %v3314_v12, %v7330_v22  ;;  %v3403_v8 = vpop.f32.mrf.mxu1 }
 0x4c7   : > { %v3404_v11 = vadd.f32 %v3403_v8, %v3315_v31  ;;  %v3555_v31 = vadd.f32 %v7491_v27, %v3466_v3  ;;  %v3566_v51 = vpop.f32.mrf.mxu3 }
 0x4c9   : > { %v3650_v0 = vmax.f32 %v3404_v11, 0.0 }
 0x4ca   : > { %v3480_v30 = vpop.f32.mrf.mxu2 }
 0x4cb   : > { %v7513_v45 = vpack.c.bf16 %v3650_v0, %v3648_v60  ;;  %v3629_v60 = vmax.f32 %v3555_v31, 0.0 }
 0x4cc   : > { %v3317_v23 = vpop.f32.mrf.mxu0 }
 0x4cd   : > { %v3318_v38 = vadd.f32 %v3317_v23, %v7330_v22  ;;  %v3406_v14 = vpop.f32.mrf.mxu1 }
 0x4cf   : > { %v3407_v55 = vadd.f32 %v3406_v14, %v3318_v38  ;;  %3860 = vmatmul.bf16.gmra.mxu0 %v7392_v41  ;;  %v3569_v27 = vpop.f32.mrf.mxu3  ;;  %v3471_v14 = vadd.f32 %v7506_v63, %v7427_v9 }
 0x4d0   : > { %3949 = vmatmul.bf16.gmra.mxu1 %v3677_v43 }
 0x4d1   : > { %v3652_v41 = vmax.f32 %v3407_v55, 0.0 }
 0x4d4   : > { %v3319_v62 = vpop.f32.mrf.mxu0 }
 0x4d5   : > { %v3320_v17 = vadd.f32 %v3319_v62, %v7330_v22  ;;  %v3408_v33 = vpop.f32.mrf.mxu1  ;;  %v3482_v62 = vpop.f32.mrf.mxu2 }
 0x4d7   : > { %v3409_v10 = vadd.f32 %v3408_v33, %v3320_v17  ;;  %v3560_v33 = vadd.f32 %v7511_v19, %v3471_v14  ;;  %v3476_v19 = vadd.f32 %v7524_v21, %v7427_v9  ;;  %v7562_v21 = vld [vmem:[%s7874_s7] ss:$0 sm:$0xff]  ;;  %s6000_s7 = scalar_lea.hbm %s5999_s23, 512 }
 0x4d8   : > { %p6001_p1 = scmp.ne.s32.totalorder %s5999_s23, %s6000_s7 }
 0x4d9   : > { %v3654_v34 = vmax.f32 %v3409_v10, 0.0  ;;  %v3565_v26 = vadd.f32 %v7529_v54, %v3476_v19 }
 0x4da   : > { %p6002_p3 = pnand %p6001_p1, %p6349_p4 }
 0x4db   : > { %v7526_v6 = vpack.c.bf16 %v3654_v34, %v3652_v41  ;;  %v3633_v41 = vmax.f32 %v3560_v33, 0.0  ;;  %v3571_v34 = vpop.f32.mrf.mxu3 }
 0x4dc   : > { %v3322_v37 = vpop.f32.mrf.mxu0  ;;  %p6003_p5 = pneg %p6002_p3 }
 0x4dd   : > { %v3323_v44 = vadd.f32 %v3322_v37, %v7330_v22  ;;  %v3411_v7 = vpop.f32.mrf.mxu1 }
 0x4df   : > { %v3412_v32 = vadd.f32 %v3411_v7, %v3323_v44  ;;  %3865 = vmatmul.bf16.gmra.mxu0 %v7406_v1  ;;  %v3557_v1 = vadd.f32 %v7500_v15, %v3468_v4  ;;  %v3473_v15 = vadd.f32 %v3472_v49, %v7427_v9  ;;  %v3478_v44 = vadd.f32 %v3477_v28, %v7427_v9 }
 0x4e0   : > { %3954 = vmatmul.bf16.gmra.mxu1 %v3679_v24 }
 0x4e1   : > { %v3656_v8 = vmax.f32 %v3412_v32, 0.0  ;;  %v3631_v11 = vmax.f32 %v3557_v1, 0.0  ;;  %v3562_v29 = vadd.f32 %v3561_v18, %v3473_v15  ;;  %v3485_v18 = vpop.f32.mrf.mxu2  ;;  %v3567_v61 = vadd.f32 %v3566_v51, %v3478_v44 }
 0x4e2   : > { %v3483_v1 = vadd.f32 %v3482_v62, %v7427_v9 }
 0x4e3   : > { %v3681_v23 = vpack.c.bf16 %v3631_v11, %v3629_v60  ;;  %v3635_v36 = vmax.f32 %v3562_v29, 0.0  ;;  %v3574_v42 = vpop.f32.mrf.mxu3  ;;  %v3639_v50 = vmax.f32 %v3567_v61, 0.0 }
 0x4e4   : > { %v3324_v13 = vpop.f32.mrf.mxu0  ;;  %v3572_v60 = vadd.f32 %v3571_v34, %v3483_v1 }
 0x4e5   : > { %v3325_v56 = vadd.f32 %v3324_v13, %v7330_v22  ;;  %v3413_v57 = vpop.f32.mrf.mxu1  ;;  %v3683_v53 = vpack.c.bf16 %v3635_v36, %v3633_v41  ;;  %v3637_v13 = vmax.f32 %v3565_v26, 0.0 }
 0x4e7   : > { %v3414_v12 = vadd.f32 %v3413_v57, %v3325_v56  ;;  %v3685_v56 = vpack.c.bf16 %v3639_v50, %v3637_v13 }
 0x4e9   : > { %v3658_v59 = vmax.f32 %v3414_v12, 0.0  ;;  %v3481_v12 = vadd.f32 %v3480_v30, %v7427_v9 }
 0x4eb   : > { %v7539_v58 = vpack.c.bf16 %v3658_v59, %v3656_v8  ;;  %v3576_v57 = vpop.f32.mrf.mxu3 }
 0x4ec   : > { %v3327_v0 = vpop.f32.mrf.mxu0 }
 0x4ed   : > { %v3328_v39 = vadd.f32 %v3327_v0, %v7330_v22  ;;  %v3416_v25 = vpop.f32.mrf.mxu1 }
 0x4ef   : > { %v3417_v38 = vadd.f32 %v3416_v25, %v3328_v39  ;;  %3870 = vmatmul.bf16.gmra.mxu0 %v7420_v40  ;;  %v3570_v39 = vadd.f32 %v3569_v27, %v3481_v12  ;;  %v3486_v27 = vadd.f32 %v3485_v18, %v7427_v9 }
 0x4f0   : > { %3959 = vmatmul.bf16.gmra.mxu1 %v3681_v23 }
 0x4f1   : > { %v3660_v52 = vmax.f32 %v3417_v38, 0.0  ;;  %v3641_v14 = vmax.f32 %v3570_v39, 0.0  ;;  %v3575_v34 = vadd.f32 %v3574_v42, %v3486_v27 }
 0x4f3   : > { %v3579_v38 = vpop.f32.mrf.mxu3  ;;  %v3645_v44 = vmax.f32 %v3575_v34, 0.0 }
 0x4f4   : > { %v3329_v43 = vpop.f32.mrf.mxu0 }
 0x4f5   : > { %v3330_v55 = vadd.f32 %v3329_v43, %v7330_v22  ;;  %v3418_v35 = vpop.f32.mrf.mxu1 }
 0x4f7   : > { %v3419_v17 = vadd.f32 %v3418_v35, %v3330_v55 }
 0x4f9   : > { %v3662_v10 = vmax.f32 %v3419_v17, 0.0 }
 0x4fb   : > { %v7548_v40 = vpack.c.bf16 %v3662_v10, %v3660_v52  ;;  %v3581_v33 = vpop.f32.mrf.mxu3 }
 0x4fc   : > { %v3332_v49 = vpop.f32.mrf.mxu0 }
 0x4fd   : > { %v3333_v16 = vadd.f32 %v3332_v49, %v7330_v22  ;;  %v3421_v63 = vpop.f32.mrf.mxu1 }
 0x4ff   : > { %v3422_v37 = vadd.f32 %v3421_v63, %v3333_v16  ;;  %3875 = vmatmul.bf16.gmra.mxu0 %v7443_v5  ;;  %v3487_v5 = vpop.f32.mrf.mxu2 }
 0x500   : > { %3964 = vmatmul.bf16.gmra.mxu1 %v3683_v53  ;;  %v3488_v62 = vadd.f32 %v3487_v5, %v7427_v9 }
 0x501   : > { %v3664_v20 = vmax.f32 %v3422_v37, 0.0 }
 0x502   : > { %v3577_v41 = vadd.f32 %v3576_v57, %v3488_v62 }
 0x504   : > { %v3334_v7 = vpop.f32.mrf.mxu0 }
 0x505   : > { %v3335_v24 = vadd.f32 %v3334_v7, %v7330_v22  ;;  %v3423_v32 = vpop.f32.mrf.mxu1 }
 0x507   : > { %v3424_v4 = vadd.f32 %v3423_v32, %v3335_v24  ;;  %v3490_v51 = vpop.f32.mrf.mxu2  ;;  %v3584_v24 = vpop.f32.mrf.mxu3 }
 0x509   : > { %v3666_v46 = vmax.f32 %v3424_v4, 0.0  ;;  %v3491_v4 = vadd.f32 %v3490_v51, %v7427_v9 }
 0x50b   : > { %v7557_v3 = vpack.c.bf16 %v3666_v46, %v3664_v20 }
 0x50c   : > { %v3841_v28 = vpop.f32.mrf.mxu0 }
 0x50d   : > { %v3930_v22 = vpop.f32.mrf.mxu1  ;;  %v3842_v54 = vadd.f32 %v7562_v21, %v3841_v28  ;;  %v3580_v28 = vadd.f32 %v3579_v38, %v3491_v4 }
 0x50f   : > { %3880 = vmatmul.bf16.gmra.mxu0 %v7460_v47  ;;  %v3931_v8 = vadd.f32 %v3930_v22, %v3842_v54  ;;  %v3643_v47 = vmax.f32 %v3572_v60, 0.0  ;;  %v3492_v35 = vpop.f32.mrf.mxu2  ;;  %v3586_v22 = vpop.f32.mrf.mxu3  ;;  %v3649_v1 = vmax.f32 %v3580_v28, 0.0 }
 0x510   : > { %3969 = vmatmul.bf16.gmra.mxu1 %v3685_v56  ;;  %v3493_v61 = vadd.f32 %v3492_v35, %v7427_v9 }
 0x511   : > { %v4010_v25 = vmax.f32 %v3931_v8, 0.0  ;;  %v3687_v30 = vpack.c.bf16 %v3643_v47, %v3641_v14 }
 0x512   : > { %v3582_v5 = vadd.f32 %v3581_v33, %v3493_v61 }
 0x514   : > { %v3843_v31 = vpop.f32.mrf.mxu0 }
 0x515   : > { %v3844_v59 = vadd.f32 %v7562_v21, %v3843_v31  ;;  %v3932_v11 = vpop.f32.mrf.mxu1 }
 0x517   : > { %v3933_v0 = vadd.f32 %v3932_v11, %v3844_v59  ;;  %v3495_v16 = vpop.f32.mrf.mxu2  ;;  %v3589_v60 = vpop.f32.mrf.mxu3 }
 0x519   : > { %v4011_v23 = vmax.f32 %v3933_v0, 0.0  ;;  %v3496_v0 = vadd.f32 %v3495_v16, %v7427_v9 }
 0x51b   : > { %v4042_v15 = vpack.c.bf16 %v4011_v23, %v4010_v25 }
 0x51c   : > { %v3846_v43 = vpop.f32.mrf.mxu0 }
 0x51d   : > { %v3935_v55 = vpop.f32.mrf.mxu1  ;;  %4168 = vmatmul.bf16.vlgmr.msra.gmra.mxu2 %v4042_v15  ;;  %4257 = vmatmul.bf16.vlgmr.msra.gmra.mxu3 %v4042_v15  ;;  %v3847_v29 = vadd.f32 %v7562_v21, %v3846_v43  ;;  %v3585_v43 = vadd.f32 %v3584_v24, %v3496_v0 }
 0x51f   : > { %3885 = vmatmul.bf16.gmra.mxu0 %v7477_v48  ;;  %v3936_v52 = vadd.f32 %v3935_v55, %v3847_v29  ;;  %v3647_v48 = vmax.f32 %v3577_v41, 0.0  ;;  %v3497_v42 = vpop.f32.mrf.mxu2  ;;  %v3653_v29 = vmax.f32 %v3585_v43, 0.0  ;;  %v3591_v27 = vpop.f32.mrf.mxu3 }
 0x520   : > { %3974 = vmatmul.bf16.gmra.mxu1 %v3687_v30  ;;  %v3498_v11 = vadd.f32 %v3497_v42, %v7427_v9 }
 0x521   : > { %v4012_v63 = vmax.f32 %v3936_v52, 0.0  ;;  %v3689_v18 = vpack.c.bf16 %v3647_v48, %v3645_v44 }
 0x522   : > { %v3587_v38 = vadd.f32 %v3586_v22, %v3498_v11 }
 0x524   : > { %v3848_v17 = vpop.f32.mrf.mxu0 }
 0x525   : > { %v3849_v10 = vadd.f32 %v7562_v21, %v3848_v17  ;;  %v3937_v36 = vpop.f32.mrf.mxu1 }
 0x527   : > { %v3938_v49 = vadd.f32 %v3937_v36, %v3849_v10  ;;  %v3500_v31 = vpop.f32.mrf.mxu2  ;;  %v3594_v48 = vpop.f32.mrf.mxu3 }
 0x528   : > { %v3501_v41 = vadd.f32 %v3500_v31, %v7427_v9 }
 0x529   : > { %v4013_v53 = vmax.f32 %v3938_v49, 0.0 }
 0x52a   : > { %v3590_v44 = vadd.f32 %v3589_v60, %v3501_v41 }
 0x52b   : > { %v4043_v37 = vpack.c.bf16 %v4013_v53, %v4012_v63 }
 0x52c   : > { %v3851_v19 = vpop.f32.mrf.mxu0 }
 0x52d   : > { %v3940_v7 = vpop.f32.mrf.mxu1  ;;  %4173 = vmatmul.bf16.gmra.mxu2 %v4043_v37  ;;  %4262 = vmatmul.bf16.gmra.mxu3 %v4043_v37  ;;  %v3852_v32 = vadd.f32 %v7562_v21, %v3851_v19 }
 0x52f   : > { %3890 = vmatmul.bf16.gmra.mxu0 %v7496_v2  ;;  %v3941_v20 = vadd.f32 %v3940_v7, %v3852_v32  ;;  %v3651_v2 = vmax.f32 %v3582_v5, 0.0  ;;  %v3502_v15 = vpop.f32.mrf.mxu2  ;;  %v3657_v32 = vmax.f32 %v3590_v44, 0.0 }
 0x530   : > { %3979 = vmatmul.bf16.gmra.mxu1 %v3689_v18  ;;  %v3503_v36 = vadd.f32 %v3502_v15, %v7427_v9 }
 0x531   : > { %v4014_v56 = vmax.f32 %v3941_v20, 0.0  ;;  %v3691_v51 = vpack.c.bf16 %v3651_v2, %v3649_v1 }
 0x532   : > { %v3592_v53 = vadd.f32 %v3591_v27, %v3503_v36 }
 0x534   : > { %v3853_v26 = vpop.f32.mrf.mxu0 }
 0x535   : > { %v3854_v46 = vadd.f32 %v7562_v21, %v3853_v26  ;;  %v3942_v50 = vpop.f32.mrf.mxu1  ;;  %v3596_v26 = vpop.f32.mrf.mxu3 }
 0x537   : > { %v3943_v13 = vadd.f32 %v3942_v50, %v3854_v46  ;;  %v3505_v52 = vpop.f32.mrf.mxu2 }
 0x538   : > { %v3506_v50 = vadd.f32 %v3505_v52, %v7427_v9 }
 0x539   : > { %v4015_v57 = vmax.f32 %v3943_v13, 0.0 }
 0x53b   : > { %v4044_v54 = vpack.c.bf16 %v4015_v57, %v4014_v56 }
 0x53c   : > { %v3856_v12 = vpop.f32.mrf.mxu0 }
 0x53d   : > { %v3945_v8 = vpop.f32.mrf.mxu1  ;;  %4178 = vmatmul.bf16.gmra.mxu2 %v4044_v54  ;;  %4267 = vmatmul.bf16.gmra.mxu3 %v4044_v54  ;;  %v3857_v59 = vadd.f32 %v7562_v21, %v3856_v12  ;;  %v3595_v54 = vadd.f32 %v3594_v48, %v3506_v50  ;;  %v3599_v31 = vpop.f32.mrf.mxu3 }
 0x53f   : > { %3895 = vmatmul.bf16.gmra.mxu0 %v7513_v45  ;;  %v3946_v25 = vadd.f32 %v3945_v8, %v3857_v59  ;;  %v3655_v45 = vmax.f32 %v3587_v38, 0.0  ;;  %v3507_v18 = vpop.f32.mrf.mxu2 }
 0x540   : > { %3984 = vmatmul.bf16.gmra.mxu1 %v3691_v51  ;;  %v3508_v46 = vadd.f32 %v3507_v18, %v7427_v9  ;;  %v3661_v51 = vmax.f32 %v3595_v54, 0.0 }
 0x541   : > { %v4016_v55 = vmax.f32 %v3946_v25, 0.0  ;;  %v3693_v33 = vpack.c.bf16 %v3655_v45, %v3653_v29 }
 0x542   : > { %v3597_v57 = vadd.f32 %v3596_v26, %v3508_v46 }
 0x544   : > { %v3858_v39 = vpop.f32.mrf.mxu0 }
 0x545   : > { %v3859_v23 = vadd.f32 %v7562_v21, %v3858_v39  ;;  %v3947_v47 = vpop.f32.mrf.mxu1  ;;  %v3601_v38 = vpop.f32.mrf.mxu3 }
 0x547   : > { %v3948_v14 = vadd.f32 %v3947_v47, %v3859_v23  ;;  %v3510_v13 = vpop.f32.mrf.mxu2 }
 0x548   : > { %v3511_v23 = vadd.f32 %v3510_v13, %v7427_v9 }
 0x549   : > { %v4017_v30 = vmax.f32 %v3948_v14, 0.0 }
 0x54a   : > { %v3600_v45 = vadd.f32 %v3599_v31, %v3511_v23 }
 0x54b   : > { %v4045_v35 = vpack.c.bf16 %v4017_v30, %v4016_v55 }
 0x54c   : > { %v3861_v62 = vpop.f32.mrf.mxu0  ;;  %v3665_v27 = vmax.f32 %v3600_v45, 0.0 }
 0x54d   : > { %v3950_v17 = vpop.f32.mrf.mxu1  ;;  %4183 = vmatmul.bf16.gmra.mxu2 %v4045_v35  ;;  %4272 = vmatmul.bf16.gmra.mxu3 %v4045_v35  ;;  %v3862_v10 = vadd.f32 %v7562_v21, %v3861_v62 }
 0x54f   : > { %3900 = vmatmul.bf16.gmra.mxu0 %v7526_v6  ;;  %v3951_v34 = vadd.f32 %v3950_v17, %v3862_v10  ;;  %v3659_v6 = vmax.f32 %v3592_v53, 0.0  ;;  %v3512_v0 = vpop.f32.mrf.mxu2 }
 0x550   : > { %3989 = vmatmul.bf16.gmra.mxu1 %v3693_v33  ;;  %v3513_v25 = vadd.f32 %v3512_v0, %v7427_v9 }
 0x551   : > { %v4018_v19 = vmax.f32 %v3951_v34, 0.0  ;;  %v3695_v4 = vpack.c.bf16 %v3659_v6, %v3657_v32 }
 0x552   : > { %v3602_v55 = vadd.f32 %v3601_v38, %v3513_v25 }
 0x554   : > { %v3863_v49 = vpop.f32.mrf.mxu0  ;;  %v3667_v62 = vmax.f32 %v3602_v55, 0.0 }
 0x555   : > { %v3864_v16 = vadd.f32 %v7562_v21, %v3863_v49  ;;  %v3952_v63 = vpop.f32.mrf.mxu1 }
 0x556   : > { %v3699_v52 = vpack.c.bf16 %v3667_v62, %v3665_v27 }
 0x557   : > { %v3953_v37 = vadd.f32 %v3952_v63, %v3864_v16 }
 0x559   : > { %v4019_v7 = vmax.f32 %v3953_v37, 0.0 }
 0x55b   : > { %v4046_v24 = vpack.c.bf16 %v4019_v7, %v4018_v19 }
 0x55c   : > { %v3866_v61 = vpop.f32.mrf.mxu0 }
 0x55d   : > { %v3955_v42 = vpop.f32.mrf.mxu1  ;;  %4188 = vmatmul.bf16.gmra.mxu2 %v4046_v24  ;;  %4277 = vmatmul.bf16.gmra.mxu3 %v4046_v24  ;;  %v3867_v20 = vadd.f32 %v7562_v21, %v3866_v61  ;;  %v4074_v61 = vld [vmem:[%s7875_s22] sm:$0x3]  ;;  %s6004_s22 = scalar_lea.hbm %s7876_s14, 1024 }
 0x55e   : > { %v7609_v46 = vperm.slane %v4074_v61, 1  ;;  %p6006_p7 = scmp.lt.s32.totalorder %s6004_s22, %s6000_s7 }
 0x55f   : > { %3905 = vmatmul.bf16.gmra.mxu0 %v7539_v58  ;;  %v3956_v28 = vadd.f32 %v3955_v42, %v3867_v20  ;;  %v3663_v58 = vmax.f32 %v3597_v57, 0.0  ;;  %v7607_v20 = vperm.slane %v4074_v61, 0 }
 0x560   : > { %3994 = vmatmul.bf16.gmra.mxu1 %v3695_v4  ;;  %p6007_p8 = por %p6006_p7, %p6005_p12 }
 0x561   : > { %v4020_v1 = vmax.f32 %v3956_v28, 0.0  ;;  %v3697_v60 = vpack.c.bf16 %v3663_v58, %v3661_v51 }
 0x562   : > { %p6008_p9 = pnand %p6007_p8, %p6003_p5 }
 0x564   : > { %v3868_v5 = vpop.f32.mrf.mxu0 }
 0x565   : > { %v3869_v22 = vadd.f32 %v7562_v21, %v3868_v5  ;;  %v3957_v56 = vpop.f32.mrf.mxu1 }
 0x567   : > { %v3958_v2 = vadd.f32 %v3957_v56, %v3869_v22 }
 0x569   : > { %v4021_v12 = vmax.f32 %v3958_v2, 0.0 }
 0x56b   : > { %v4047_v8 = vpack.c.bf16 %v4021_v12, %v4020_v1 }
 0x56c   : > { %v3871_v59 = vpop.f32.mrf.mxu0 }
 0x56d   : > { %v3960_v11 = vpop.f32.mrf.mxu1  ;;  %4193 = vmatmul.bf16.gmra.mxu2 %v4047_v8  ;;  %4282 = vmatmul.bf16.gmra.mxu3 %v4047_v8  ;;  %v3872_v39 = vadd.f32 %v7562_v21, %v3871_v59 }
 0x56f   : > { %3910 = vmatmul.bf16.gmra.mxu0 %v7548_v40  ;;  %v3961_v15 = vadd.f32 %v3960_v11, %v3872_v39 }
 0x570   : > { %3999 = vmatmul.bf16.gmra.mxu1 %v3697_v60 }
 0x571   : > { %v4022_v35 = vmax.f32 %v3961_v15, 0.0 }
 0x574   : > { %v3873_v47 = vpop.f32.mrf.mxu0 }
 0x575   : > { %v3874_v14 = vadd.f32 %v7562_v21, %v3873_v47  ;;  %v3962_v43 = vpop.f32.mrf.mxu1 }
 0x577   : > { %v3963_v30 = vadd.f32 %v3962_v43, %v3874_v14 }
 0x579   : > { %v4023_v29 = vmax.f32 %v3963_v30, 0.0 }
 0x57b   : > { %v4048_v40 = vpack.c.bf16 %v4023_v29, %v4022_v35 }
 0x57c   : > { %v3876_v17 = vpop.f32.mrf.mxu0 }
 0x57d   : > { %v3965_v33 = vpop.f32.mrf.mxu1  ;;  %4198 = vmatmul.bf16.gmra.mxu2 %v4048_v40  ;;  %4287 = vmatmul.bf16.gmra.mxu3 %v4048_v40  ;;  %v3877_v9 = vadd.f32 %v7562_v21, %v3876_v17 }
 0x57f   : > { %3915 = vmatmul.bf16.gmra.mxu0 %v7557_v3  ;;  %v3966_v36 = vadd.f32 %v3965_v33, %v3877_v9 }
 0x580   : > { %4004 = vmatmul.bf16.gmra.mxu1 %v3699_v52 }
 0x581   : > { %v4024_v16 = vmax.f32 %v3966_v36, 0.0 }
 0x584   : > { %v3878_v10 = vpop.f32.mrf.mxu0 }
 0x585   : > { %v3879_v41 = vadd.f32 %v7562_v21, %v3878_v10  ;;  %v3967_v49 = vpop.f32.mrf.mxu1 }
 0x587   : > { %v3968_v34 = vadd.f32 %v3967_v49, %v3879_v41 }
 0x589   : > { %v4025_v63 = vmax.f32 %v3968_v34, 0.0 }
 0x58b   : > { %v4049_v53 = vpack.c.bf16 %v4025_v63, %v4024_v16 }
 0x58c   : > { %v3881_v48 = vpop.f32.mrf.mxu0 }
 0x58d   : > { %v3970_v37 = vpop.f32.mrf.mxu1  ;;  %4203 = vmatmul.bf16.gmra.mxu2 %v4049_v53  ;;  %4292 = vmatmul.bf16.gmra.mxu3 %v4049_v53  ;;  %v3882_v44 = vadd.f32 %v7562_v21, %v3881_v48 }
 0x58f   : > { %v3971_v3 = vadd.f32 %v3970_v37, %v3882_v44 }
 0x591   : > { %v4026_v24 = vmax.f32 %v3971_v3, 0.0 }
 0x594   : > { %v3883_v19 = vpop.f32.mrf.mxu0 }
 0x595   : > { %v3884_v7 = vadd.f32 %v7562_v21, %v3883_v19  ;;  %v3972_v6 = vpop.f32.mrf.mxu1 }
 0x597   : > { %v3973_v18 = vadd.f32 %v3972_v6, %v3884_v7 }
 0x599   : > { %v4027_v32 = vmax.f32 %v3973_v18, 0.0 }
 0x59b   : > { %v4050_v42 = vpack.c.bf16 %v4027_v32, %v4026_v24 }
 0x59c   : > { %v3886_v4 = vpop.f32.mrf.mxu0 }
 0x59d   : > { %v3975_v26 = vpop.f32.mrf.mxu1  ;;  %4208 = vmatmul.bf16.gmra.mxu2 %v4050_v42  ;;  %4297 = vmatmul.bf16.gmra.mxu3 %v4050_v42  ;;  %v3887_v13 = vadd.f32 %v7562_v21, %v3886_v4 }
 0x59f   : > { %v3976_v57 = vadd.f32 %v3975_v26, %v3887_v13 }
 0x5a0   : > { %v4169_v50 = vpop.f32.mrf.mxu2  ;;  %v4258_v5 = vpop.f32.mrf.mxu3 }
 0x5a1   : > { %v4170_v28 = vadd.f32 %v4169_v50, %v7607_v20  ;;  %v4259_v22 = vadd.f32 %v4258_v5, %v7609_v46  ;;  %v4028_v31 = vmax.f32 %v3976_v57, 0.0 }
 0x5a3   : > { %4338 = vst [vmem:[%s7615_s3] sm:$0xff] %v4170_v28 }
 0x5a4   : > { %4339 = vst [vmem:[%s7615_s3 + $0x8] sm:$0xff] %v4259_v22  ;;  %v3888_v56 = vpop.f32.mrf.mxu0 }
 0x5a5   : > { %v3889_v2 = vadd.f32 %v7562_v21, %v3888_v56  ;;  %v3977_v54 = vpop.f32.mrf.mxu1 }
 0x5a7   : > { %v3978_v1 = vadd.f32 %v3977_v54, %v3889_v2 }
 0x5a8   : > { %v4171_v12 = vpop.f32.mrf.mxu2  ;;  %v4260_v58 = vpop.f32.mrf.mxu3 }
 0x5a9   : > { %v4029_v8 = vmax.f32 %v3978_v1, 0.0  ;;  %v4172_v51 = vadd.f32 %v4171_v12, %v7607_v20  ;;  %v4261_v59 = vadd.f32 %v4260_v58, %v7609_v46 }
 0x5ab   : > { %v4051_v11 = vpack.c.bf16 %v4029_v8, %v4028_v31  ;;  %4340 = vst [vmem:[%s7615_s3 + $0x10] sm:$0xff] %v4172_v51 }
 0x5ac   : > { %4341 = vst [vmem:[%s7615_s3 + $0x18] sm:$0xff] %v4261_v59  ;;  %v3891_v60 = vpop.f32.mrf.mxu0 }
 0x5ad   : > { %v3980_v0 = vpop.f32.mrf.mxu1  ;;  %4213 = vmatmul.bf16.gmra.mxu2 %v4051_v11  ;;  %4302 = vmatmul.bf16.gmra.mxu3 %v4051_v11  ;;  %v3892_v23 = vadd.f32 %v7562_v21, %v3891_v60 }
 0x5af   : > { %v3981_v14 = vadd.f32 %v3980_v0, %v3892_v23 }
 0x5b0   : > { %v4174_v39 = vpop.f32.mrf.mxu2  ;;  %v4263_v25 = vpop.f32.mrf.mxu3 }
 0x5b1   : > { %v4175_v47 = vadd.f32 %v4174_v39, %v7607_v20  ;;  %v4264_v38 = vadd.f32 %v4263_v25, %v7609_v46  ;;  %v4030_v29 = vmax.f32 %v3981_v14, 0.0 }
 0x5b3   : > { %4342 = vst [vmem:[%s7615_s3 + $0x20] sm:$0xff] %v4175_v47 }
 0x5b4   : > { %4343 = vst [vmem:[%s7615_s3 + $0x28] sm:$0xff] %v4264_v38  ;;  %v3893_v15 = vpop.f32.mrf.mxu0 }
 0x5b5   : > { %v3894_v43 = vadd.f32 %v7562_v21, %v3893_v15  ;;  %v3982_v55 = vpop.f32.mrf.mxu1 }
 0x5b7   : > { %v3983_v30 = vadd.f32 %v3982_v55, %v3894_v43 }
 0x5b8   : > { %v4176_v45 = vpop.f32.mrf.mxu2  ;;  %v4265_v35 = vpop.f32.mrf.mxu3 }
 0x5b9   : > { %v4031_v62 = vmax.f32 %v3983_v30, 0.0  ;;  %v4177_v40 = vadd.f32 %v4176_v45, %v7607_v20  ;;  %v4266_v27 = vadd.f32 %v4265_v35, %v7609_v46 }
 0x5bb   : > { %v4052_v17 = vpack.c.bf16 %v4031_v62, %v4030_v29  ;;  %4344 = vst [vmem:[%s7615_s3 + $0x30] sm:$0xff] %v4177_v40 }
 0x5bc   : > { %4345 = vst [vmem:[%s7615_s3 + $0x38] sm:$0xff] %v4266_v27  ;;  %v3896_v33 = vpop.f32.mrf.mxu0 }
 0x5bd   : > { %v3985_v52 = vpop.f32.mrf.mxu1  ;;  %4218 = vmatmul.bf16.gmra.mxu2 %v4052_v17  ;;  %4307 = vmatmul.bf16.gmra.mxu3 %v4052_v17  ;;  %v3897_v36 = vadd.f32 %v7562_v21, %v3896_v33 }
 0x5bf   : > { %v3986_v16 = vadd.f32 %v3985_v52, %v3897_v36 }
 0x5c0   : > { %v4179_v9 = vpop.f32.mrf.mxu2  ;;  %v4268_v10 = vpop.f32.mrf.mxu3 }
 0x5c1   : > { %v4180_v41 = vadd.f32 %v4179_v9, %v7607_v20  ;;  %v4269_v49 = vadd.f32 %v4268_v10, %v7609_v46  ;;  %v4032_v19 = vmax.f32 %v3986_v16, 0.0 }
 0x5c3   : > { %4346 = vst [vmem:[%s7615_s3 + $0x40] sm:$0xff] %v4180_v41 }
 0x5c4   : > { %4347 = vst [vmem:[%s7615_s3 + $0x48] sm:$0xff] %v4269_v49  ;;  %v3898_v34 = vpop.f32.mrf.mxu0 }
 0x5c5   : > { %v3899_v63 = vadd.f32 %v7562_v21, %v3898_v34  ;;  %v3987_v53 = vpop.f32.mrf.mxu1 }
 0x5c7   : > { %v3988_v48 = vadd.f32 %v3987_v53, %v3899_v63 }
 0x5c8   : > { %v4181_v37 = vpop.f32.mrf.mxu2  ;;  %v4270_v44 = vpop.f32.mrf.mxu3 }
 0x5c9   : > { %v4033_v3 = vmax.f32 %v3988_v48, 0.0  ;;  %v4182_v7 = vadd.f32 %v4181_v37, %v7607_v20  ;;  %v4271_v6 = vadd.f32 %v4270_v44, %v7609_v46 }
 0x5cb   : > { %v4053_v18 = vpack.c.bf16 %v4033_v3, %v4032_v19  ;;  %4348 = vst [vmem:[%s7615_s3 + $0x50] sm:$0xff] %v4182_v7 }
 0x5cc   : > { %4349 = vst [vmem:[%s7615_s3 + $0x58] sm:$0xff] %v4271_v6  ;;  %v3901_v24 = vpop.f32.mrf.mxu0 }
 0x5cd   : > { %v3990_v32 = vpop.f32.mrf.mxu1  ;;  %4223 = vmatmul.bf16.gmra.mxu2 %v4053_v18  ;;  %4312 = vmatmul.bf16.gmra.mxu3 %v4053_v18  ;;  %v3902_v4 = vadd.f32 %v7562_v21, %v3901_v24 }
 0x5cf   : > { %v3991_v13 = vadd.f32 %v3990_v32, %v3902_v4 }
 0x5d0   : > { %v4184_v61 = vpop.f32.mrf.mxu2  ;;  %v4273_v42 = vpop.f32.mrf.mxu3 }
 0x5d1   : > { %v4185_v26 = vadd.f32 %v4184_v61, %v7607_v20  ;;  %v4274_v50 = vadd.f32 %v4273_v42, %v7609_v46  ;;  %v4034_v54 = vmax.f32 %v3991_v13, 0.0 }
 0x5d3   : > { %4350 = vst [vmem:[%s7615_s3 + $0x60] sm:$0xff] %v4185_v26 }
 0x5d4   : > { %4351 = vst [vmem:[%s7615_s3 + $0x68] sm:$0xff] %v4274_v50  ;;  %v3903_v5 = vpop.f32.mrf.mxu0 }
 0x5d5   : > { %v3904_v28 = vadd.f32 %v7562_v21, %v3903_v5  ;;  %v3992_v22 = vpop.f32.mrf.mxu1 }
 0x5d7   : > { %v3993_v56 = vadd.f32 %v3992_v22, %v3904_v28 }
 0x5d8   : > { %v4186_v57 = vpop.f32.mrf.mxu2  ;;  %v4275_v2 = vpop.f32.mrf.mxu3 }
 0x5d9   : > { %v4035_v1 = vmax.f32 %v3993_v56, 0.0  ;;  %v4187_v12 = vadd.f32 %v4186_v57, %v7607_v20  ;;  %v4276_v58 = vadd.f32 %v4275_v2, %v7609_v46 }
 0x5db   : > { %v4054_v31 = vpack.c.bf16 %v4035_v1, %v4034_v54  ;;  %4352 = vst [vmem:[%s7615_s3 + $0x70] sm:$0xff] %v4187_v12 }
 0x5dc   : > { %4353 = vst [vmem:[%s7615_s3 + $0x78] sm:$0xff] %v4276_v58  ;;  %v3906_v8 = vpop.f32.mrf.mxu0 }
 0x5dd   : > { %v3995_v51 = vpop.f32.mrf.mxu1  ;;  %4228 = vmatmul.bf16.gmra.mxu2 %v4054_v31  ;;  %4317 = vmatmul.bf16.gmra.mxu3 %v4054_v31  ;;  %v3907_v60 = vadd.f32 %v7562_v21, %v3906_v8 }
 0x5df   : > { %v3996_v23 = vadd.f32 %v3995_v51, %v3907_v60 }
 0x5e0   : > { %v4189_v59 = vpop.f32.mrf.mxu2  ;;  %v4278_v11 = vpop.f32.mrf.mxu3 }
 0x5e1   : > { %v4190_v0 = vadd.f32 %v4189_v59, %v7607_v20  ;;  %v4279_v39 = vadd.f32 %v4278_v11, %v7609_v46  ;;  %v4036_v55 = vmax.f32 %v3996_v23, 0.0 }
 0x5e3   : > { %4354 = vst [vmem:[%s7615_s3 + $0x80] sm:$0xff] %v4190_v0 }
 0x5e4   : > { %4355 = vst [vmem:[%s7615_s3 + $0x88] sm:$0xff] %v4279_v39  ;;  %v3908_v25 = vpop.f32.mrf.mxu0 }
 0x5e5   : > { %v3909_v47 = vadd.f32 %v7562_v21, %v3908_v25  ;;  %v3997_v38 = vpop.f32.mrf.mxu1 }
 0x5e7   : > { %v3998_v15 = vadd.f32 %v3997_v38, %v3909_v47 }
 0x5e8   : > { %v4191_v14 = vpop.f32.mrf.mxu2  ;;  %v4280_v43 = vpop.f32.mrf.mxu3 }
 0x5e9   : > { %v4037_v30 = vmax.f32 %v3998_v15, 0.0  ;;  %v4192_v45 = vadd.f32 %v4191_v14, %v7607_v20  ;;  %v4281_v35 = vadd.f32 %v4280_v43, %v7609_v46 }
 0x5eb   : > { %v4055_v29 = vpack.c.bf16 %v4037_v30, %v4036_v55  ;;  %4356 = vst [vmem:[%s7615_s3 + $0x90] sm:$0xff] %v4192_v45 }
 0x5ec   : > { %4357 = vst [vmem:[%s7615_s3 + $0x98] sm:$0xff] %v4281_v35  ;;  %v3911_v62 = vpop.f32.mrf.mxu0 }
 0x5ed   : > { %v4000_v40 = vpop.f32.mrf.mxu1  ;;  %4233 = vmatmul.bf16.gmra.mxu2 %v4055_v29  ;;  %4322 = vmatmul.bf16.gmra.mxu3 %v4055_v29  ;;  %v3912_v33 = vadd.f32 %v7562_v21, %v3911_v62 }
 0x5ef   : > { %v4001_v36 = vadd.f32 %v4000_v40, %v3912_v33 }
 0x5f0   : > { %v4194_v27 = vpop.f32.mrf.mxu2  ;;  %v4283_v17 = vpop.f32.mrf.mxu3 }
 0x5f1   : > { %v4195_v52 = vadd.f32 %v4194_v27, %v7607_v20  ;;  %v4284_v9 = vadd.f32 %v4283_v17, %v7609_v46  ;;  %v4038_v53 = vmax.f32 %v4001_v36, 0.0 }
 0x5f3   : > { %4358 = vst [vmem:[%s7615_s3 + $0xa0] sm:$0xff] %v4195_v52 }
 0x5f4   : > { %4359 = vst [vmem:[%s7615_s3 + $0xa8] sm:$0xff] %v4284_v9  ;;  %v3913_v10 = vpop.f32.mrf.mxu0 }
 0x5f5   : > { %v3914_v41 = vadd.f32 %v7562_v21, %v3913_v10  ;;  %v4002_v49 = vpop.f32.mrf.mxu1 }
 0x5f7   : > { %v4003_v34 = vadd.f32 %v4002_v49, %v3914_v41 }
 0x5f8   : > { %v4196_v16 = vpop.f32.mrf.mxu2  ;;  %v4285_v63 = vpop.f32.mrf.mxu3 }
 0x5f9   : > { %v4039_v48 = vmax.f32 %v4003_v34, 0.0  ;;  %v4197_v37 = vadd.f32 %v4196_v16, %v7607_v20  ;;  %v4286_v44 = vadd.f32 %v4285_v63, %v7609_v46 }
 0x5fb   : > { %v4056_v19 = vpack.c.bf16 %v4039_v48, %v4038_v53  ;;  %4360 = vst [vmem:[%s7615_s3 + $0xb0] sm:$0xff] %v4197_v37 }
 0x5fc   : > { %4361 = vst [vmem:[%s7615_s3 + $0xb8] sm:$0xff] %v4286_v44  ;;  %v3916_v3 = vpop.f32.mrf.mxu0 }
 0x5fd   : > { %v4005_v7 = vpop.f32.mrf.mxu1  ;;  %4238 = vmatmul.bf16.gmra.mxu2 %v4056_v19  ;;  %4327 = vmatmul.bf16.gmra.mxu3 %v4056_v19  ;;  %v3917_v24 = vadd.f32 %v7562_v21, %v3916_v3 }
 0x5ff   : > { %v4006_v4 = vadd.f32 %v4005_v7, %v3917_v24 }
 0x600   : > { %v4199_v6 = vpop.f32.mrf.mxu2  ;;  %v4288_v18 = vpop.f32.mrf.mxu3 }
 0x601   : > { %v4200_v32 = vadd.f32 %v4199_v6, %v7607_v20  ;;  %v4289_v61 = vadd.f32 %v4288_v18, %v7609_v46  ;;  %v4040_v22 = vmax.f32 %v4006_v4, 0.0 }
 0x603   : > { %4362 = vst [vmem:[%s7615_s3 + $0xc0] sm:$0xff] %v4200_v32 }
 0x604   : > { %4363 = vst [vmem:[%s7615_s3 + $0xc8] sm:$0xff] %v4289_v61  ;;  %v3918_v42 = vpop.f32.mrf.mxu0 }
 0x605   : > { %v3919_v26 = vadd.f32 %v7562_v21, %v3918_v42  ;;  %v4007_v50 = vpop.f32.mrf.mxu1 }
 0x607   : > { %v4008_v5 = vadd.f32 %v4007_v50, %v3919_v26 }
 0x608   : > { %v4201_v13 = vpop.f32.mrf.mxu2  ;;  %v4290_v28 = vpop.f32.mrf.mxu3 }
 0x609   : > { %v4041_v56 = vmax.f32 %v4008_v5, 0.0  ;;  %v4202_v57 = vadd.f32 %v4201_v13, %v7607_v20  ;;  %v4291_v2 = vadd.f32 %v4290_v28, %v7609_v46 }
 0x60b   : > { %v4057_v54 = vpack.c.bf16 %v4041_v56, %v4040_v22  ;;  %4364 = vst [vmem:[%s7615_s3 + $0xd0] sm:$0xff] %v4202_v57 }
 0x60c   : > { %4365 = vst [vmem:[%s7615_s3 + $0xd8] sm:$0xff] %v4291_v2 }
 0x60d   : > { %4243 = vmatmul.bf16.gmra.mxu2 %v4057_v54  ;;  %4332 = vmatmul.bf16.gmra.mxu3 %v4057_v54 }
 0x610   : > { %v4204_v21 = vpop.f32.mrf.mxu2  ;;  %v4293_v1 = vpop.f32.mrf.mxu3 }
 0x611   : > { %v4205_v12 = vadd.f32 %v4204_v21, %v7607_v20  ;;  %v4294_v58 = vadd.f32 %v4293_v1, %v7609_v46 }
 0x613   : > { %4366 = vst [vmem:[%s7615_s3 + $0xe0] sm:$0xff] %v4205_v12 }
 0x614   : > { %4367 = vst [vmem:[%s7615_s3 + $0xe8] sm:$0xff] %v4294_v58 }
 0x618   : > { %v4206_v31 = vpop.f32.mrf.mxu2  ;;  %v4295_v8 = vpop.f32.mrf.mxu3 }
 0x619   : > { %v4207_v51 = vadd.f32 %v4206_v31, %v7607_v20  ;;  %v4296_v59 = vadd.f32 %v4295_v8, %v7609_v46 }
 0x61b   : > { %4368 = vst [vmem:[%s7615_s3 + $0xf0] sm:$0xff] %v4207_v51 }
 0x61c   : > { %4369 = vst [vmem:[%s7615_s3 + $0xf8] sm:$0xff] %v4296_v59 }
 0x620   : > { %v4209_v11 = vpop.f32.mrf.mxu2  ;;  %v4298_v60 = vpop.f32.mrf.mxu3 }
 0x621   : > { %v4210_v0 = vadd.f32 %v4209_v11, %v7607_v20  ;;  %v4299_v39 = vadd.f32 %v4298_v60, %v7609_v46 }
 0x622   : > { %6011 = shalt.err (!%p6008_p9)
}
 0x623   : > { %s6120_s17 = smov 256   ;;  %s6121_s18 = smov 16   ;;  %4370 = vst [vmem:[%s7615_s3 + $0x100] sm:$0xff] %v4210_v0 }
 0x624   : > { %5533 = dma.vmem_to_hbm [thread:$0]  (%p6349_p4), %s4440_s26, 8192, %s4442_s0, %s4408_s16, %s6120_s17, %s6120_s17, %s6121_s18  }
 0x625   : > { %4371 = vst [vmem:[%s7615_s3 + $0x108] sm:$0xff] %v4299_v39  ;;  %s7877_s16 = sld [smem:[#allocation43_spill]]  ;;  %s4421_s7 = sshll.u32 %s7615_s3, 4  ;;  %s4422_s7 = int_to_ptr.vmem [resolvable:$true] %s4421_s7 }
 0x626   : > { %s4403_s5 = scalar_lea.sflag [#allocation4], %s6380_s24 }
 0x628   : > { %v4211_v25 = vpop.f32.mrf.mxu2  ;;  %v4300_v23 = vpop.f32.mrf.mxu3 }
 0x629   : > { %v4212_v47 = vadd.f32 %v4211_v25, %v7607_v20  ;;  %v4301_v38 = vadd.f32 %v4300_v23, %v7609_v46 }
 0x62b   : > { %4372 = vst [vmem:[%s7615_s3 + $0x110] sm:$0xff] %v4212_v47  ;;  %s4420_s23 = scalar_lea.hbm %s7877_s16, %s5487_s20  ;;  %s6032_s12 = scalar_lea.hbm %s7877_s16, 1024 }
 0x62c   : > { %4373 = vst [vmem:[%s7615_s3 + $0x118] sm:$0xff] %v4301_v38  ;;  %s4423_s11 = sshll.u32 %s4420_s23, 4  ;;  %s4424_s11 = int_to_ptr.hbm [resolvable:$true] %s4423_s11 }
 0x62d   : > { %s6026_s22 = sshra.s32 %s4424_s11, 4  ;;  %s6027_s22 = int_to_ptr.hbm [resolvable:$true] %s6026_s22 }
 0x62e   : > { %s6028_s21 = scalar_lea.hbm %s6027_s22, 512  ;;  %p6033_p0 = scmp.lt.s32.totalorder %s6027_s22, %s7877_s16 }
 0x62f   : > { %p6029_p10 = scmp.ne.s32.totalorder %s6027_s22, %s6028_s21  ;;  %p6034_p2 = scmp.lt.s32.totalorder %s6032_s12, %s6028_s21 }
 0x630   : > { %v4214_v15 = vpop.f32.mrf.mxu2  ;;  %v4303_v14 = vpop.f32.mrf.mxu3 }
 0x631   : > { %v4215_v43 = vadd.f32 %v4214_v15, %v7607_v20  ;;  %v4304_v55 = vadd.f32 %v4303_v14, %v7609_v46  ;;  %p6030_p13 = pnand %p6029_p10, %p6349_p4  ;;  %p6035_p1 = por %p6034_p2, %p6033_p0 }
 0x633   : > { %4374 = vst [vmem:[%s7615_s3 + $0x120] sm:$0xff] %v4215_v43  ;;  %p6031_p11 = pneg %p6030_p13 }
 0x634   : > { %4375 = vst [vmem:[%s7615_s3 + $0x128] sm:$0xff] %v4304_v55 }
 0x635   : > { %p6036_p3 = pnand %p6035_p1, %p6031_p11 }
 0x638   : > { %v4216_v30 = vpop.f32.mrf.mxu2  ;;  %v4305_v45 = vpop.f32.mrf.mxu3 }
 0x639   : > { %v4217_v35 = vadd.f32 %v4216_v30, %v7607_v20  ;;  %v4306_v29 = vadd.f32 %v4305_v45, %v7609_v46 }
 0x63b   : > { %4376 = vst [vmem:[%s7615_s3 + $0x130] sm:$0xff] %v4217_v35 }
 0x63c   : > { %4377 = vst [vmem:[%s7615_s3 + $0x138] sm:$0xff] %v4306_v29 }
 0x640   : > { %v4219_v62 = vpop.f32.mrf.mxu2  ;;  %v4308_v40 = vpop.f32.mrf.mxu3 }
 0x641   : > { %v4220_v27 = vadd.f32 %v4219_v62, %v7607_v20  ;;  %v4309_v17 = vadd.f32 %v4308_v40, %v7609_v46 }
 0x643   : > { %4378 = vst [vmem:[%s7615_s3 + $0x140] sm:$0xff] %v4220_v27 }
 0x644   : > { %4379 = vst [vmem:[%s7615_s3 + $0x148] sm:$0xff] %v4309_v17 }
 0x648   : > { %v4221_v33 = vpop.f32.mrf.mxu2  ;;  %v4310_v52 = vpop.f32.mrf.mxu3 }
 0x649   : > { %v4222_v9 = vadd.f32 %v4221_v33, %v7607_v20  ;;  %v4311_v10 = vadd.f32 %v4310_v52, %v7609_v46 }
 0x64b   : > { %4380 = vst [vmem:[%s7615_s3 + $0x150] sm:$0xff] %v4222_v9 }
 0x64c   : > { %4381 = vst [vmem:[%s7615_s3 + $0x158] sm:$0xff] %v4311_v10 }
 0x650   : > { %v4224_v36 = vpop.f32.mrf.mxu2  ;;  %v4313_v41 = vpop.f32.mrf.mxu3 }
 0x651   : > { %v4225_v49 = vadd.f32 %v4224_v36, %v7607_v20  ;;  %v4314_v34 = vadd.f32 %v4313_v41, %v7609_v46 }
 0x653   : > { %4382 = vst [vmem:[%s7615_s3 + $0x160] sm:$0xff] %v4225_v49 }
 0x654   : > { %4383 = vst [vmem:[%s7615_s3 + $0x168] sm:$0xff] %v4314_v34 }
 0x658   : > { %v4226_v16 = vpop.f32.mrf.mxu2  ;;  %v4315_v63 = vpop.f32.mrf.mxu3 }
 0x659   : > { %v4227_v53 = vadd.f32 %v4226_v16, %v7607_v20  ;;  %v4316_v48 = vadd.f32 %v4315_v63, %v7609_v46 }
 0x65b   : > { %4384 = vst [vmem:[%s7615_s3 + $0x170] sm:$0xff] %v4227_v53 }
 0x65c   : > { %4385 = vst [vmem:[%s7615_s3 + $0x178] sm:$0xff] %v4316_v48 }
 0x660   : > { %v4229_v37 = vpop.f32.mrf.mxu2  ;;  %v4318_v44 = vpop.f32.mrf.mxu3 }
 0x661   : > { %v4230_v19 = vadd.f32 %v4229_v37, %v7607_v20  ;;  %v4319_v3 = vadd.f32 %v4318_v44, %v7609_v46 }
 0x663   : > { %4386 = vst [vmem:[%s7615_s3 + $0x180] sm:$0xff] %v4230_v19 }
 0x664   : > { %4387 = vst [vmem:[%s7615_s3 + $0x188] sm:$0xff] %v4319_v3 }
 0x668   : > { %v4231_v7 = vpop.f32.mrf.mxu2  ;;  %v4320_v6 = vpop.f32.mrf.mxu3 }
 0x669   : > { %v4232_v18 = vadd.f32 %v4231_v7, %v7607_v20  ;;  %v4321_v24 = vadd.f32 %v4320_v6, %v7609_v46 }
 0x66b   : > { %4388 = vst [vmem:[%s7615_s3 + $0x190] sm:$0xff] %v4232_v18 }
 0x66c   : > { %4389 = vst [vmem:[%s7615_s3 + $0x198] sm:$0xff] %v4321_v24 }
 0x670   : > { %v4234_v32 = vpop.f32.mrf.mxu2  ;;  %v4323_v61 = vpop.f32.mrf.mxu3 }
 0x671   : > { %v4235_v42 = vadd.f32 %v4234_v32, %v7607_v20  ;;  %v4324_v4 = vadd.f32 %v4323_v61, %v7609_v46 }
 0x673   : > { %4390 = vst [vmem:[%s7615_s3 + $0x1a0] sm:$0xff] %v4235_v42 }
 0x674   : > { %4391 = vst [vmem:[%s7615_s3 + $0x1a8] sm:$0xff] %v4324_v4 }
 0x678   : > { %v4236_v26 = vpop.f32.mrf.mxu2  ;;  %v4325_v50 = vpop.f32.mrf.mxu3 }
 0x679   : > { %v4237_v5 = vadd.f32 %v4236_v26, %v7607_v20  ;;  %v4326_v13 = vadd.f32 %v4325_v50, %v7609_v46 }
 0x67b   : > { %4392 = vst [vmem:[%s7615_s3 + $0x1b0] sm:$0xff] %v4237_v5 }
 0x67c   : > { %4393 = vst [vmem:[%s7615_s3 + $0x1b8] sm:$0xff] %v4326_v13 }
 0x680   : > { %v4239_v28 = vpop.f32.mrf.mxu2  ;;  %v4328_v22 = vpop.f32.mrf.mxu3 }
 0x681   : > { %v4240_v56 = vadd.f32 %v4239_v28, %v7607_v20  ;;  %v4329_v57 = vadd.f32 %v4328_v22, %v7609_v46 }
 0x683   : > { %4394 = vst [vmem:[%s7615_s3 + $0x1c0] sm:$0xff] %v4240_v56 }
 0x684   : > { %4395 = vst [vmem:[%s7615_s3 + $0x1c8] sm:$0xff] %v4329_v57 }
 0x688   : > { %v4241_v2 = vpop.f32.mrf.mxu2  ;;  %v4330_v54 = vpop.f32.mrf.mxu3 }
 0x689   : > { %v4242_v21 = vadd.f32 %v4241_v2, %v7607_v20  ;;  %v4331_v1 = vadd.f32 %v4330_v54, %v7609_v46 }
 0x68b   : > { %4396 = vst [vmem:[%s7615_s3 + $0x1d0] sm:$0xff] %v4242_v21 }
 0x68c   : > { %4397 = vst [vmem:[%s7615_s3 + $0x1d8] sm:$0xff] %v4331_v1 }
 0x690   : > { %v4244_v12 = vpop.f32.mrf.mxu2  ;;  %v4333_v58 = vpop.f32.mrf.mxu3 }
 0x691   : > { %v4245_v31 = vadd.f32 %v4244_v12, %v7607_v20  ;;  %v4334_v8 = vadd.f32 %v4333_v58, %v7609_v46 }
 0x693   : > { %4398 = vst [vmem:[%s7615_s3 + $0x1e0] sm:$0xff] %v4245_v31 }
 0x694   : > { %4399 = vst [vmem:[%s7615_s3 + $0x1e8] sm:$0xff] %v4334_v8 }
 0x698   : > { %v4246_v51 = vpop.f32.mrf.mxu2  ;;  %v4335_v59 = vpop.f32.mrf.mxu3 }
 0x699   : > { %v4247_v11 = vadd.f32 %v4246_v51, %v7607_v20  ;;  %v4336_v60 = vadd.f32 %v4335_v59, %v7609_v46 }
 0x69b   : > { %4400 = vst [vmem:[%s7615_s3 + $0x1f0] sm:$0xff] %v4247_v11 }
 0x69c   : > { %4401 = vst [vmem:[%s7615_s3 + $0x1f8] sm:$0xff] %v4336_v60 }
 0x69d   : > { %6039 = shalt.err (!%p6036_p3)
}
 0x69e   : > { %5532 = dma.vmem_to_hbm [thread:$0]  (%p6349_p4), %s4422_s7, 8192, %s4424_s11, %s4403_s5, %s6120_s17, %s6120_s17, %s6121_s18  }
 0x69f PF: > { %s4456_s24 = sand.u32 1, %s6090_s27   ;;  %p7878_p5 = scmp.ge.s32.totalorder %s6102_s30, 2 }
 0x6a0   : > { %s4457_s3 = scalar_lea.sflag [#allocation4], %s4456_s24 }
 0x6a1   : > { %p5572_p12 = pnand %p7878_p5, %p6353_p6 }
 0x6a3   : > { %p5573_p7 = pneg %p5572_p12 }
 0x6a5   : > { %6081 = dma.done.wait (%p5573_p7), %s4457_s3, 8192  }
 0x6a6   : > { %6083 = vsyncadd (%p5573_p7), %s4457_s3, 4294959104  ;;  %s4467_s23 = scalar_lea.sflag [#allocation22], %s4456_s24 }
 0x6a7   : > { %6085 = dma.done.wait (%p5573_p7), %s4467_s23, 8192  }
 0x6a8   : > { %6087 = vsyncadd (%p5573_p7), %s4467_s23, 4294959104  ;;  %p40_p4 = scmp.ge.s32.totalorder %s6323_s19, 4   ;;  %s7879_s27 = smov %s6094_s28 }
 0x6a9   : > { %s7880_s28 = smov %s6098_s29  ;;  %s7881_s29 = smov %s6334_s2 }
 0x6aa   : > { %s7882_s30 = smov %s6323_s19  ;;  %42 = sbr.rel (!%p40_p4) target bundleno = 27 (0x1b), region = 190 }
 0x6af   :  { %4473 = vsyncpa [#allocation3], 1 }
 0x6b0   :  { %4475 = vsyncpa [#allocation3 + $0x1], 1 }
 0x6b1   :  { %4476 = vsyncpa [#allocation6], 1 }
 0x6b2   :  { %4477 = vsyncpa [#allocation9], 1 }
 0x6b3   :  { %4478 = vsyncpa [#allocation12], 1 }
 0x6b4   :  { %4479 = vsyncpa [#allocation15], 1 }
 0x6b5   :  { %4480 = vsyncpa [#allocation18], 1 }
 0x6b6   :  { %4481 = vsyncpa [#allocation4], 1 }
 0x6b7   :  { %4483 = vsyncpa [#allocation4 + $0x1], 1 }
 0x6b8   :  { %4484 = vsyncpa [#allocation22], 1 }
 0x6b9   :  { %4486 = vsyncpa [#allocation22 + $0x1], 1 }

</bundles_post_ra>
